<compile_context>
chip_gen: v5e
topology: v5e:2x2
jax: 0.10.0
libtpu: 0.0.40
codegen_flags: <defaults>
</compile_context>

<pallas_src>
import jax
import jax.numpy as jnp
from jax.experimental import pallas as pl
from jax.experimental.pallas import tpu as pltpu


PARAM_ORDER = [
    "att_w_ih", "att_w_hh", "att_b",
    "lang_w_ih", "lang_w_hh", "lang_b",
    "h2att_w", "h2att_b", "alpha_w", "alpha_b",
    "hgate_w", "hgate_b", "ngate_w", "ngate_b",
    "pc1_w", "pc1_b", "pc2_w", "pc2_b",
]


def topdown_core_kernel(
    # data
    xt_ref, fc_ori_ref, fc_act_ref, fc_back_ref,
    att_act_ref, att_back_ref, att_ori_ref, att_mpm_ref,
    p_act_ref, p_back_ref, p_ori_ref, p_mpm_ref,
    mask_act_ref, mask_back_ref, mask_ori_ref,
    human_feats_ref, body_masks_ref,
    state_h_ref, state_c_ref,
    # parameters (LSTM weights pre-fused to (in, 4H); h2att fused to (H, 4*Ah))
    attw_ih_ref, attw_hh_ref, attb_ref,
    langw_ih_ref, langw_hh_ref, langb_ref,
    h2att_w_ref, h2att_b_ref, alpha_w_ref, alpha_b_ref,
    hgate_w_ref, hgate_b_ref, ngate_w_ref, ngate_b_ref,
    pc1_w_ref, pc1_b_ref, pc2_w_ref, pc2_b_ref,
    # outputs
    out_ref, new_h_ref, new_c_ref,
):
    H = out_ref.shape[-1]
    Ah = alpha_w_ref.shape[-1]
    f32 = jnp.float32

    def lstm(parts, h_prev, c_prev, w_ih_ref, w_hh_ref, b_ref):
        # Fused gates: one (B, 4H) matmul per input part (lane-dense N = 4H),
        # plus one for the recurrent weight.  PyTorch gate order: i, f, g, o.
        gates = jnp.dot(h_prev, w_hh_ref[...], preferred_element_type=f32) + b_ref[...]
        w_ih = w_ih_ref[...]
        off = 0
        for part in parts:
            d = part.shape[-1]
            gates = gates + jnp.dot(part, w_ih[off:off + d, :],
                                    preferred_element_type=f32)
            off += d
        i = jax.nn.sigmoid(gates[:, 0:H])
        f = jax.nn.sigmoid(gates[:, H:2 * H])
        g = jnp.tanh(gates[:, 2 * H:3 * H])
        o = jax.nn.sigmoid(gates[:, 3 * H:4 * H])
        c_new = f * c_prev + i * g
        h_new = o * jnp.tanh(c_new)
        return h_new, c_new

    xt = xt_ref[...]
    fc_ori = fc_ori_ref[...]
    fc_act = fc_act_ref[...]
    fc_back = fc_back_ref[...]
    h0, h1 = state_h_ref[0], state_h_ref[1]
    c0, c1 = state_c_ref[0], state_c_ref[1]
    prev_h = h1  # state[0][-1]

    # ---- attention LSTM: input = cat([prev_h, fc_ori, xt]) ----
    h_att, c_att = lstm([prev_h, fc_ori, xt], h0, c0,
                        attw_ih_ref, attw_hh_ref, attb_ref)

    # ---- fused h -> att_hid projection for all 4 attention branches ----
    att_h_all = (jnp.dot(h_att, h2att_w_ref[...], preferred_element_type=f32)
                 + h2att_b_ref[...])                                  # (B, 4*Ah)

    def attention(k, p_att_ref, feats_ref, mask_ref):
        att_h = att_h_all[:, k * Ah:(k + 1) * Ah]                     # (B, Ah)
        w_a = alpha_w_ref[k]                                          # (Ah,)
        b_a = alpha_b_ref[k]                                          # (1,)
        p_att = p_att_ref[...]                                        # (B, A, Ah)
        mask = mask_ref[...]                                          # (B, A)

        dot = jnp.tanh(p_att + att_h[:, None, :])                     # (B, A, Ah)
        scores = jnp.sum(dot * w_a[None, None, :], axis=-1) + b_a     # (B, A)

        # Masked softmax, single normalization (exactly equal to
        # softmax -> *mask -> /(sum + 1e-10) since the epsilon is rescaled by z).
        m = jnp.max(scores, axis=-1, keepdims=True)
        e = jnp.exp(scores - m)
        z = jnp.sum(e, axis=-1, keepdims=True)
        num = e * mask
        denom = jnp.sum(num, axis=-1, keepdims=True) + 1e-10 * z
        w = num * pl.reciprocal(denom, approx=True)                   # (B, A)

        # bmm-style pooling on the MXU: (B,1,A) x (B,A,H) -> (B,1,H)
        pooled = jnp.einsum("bma,bah->bmh", w[:, None, :], feats_ref[...],
                            preferred_element_type=f32)
        return pooled[:, 0]                                           # (B, H)

    # ---- activity attention + human gate ----
    att_activity = attention(0, p_act_ref, att_act_ref, mask_act_ref)
    gh = (jnp.dot(fc_act, hgate_w_ref[0:H, :], preferred_element_type=f32)
          + jnp.dot(h_att, hgate_w_ref[H:2 * H, :], preferred_element_type=f32)
          + hgate_b_ref[...])
    gate_human = jax.nn.sigmoid(jnp.maximum(gh, 0.0))   # dropout = identity

    # ---- body-part pooling + calibration ----
    part_sum = jnp.sum(human_feats_ref[...], axis=1)                  # (B, H)
    mask_sum = jnp.sum(body_masks_ref[...], axis=1, keepdims=True)    # (B, 1)
    att_part = part_sum / (mask_sum + 1e-10)
    pc_hidden = (jnp.dot(att_part, pc1_w_ref[0:H, :], preferred_element_type=f32)
                 + jnp.dot(att_activity, pc1_w_ref[H:2 * H, :], preferred_element_type=f32)
                 + pc1_b_ref[...])
    pc_hidden = jnp.maximum(pc_hidden, 0.0)
    att_part = jnp.dot(pc_hidden, pc2_w_ref[...], preferred_element_type=f32) + pc2_b_ref[...]
    att_human = att_activity + att_part

    # ---- background attention + non-human gate ----
    att_obj = attention(1, p_back_ref, att_back_ref, mask_back_ref)
    go = (jnp.dot(fc_back, ngate_w_ref[0:H, :], preferred_element_type=f32)
          + jnp.dot(h_att, ngate_w_ref[H:2 * H, :], preferred_element_type=f32)
          + ngate_b_ref[...])
    gate_obj = jax.nn.sigmoid(jnp.maximum(go, 0.0))

    # ---- ori + mpm attention, fuse (mpm reuses the ori mask, as in PyTorch) ----
    att_ori = attention(2, p_ori_ref, att_ori_ref, mask_ori_ref)
    att_ori = att_human * gate_human + att_obj * gate_obj + att_ori
    att_mpm = attention(3, p_mpm_ref, att_mpm_ref, mask_ori_ref)

    # ---- language LSTM: input = cat([att_mpm, att_ori, h_att]) ----
    h_lang, c_lang = lstm([att_mpm, att_ori, h_att], h1, c1,
                          langw_ih_ref, langw_hh_ref, langb_ref)

    out_ref[...] = h_lang            # F.dropout is identity in eval mode
    new_h_ref[0] = h_att
    new_h_ref[1] = h_lang
    new_c_ref[0] = c_att
    new_c_ref[1] = c_lang


@jax.jit
def topdown_core_hc(params, xt, fc_feats_all,
                    att_feats_activity, p_att_feats_activity, att_masks_activity,
                    att_feats_back, p_att_feats_back, att_masks_back,
                    att_feats_ori, p_att_feats_ori, att_masks_ori,
                    att_feats_mpm, p_att_feats_mpm,
                    human_feats, body_masks, state):
    state_h, state_c = state
    B, E = xt.shape
    H = state_h.shape[-1]
    A = att_feats_activity.shape[1]
    Ah = p_att_feats_activity.shape[-1]
    NB = human_feats.shape[1]

    # slice the fused fc features (cheap views)
    fc_ori = fc_feats_all[:, 0:H]
    fc_act = fc_feats_all[:, H:2 * H]
    fc_back = fc_feats_all[:, 2 * H:3 * H]

    # Batch tile: whole batch at small sizes; cap at 256 rows per grid step for
    # production so (double-buffered inputs + weights) stays within v7x's VMEM.
    TB = B if B <= 256 else 256
    assert B % TB == 0, "pad the batch to a multiple of the batch tile"
    nb = B // TB

    data_inputs = [
        xt, fc_ori, fc_act, fc_back,
        att_feats_activity, att_feats_back, att_feats_ori, att_feats_mpm,
        p_att_feats_activity, p_att_feats_back, p_att_feats_ori, p_att_feats_mpm,
        att_masks_activity, att_masks_back, att_masks_ori,
        human_feats, body_masks,
        state_h, state_c,
    ]
    param_inputs = [params[n] for n in PARAM_ORDER]
    inputs = data_inputs + param_inputs

    row2 = lambda i: (i, 0)
    row3 = lambda i: (i, 0, 0)
    stt = lambda i: (0, i, 0)
    in_specs = (
        [pl.BlockSpec((TB, E), row2),
         pl.BlockSpec((TB, H), row2),
         pl.BlockSpec((TB, H), row2),
         pl.BlockSpec((TB, H), row2)]
        + [pl.BlockSpec((TB, A, H), row3) for _ in range(4)]
        + [pl.BlockSpec((TB, A, Ah), row3) for _ in range(4)]
        + [pl.BlockSpec((TB, A), row2) for _ in range(3)]
        + [pl.BlockSpec((TB, NB, H), row3),
           pl.BlockSpec((TB, NB), row2),
           pl.BlockSpec((2, TB, H), stt),
           pl.BlockSpec((2, TB, H), stt)]
        # weights: full block, constant index_map -> stay resident across grid
        + [pl.BlockSpec(p.shape, lambda i: (0, 0)) for p in param_inputs]
    )
    out_specs = (
        pl.BlockSpec((TB, H), row2),
        pl.BlockSpec((2, TB, H), stt),
        pl.BlockSpec((2, TB, H), stt),
    )

    out, new_h, new_c = pl.pallas_call(
        topdown_core_kernel,
        out_shape=(jax.ShapeDtypeStruct((B, H), jnp.float32),
                   jax.ShapeDtypeStruct((2, B, H), jnp.float32),
                   jax.ShapeDtypeStruct((2, B, H), jnp.float32)),
        grid=(nb,),
        in_specs=in_specs,
        out_specs=out_specs,
        # state buffers are fully overwritten -> alias them to the outputs
        input_output_aliases={17: 1, 18: 2},
        compiler_params=pltpu.CompilerParams(
            dimension_semantics=("parallel",),
            vmem_limit_bytes=48 * 1024 * 1024),
    )(*inputs)
    return out, (new_h, new_c)


# ---------------------------------------------------------------------------
# Pure-JAX reference (mirrors PyTorch semantics, incl. the original two-step
# softmax->mask->renorm) for correctness checking of the fused kernel.
# ---------------------------------------------------------------------------
def reference_forward(params, xt, fc_feats_all,
                      att_feats_activity, p_att_feats_activity, att_masks_activity,
                      att_feats_back, p_att_feats_back, att_masks_back,
                      att_feats_ori, p_att_feats_ori, att_masks_ori,
                      att_feats_mpm, p_att_feats_mpm,
                      human_feats, body_masks, state):
    state_h, state_c = state
    H = state_h.shape[-1]
    p = params
    Ah = p["alpha_w"].shape[-1]

    def lstm(x, h, c, w_ih, w_hh, b):
        g = x @ w_ih + h @ w_hh + b                # (B, 4H); gate order i,f,g,o
        i, f = jax.nn.sigmoid(g[:, :H]), jax.nn.sigmoid(g[:, H:2 * H])
        gg, o = jnp.tanh(g[:, 2 * H:3 * H]), jax.nn.sigmoid(g[:, 3 * H:])
        c_new = f * c + i * gg
        return o * jnp.tanh(c_new), c_new

    def attn(k, h, feats, p_att, mask):
        att_h = h @ p["h2att_w"][:, k * Ah:(k + 1) * Ah] + p["h2att_b"][0, k * Ah:(k + 1) * Ah]
        d = jnp.tanh(p_att + att_h[:, None, :])
        s = jnp.sum(d * p["alpha_w"][k], axis=-1) + p["alpha_b"][k]
        w = jax.nn.softmax(s, axis=-1)
        w = w * mask
        w = w / (jnp.sum(w, axis=-1, keepdims=True) + 1e-10)
        return jnp.einsum("ba,bah->bh", w, feats)

    prev_h = state_h[1]
    fc_ori, fc_act, fc_back = (fc_feats_all[:, :H], fc_feats_all[:, H:2 * H],
                               fc_feats_all[:, 2 * H:3 * H])
    att_in = jnp.concatenate([prev_h, fc_ori, xt], axis=1)
    h_att, c_att = lstm(att_in, state_h[0], state_c[0],
                        p["att_w_ih"], p["att_w_hh"], p["att_b"])
    att_activity = attn(0, h_att, att_feats_activity, p_att_feats_activity, att_masks_activity)
    gate_human = jax.nn.sigmoid(jax.nn.relu(
        jnp.concatenate([fc_act, h_att], 1) @ p["hgate_w"] + p["hgate_b"]))
    att_part = jnp.sum(human_feats, axis=1) / (jnp.sum(body_masks, axis=1, keepdims=True) + 1e-10)
    att_part = (jax.nn.relu(jnp.concatenate([att_part, att_activity], 1) @ p["pc1_w"] + p["pc1_b"])
                @ p["pc2_w"] + p["pc2_b"])
    att_human = att_activity + att_part
    att_obj = attn(1, h_att, att_feats_back, p_att_feats_back, att_masks_back)
    gate_obj = jax.nn.sigmoid(jax.nn.relu(
        jnp.concatenate([fc_back, h_att], 1) @ p["ngate_w"] + p["ngate_b"]))
    att_ori = attn(2, h_att, att_feats_ori, p_att_feats_ori, att_masks_ori)
    att_ori = att_human * gate_human + att_obj * gate_obj + att_ori
    att_mpm = attn(3, h_att, att_feats_mpm, p_att_feats_mpm, att_masks_ori)
    lang_in = jnp.concatenate([att_mpm, att_ori, h_att], 1)
    h_lang, c_lang = lstm(lang_in, state_h[1], state_c[1],
                          p["lang_w_ih"], p["lang_w_hh"], p["lang_b"])
    return h_lang, (jnp.stack([h_att, h_lang]), jnp.stack([c_att, c_lang]))


def init_params(key, E, H, Ah):
    ks = jax.random.split(key, len(PARAM_ORDER))

    def w(k, shape, scale=0.1):
        return jax.random.normal(k, shape, jnp.float32) * scale

    shapes = {
        # fused LSTM weights: columns are the 4 gates (i,f,g,o); b_ih+b_hh folded
        "att_w_ih": (2 * H + E, 4 * H),   # rows = [prev_h | fc_ori | xt]
        "att_w_hh": (H, 4 * H),
        "att_b": (1, 4 * H),
        "lang_w_ih": (3 * H, 4 * H),      # rows = [att_mpm | att_ori | h_att]
        "lang_w_hh": (H, 4 * H),
        "lang_b": (1, 4 * H),
        # fused attention projections: columns = [activity | back | ori | mpm]
        "h2att_w": (H, 4 * Ah),
        "h2att_b": (1, 4 * Ah),
        "alpha_w": (4, Ah),
        "alpha_b": (4, 1),
        "hgate_w": (2 * H, H),            # rows = [fc_activity | h_att]
        "hgate_b": (1, H),
        "ngate_w": (2 * H, H),            # rows = [fc_back | h_att]
        "ngate_b": (1, H),
        "pc1_w": (2 * H, H),              # rows = [att_part | att_activity]
        "pc1_b": (1, H),
        "pc2_w": (H, H),
        "pc2_b": (1, H),
    }
    return {name: w(k, shapes[name]) for name, k in zip(PARAM_ORDER, ks)}


if __name__ == "__main__":
    B, E, H, Ah, A, NB = 4, 32, 32, 32, 8, 4

    key = jax.random.PRNGKey(0)
    keys = jax.random.split(key, 16)
    xt = jax.random.normal(keys[0], (B, E), jnp.float32)
    fc_feats_all = jax.random.normal(keys[1], (B, 3 * H), jnp.float32)
    att_feats_activity = jax.random.normal(keys[2], (B, A, H), jnp.float32)
    p_att_feats_activity = jax.random.normal(keys[3], (B, A, Ah), jnp.float32)
    att_feats_back = jax.random.normal(keys[4], (B, A, H), jnp.float32)
    p_att_feats_back = jax.random.normal(keys[5], (B, A, Ah), jnp.float32)
    att_feats_ori = jax.random.normal(keys[6], (B, A, H), jnp.float32)
    p_att_feats_ori = jax.random.normal(keys[7], (B, A, Ah), jnp.float32)
    att_feats_mpm = jax.random.normal(keys[8], (B, A, H), jnp.float32)
    p_att_feats_mpm = jax.random.normal(keys[9], (B, A, Ah), jnp.float32)
    att_masks_activity = jnp.ones((B, A), jnp.float32)
    att_masks_back = jnp.ones((B, A), jnp.float32)
    att_masks_ori = jnp.ones((B, A), jnp.float32)
    human_feats = jax.random.normal(keys[10], (B, NB, H), jnp.float32)
    body_masks = jnp.ones((B, NB), jnp.float32)
    state_h = jax.random.normal(keys[11], (2, B, H), jnp.float32) * 0.1
    state_c = jax.random.normal(keys[12], (2, B, H), jnp.float32) * 0.1
    state = (state_h, state_c)

    params = init_params(keys[13], E, H, Ah)

    args = (params, xt, fc_feats_all,
            att_feats_activity, p_att_feats_activity, att_masks_activity,
            att_feats_back, p_att_feats_back, att_masks_back,
            att_feats_ori, p_att_feats_ori, att_masks_ori,
            att_feats_mpm, p_att_feats_mpm,
            human_feats, body_masks, state)

    out, (new_h, new_c) = topdown_core_hc(*args)
    jax.block_until_ready((out, new_h, new_c))

    ref_out, (ref_h, ref_c) = reference_forward(*args)
    assert jnp.allclose(out, ref_out, atol=5e-3, rtol=5e-3)
    assert jnp.allclose(new_h, ref_h, atol=5e-3, rtol=5e-3)
    assert jnp.allclose(new_c, ref_c, atol=5e-3, rtol=5e-3)

    print("KERNEL_OK")
</pallas_src>

<mosaic_0001>
module attributes {stable_mosaic.version = 11 : i64} {
  func.func @topdown_core_kernel(%arg0: i32, %arg1: memref<4x32xf32, #tpu.memory_space<vmem>>, %arg2: memref<4x32xf32, #tpu.memory_space<vmem>>, %arg3: memref<4x32xf32, #tpu.memory_space<vmem>>, %arg4: memref<4x32xf32, #tpu.memory_space<vmem>>, %arg5: memref<4x8x32xf32, #tpu.memory_space<vmem>>, %arg6: memref<4x8x32xf32, #tpu.memory_space<vmem>>, %arg7: memref<4x8x32xf32, #tpu.memory_space<vmem>>, %arg8: memref<4x8x32xf32, #tpu.memory_space<vmem>>, %arg9: memref<4x8x32xf32, #tpu.memory_space<vmem>>, %arg10: memref<4x8x32xf32, #tpu.memory_space<vmem>>, %arg11: memref<4x8x32xf32, #tpu.memory_space<vmem>>, %arg12: memref<4x8x32xf32, #tpu.memory_space<vmem>>, %arg13: memref<4x8xf32, #tpu.memory_space<vmem>>, %arg14: memref<4x8xf32, #tpu.memory_space<vmem>>, %arg15: memref<4x8xf32, #tpu.memory_space<vmem>>, %arg16: memref<4x4x32xf32, #tpu.memory_space<vmem>>, %arg17: memref<4x4xf32, #tpu.memory_space<vmem>>, %arg18: memref<2x4x32xf32, #tpu.memory_space<vmem>>, %arg19: memref<2x4x32xf32, #tpu.memory_space<vmem>>, %arg20: memref<96x128xf32, #tpu.memory_space<vmem>>, %arg21: memref<32x128xf32, #tpu.memory_space<vmem>>, %arg22: memref<1x128xf32, #tpu.memory_space<vmem>>, %arg23: memref<96x128xf32, #tpu.memory_space<vmem>>, %arg24: memref<32x128xf32, #tpu.memory_space<vmem>>, %arg25: memref<1x128xf32, #tpu.memory_space<vmem>>, %arg26: memref<32x128xf32, #tpu.memory_space<vmem>>, %arg27: memref<1x128xf32, #tpu.memory_space<vmem>>, %arg28: memref<4x32xf32, #tpu.memory_space<vmem>>, %arg29: memref<4x1xf32, #tpu.memory_space<vmem>>, %arg30: memref<64x32xf32, #tpu.memory_space<vmem>>, %arg31: memref<1x32xf32, #tpu.memory_space<vmem>>, %arg32: memref<64x32xf32, #tpu.memory_space<vmem>>, %arg33: memref<1x32xf32, #tpu.memory_space<vmem>>, %arg34: memref<64x32xf32, #tpu.memory_space<vmem>>, %arg35: memref<1x32xf32, #tpu.memory_space<vmem>>, %arg36: memref<32x32xf32, #tpu.memory_space<vmem>>, %arg37: memref<1x32xf32, #tpu.memory_space<vmem>>, %arg38: memref<4x32xf32, #tpu.memory_space<vmem>>, %arg39: memref<2x4x32xf32, #tpu.memory_space<vmem>>, %arg40: memref<2x4x32xf32, #tpu.memory_space<vmem>>) attributes {dimension_semantics = [#tpu.dimension_semantics<parallel>], iteration_bounds = array<i64: 1>, scalar_prefetch = 0 : i64, scratch_operands = 0 : i64, tpu.core_type = #tpu.core_type<tc>, window_params = [{transform_indices = @transform_0, window_bounds = array<i64: 4, 32>}, {transform_indices = @transform_1, window_bounds = array<i64: 4, 32>}, {transform_indices = @transform_2, window_bounds = array<i64: 4, 32>}, {transform_indices = @transform_3, window_bounds = array<i64: 4, 32>}, {transform_indices = @transform_4, window_bounds = array<i64: 4, 8, 32>}, {transform_indices = @transform_5, window_bounds = array<i64: 4, 8, 32>}, {transform_indices = @transform_6, window_bounds = array<i64: 4, 8, 32>}, {transform_indices = @transform_7, window_bounds = array<i64: 4, 8, 32>}, {transform_indices = @transform_8, window_bounds = array<i64: 4, 8, 32>}, {transform_indices = @transform_9, window_bounds = array<i64: 4, 8, 32>}, {transform_indices = @transform_10, window_bounds = array<i64: 4, 8, 32>}, {transform_indices = @transform_11, window_bounds = array<i64: 4, 8, 32>}, {transform_indices = @transform_12, window_bounds = array<i64: 4, 8>}, {transform_indices = @transform_13, window_bounds = array<i64: 4, 8>}, {transform_indices = @transform_14, window_bounds = array<i64: 4, 8>}, {transform_indices = @transform_15, window_bounds = array<i64: 4, 4, 32>}, {transform_indices = @transform_16, window_bounds = array<i64: 4, 4>}, {transform_indices = @transform_17, window_bounds = array<i64: 2, 4, 32>}, {transform_indices = @transform_18, window_bounds = array<i64: 2, 4, 32>}, {pipeline_mode = #tpu.pipeline_mode<synchronous>, transform_indices = @transform_19, window_bounds = array<i64: 96, 128>}, {pipeline_mode = #tpu.pipeline_mode<synchronous>, transform_indices = @transform_20, window_bounds = array<i64: 32, 128>}, {pipeline_mode = #tpu.pipeline_mode<synchronous>, transform_indices = @transform_21, window_bounds = array<i64: 1, 128>}, {pipeline_mode = #tpu.pipeline_mode<synchronous>, transform_indices = @transform_22, window_bounds = array<i64: 96, 128>}, {pipeline_mode = #tpu.pipeline_mode<synchronous>, transform_indices = @transform_23, window_bounds = array<i64: 32, 128>}, {pipeline_mode = #tpu.pipeline_mode<synchronous>, transform_indices = @transform_24, window_bounds = array<i64: 1, 128>}, {pipeline_mode = #tpu.pipeline_mode<synchronous>, transform_indices = @transform_25, window_bounds = array<i64: 32, 128>}, {pipeline_mode = #tpu.pipeline_mode<synchronous>, transform_indices = @transform_26, window_bounds = array<i64: 1, 128>}, {pipeline_mode = #tpu.pipeline_mode<synchronous>, transform_indices = @transform_27, window_bounds = array<i64: 4, 32>}, {pipeline_mode = #tpu.pipeline_mode<synchronous>, transform_indices = @transform_28, window_bounds = array<i64: 4, 1>}, {pipeline_mode = #tpu.pipeline_mode<synchronous>, transform_indices = @transform_29, window_bounds = array<i64: 64, 32>}, {pipeline_mode = #tpu.pipeline_mode<synchronous>, transform_indices = @transform_30, window_bounds = array<i64: 1, 32>}, {pipeline_mode = #tpu.pipeline_mode<synchronous>, transform_indices = @transform_31, window_bounds = array<i64: 64, 32>}, {pipeline_mode = #tpu.pipeline_mode<synchronous>, transform_indices = @transform_32, window_bounds = array<i64: 1, 32>}, {pipeline_mode = #tpu.pipeline_mode<synchronous>, transform_indices = @transform_33, window_bounds = array<i64: 64, 32>}, {pipeline_mode = #tpu.pipeline_mode<synchronous>, transform_indices = @transform_34, window_bounds = array<i64: 1, 32>}, {pipeline_mode = #tpu.pipeline_mode<synchronous>, transform_indices = @transform_35, window_bounds = array<i64: 32, 32>}, {pipeline_mode = #tpu.pipeline_mode<synchronous>, transform_indices = @transform_36, window_bounds = array<i64: 1, 32>}, {transform_indices = @transform_37, window_bounds = array<i64: 4, 32>}, {transform_indices = @transform_38, window_bounds = array<i64: 2, 4, 32>}, {transform_indices = @transform_39, window_bounds = array<i64: 2, 4, 32>}]} {
    %c0 = arith.constant 0 : index
    %c0_0 = arith.constant 0 : index
    %0 = vector.load %arg1[%c0, %c0_0] : memref<4x32xf32, #tpu.memory_space<vmem>>, vector<4x32xf32>
    %c0_1 = arith.constant 0 : index
    %c0_2 = arith.constant 0 : index
    %1 = vector.load %arg2[%c0_1, %c0_2] : memref<4x32xf32, #tpu.memory_space<vmem>>, vector<4x32xf32>
    %c0_3 = arith.constant 0 : index
    %c0_4 = arith.constant 0 : index
    %2 = vector.load %arg3[%c0_3, %c0_4] : memref<4x32xf32, #tpu.memory_space<vmem>>, vector<4x32xf32>
    %c0_5 = arith.constant 0 : index
    %c0_6 = arith.constant 0 : index
    %3 = vector.load %arg4[%c0_5, %c0_6] : memref<4x32xf32, #tpu.memory_space<vmem>>, vector<4x32xf32>
    %c0_7 = arith.constant 0 : index
    %c0_8 = arith.constant 0 : index
    %c0_9 = arith.constant 0 : index
    %4 = vector.load %arg18[%c0_7, %c0_8, %c0_9] : memref<2x4x32xf32, #tpu.memory_space<vmem>>, vector<1x4x32xf32>
    %5 = vector.shape_cast %4 : vector<1x4x32xf32> to vector<4x32xf32>
    %c1 = arith.constant 1 : index
    %c0_10 = arith.constant 0 : index
    %c0_11 = arith.constant 0 : index
    %6 = vector.load %arg18[%c1, %c0_10, %c0_11] : memref<2x4x32xf32, #tpu.memory_space<vmem>>, vector<1x4x32xf32>
    %7 = vector.shape_cast %6 : vector<1x4x32xf32> to vector<4x32xf32>
    %c0_12 = arith.constant 0 : index
    %c0_13 = arith.constant 0 : index
    %c0_14 = arith.constant 0 : index
    %8 = vector.load %arg19[%c0_12, %c0_13, %c0_14] : memref<2x4x32xf32, #tpu.memory_space<vmem>>, vector<1x4x32xf32>
    %9 = vector.shape_cast %8 : vector<1x4x32xf32> to vector<4x32xf32>
    %c1_15 = arith.constant 1 : index
    %c0_16 = arith.constant 0 : index
    %c0_17 = arith.constant 0 : index
    %10 = vector.load %arg19[%c1_15, %c0_16, %c0_17] : memref<2x4x32xf32, #tpu.memory_space<vmem>>, vector<1x4x32xf32>
    %11 = vector.shape_cast %10 : vector<1x4x32xf32> to vector<4x32xf32>
    %c0_18 = arith.constant 0 : index
    %c0_19 = arith.constant 0 : index
    %12 = vector.load %arg21[%c0_18, %c0_19] : memref<32x128xf32, #tpu.memory_space<vmem>>, vector<32x128xf32>
    %cst = arith.constant dense<0.000000e+00> : vector<4x128xf32>
    %13 = tpu.matmul %5, %12, %cst {dimension_numbers = #tpu.dot_dimension_numbers<[1], [0], [0], [1], [0, 0, 1, 1], [], []>} : vector<4x32xf32>, vector<32x128xf32>, vector<4x128xf32> -> vector<4x128xf32>
    %c0_20 = arith.constant 0 : index
    %c0_21 = arith.constant 0 : index
    %14 = vector.load %arg22[%c0_20, %c0_21] : memref<1x128xf32, #tpu.memory_space<vmem>>, vector<1x128xf32>
    %15 = vector.broadcast %14 : vector<1x128xf32> to vector<4x128xf32>
    %16 = arith.addf %13, %15 : vector<4x128xf32>
    %c0_22 = arith.constant 0 : index
    %c0_23 = arith.constant 0 : index
    %17 = vector.load %arg20[%c0_22, %c0_23] : memref<96x128xf32, #tpu.memory_space<vmem>>, vector<96x128xf32>
    %18 = vector.extract_strided_slice %17 {offsets = [0, 0], sizes = [32, 128], strides = [1, 1]} : vector<96x128xf32> to vector<32x128xf32>
    %cst_24 = arith.constant dense<0.000000e+00> : vector<4x128xf32>
    %19 = tpu.matmul %7, %18, %cst_24 {dimension_numbers = #tpu.dot_dimension_numbers<[1], [0], [0], [1], [0, 0, 1, 1], [], []>} : vector<4x32xf32>, vector<32x128xf32>, vector<4x128xf32> -> vector<4x128xf32>
    %20 = arith.addf %16, %19 : vector<4x128xf32>
    %21 = vector.extract_strided_slice %17 {offsets = [32, 0], sizes = [32, 128], strides = [1, 1]} : vector<96x128xf32> to vector<32x128xf32>
    %cst_25 = arith.constant dense<0.000000e+00> : vector<4x128xf32>
    %22 = tpu.matmul %1, %21, %cst_25 {dimension_numbers = #tpu.dot_dimension_numbers<[1], [0], [0], [1], [0, 0, 1, 1], [], []>} : vector<4x32xf32>, vector<32x128xf32>, vector<4x128xf32> -> vector<4x128xf32>
    %23 = arith.addf %20, %22 : vector<4x128xf32>
    %24 = vector.extract_strided_slice %17 {offsets = [64, 0], sizes = [32, 128], strides = [1, 1]} : vector<96x128xf32> to vector<32x128xf32>
    %cst_26 = arith.constant dense<0.000000e+00> : vector<4x128xf32>
    %25 = tpu.matmul %0, %24, %cst_26 {dimension_numbers = #tpu.dot_dimension_numbers<[1], [0], [0], [1], [0, 0, 1, 1], [], []>} : vector<4x32xf32>, vector<32x128xf32>, vector<4x128xf32> -> vector<4x128xf32>
    %26 = arith.addf %23, %25 : vector<4x128xf32>
    %27 = vector.extract_strided_slice %26 {offsets = [0, 0], sizes = [4, 32], strides = [1, 1]} : vector<4x128xf32> to vector<4x32xf32>
    %28 = arith.negf %27 : vector<4x32xf32>
    %29 = math.exp %28 : vector<4x32xf32>
    %cst_27 = arith.constant 1.000000e+00 : f32
    %30 = vector.broadcast %cst_27 : f32 to vector<4x32xf32>
    %31 = arith.addf %30, %29 : vector<4x32xf32>
    %32 = arith.divf %30, %31 : vector<4x32xf32>
    %33 = vector.extract_strided_slice %26 {offsets = [0, 32], sizes = [4, 32], strides = [1, 1]} : vector<4x128xf32> to vector<4x32xf32>
    %34 = arith.negf %33 : vector<4x32xf32>
    %35 = math.exp %34 : vector<4x32xf32>
    %cst_28 = arith.constant 1.000000e+00 : f32
    %36 = vector.broadcast %cst_28 : f32 to vector<4x32xf32>
    %37 = arith.addf %36, %35 : vector<4x32xf32>
    %38 = arith.divf %36, %37 : vector<4x32xf32>
    %39 = vector.extract_strided_slice %26 {offsets = [0, 64], sizes = [4, 32], strides = [1, 1]} : vector<4x128xf32> to vector<4x32xf32>
    %40 = math.tanh %39 : vector<4x32xf32>
    %41 = vector.extract_strided_slice %26 {offsets = [0, 96], sizes = [4, 32], strides = [1, 1]} : vector<4x128xf32> to vector<4x32xf32>
    %42 = arith.negf %41 : vector<4x32xf32>
    %43 = math.exp %42 : vector<4x32xf32>
    %cst_29 = arith.constant 1.000000e+00 : f32
    %44 = vector.broadcast %cst_29 : f32 to vector<4x32xf32>
    %45 = arith.addf %44, %43 : vector<4x32xf32>
    %46 = arith.divf %44, %45 : vector<4x32xf32>
    %47 = arith.mulf %38, %9 : vector<4x32xf32>
    %48 = arith.mulf %32, %40 : vector<4x32xf32>
    %49 = arith.addf %47, %48 : vector<4x32xf32>
    %50 = math.tanh %49 : vector<4x32xf32>
    %51 = arith.mulf %46, %50 : vector<4x32xf32>
    %c0_30 = arith.constant 0 : index
    %c0_31 = arith.constant 0 : index
    %52 = vector.load %arg26[%c0_30, %c0_31] : memref<32x128xf32, #tpu.memory_space<vmem>>, vector<32x128xf32>
    %cst_32 = arith.constant dense<0.000000e+00> : vector<4x128xf32>
    %53 = tpu.matmul %51, %52, %cst_32 {dimension_numbers = #tpu.dot_dimension_numbers<[1], [0], [0], [1], [0, 0, 1, 1], [], []>} : vector<4x32xf32>, vector<32x128xf32>, vector<4x128xf32> -> vector<4x128xf32>
    %c0_33 = arith.constant 0 : index
    %c0_34 = arith.constant 0 : index
    %54 = vector.load %arg27[%c0_33, %c0_34] : memref<1x128xf32, #tpu.memory_space<vmem>>, vector<1x128xf32>
    %55 = vector.broadcast %54 : vector<1x128xf32> to vector<4x128xf32>
    %56 = arith.addf %53, %55 : vector<4x128xf32>
    %57 = vector.extract_strided_slice %56 {offsets = [0, 0], sizes = [4, 32], strides = [1, 1]} : vector<4x128xf32> to vector<4x32xf32>
    %c0_35 = arith.constant 0 : index
    %c0_36 = arith.constant 0 : index
    %58 = vector.load %arg28[%c0_35, %c0_36] : memref<4x32xf32, #tpu.memory_space<vmem>>, vector<1x32xf32>
    %59 = vector.shape_cast %58 : vector<1x32xf32> to vector<32xf32>
    %c0_37 = arith.constant 0 : index
    %c0_38 = arith.constant 0 : index
    %60 = vector.load %arg29[%c0_37, %c0_38] : memref<4x1xf32, #tpu.memory_space<vmem>>, vector<1x1xf32>
    %61 = vector.shape_cast %60 : vector<1x1xf32> to vector<1xf32>
    %c0_39 = arith.constant 0 : index
    %c0_40 = arith.constant 0 : index
    %c0_41 = arith.constant 0 : index
    %62 = vector.load %arg9[%c0_39, %c0_40, %c0_41] : memref<4x8x32xf32, #tpu.memory_space<vmem>>, vector<4x8x32xf32>
    %c0_42 = arith.constant 0 : index
    %c0_43 = arith.constant 0 : index
    %63 = vector.load %arg13[%c0_42, %c0_43] : memref<4x8xf32, #tpu.memory_space<vmem>>, vector<4x8xf32>
    %64 = vector.shape_cast %57 : vector<4x32xf32> to vector<4x1x32xf32>
    %65 = vector.broadcast %64 : vector<4x1x32xf32> to vector<4x8x32xf32>
    %66 = arith.addf %62, %65 : vector<4x8x32xf32>
    %67 = math.tanh %66 : vector<4x8x32xf32>
    %68 = vector.shape_cast %59 : vector<32xf32> to vector<1x1x32xf32>
    %69 = vector.broadcast %68 : vector<1x1x32xf32> to vector<4x8x32xf32>
    %70 = arith.mulf %67, %69 : vector<4x8x32xf32>
    %cst_44 = arith.constant dense<0.000000e+00> : vector<4x8xf32>
    %71 = vector.multi_reduction <add>, %70, %cst_44 [2] : vector<4x8x32xf32> to vector<4x8xf32>
    %72 = vector.shape_cast %61 : vector<1xf32> to vector<1x1xf32>
    %73 = vector.broadcast %72 : vector<1x1xf32> to vector<4x8xf32>
    %74 = arith.addf %71, %73 : vector<4x8xf32>
    %cst_45 = arith.constant dense<0xFF800000> : vector<4xf32>
    %75 = vector.multi_reduction <maximumf>, %74, %cst_45 [1] : vector<4x8xf32> to vector<4xf32>
    %76 = vector.shape_cast %75 : vector<4xf32> to vector<4x1xf32>
    %77 = vector.broadcast %76 : vector<4x1xf32> to vector<4x8xf32>
    %78 = arith.subf %74, %77 : vector<4x8xf32>
    %79 = math.exp %78 : vector<4x8xf32>
    %cst_46 = arith.constant dense<0.000000e+00> : vector<4xf32>
    %80 = vector.multi_reduction <add>, %79, %cst_46 [1] : vector<4x8xf32> to vector<4xf32>
    %81 = vector.shape_cast %80 : vector<4xf32> to vector<4x1xf32>
    %82 = arith.mulf %79, %63 : vector<4x8xf32>
    %cst_47 = arith.constant dense<0.000000e+00> : vector<4xf32>
    %83 = vector.multi_reduction <add>, %82, %cst_47 [1] : vector<4x8xf32> to vector<4xf32>
    %84 = vector.shape_cast %83 : vector<4xf32> to vector<4x1xf32>
    %cst_48 = arith.constant 1.000000e-10 : f32
    %85 = vector.broadcast %cst_48 : f32 to vector<4x1xf32>
    %86 = arith.mulf %85, %81 : vector<4x1xf32>
    %87 = arith.addf %84, %86 : vector<4x1xf32>
    %88 = tpu.reciprocal %87 {approx = true} : vector<4x1xf32> -> vector<4x1xf32>
    %89 = vector.broadcast %88 : vector<4x1xf32> to vector<4x8xf32>
    %90 = arith.mulf %82, %89 : vector<4x8xf32>
    %91 = vector.shape_cast %90 : vector<4x8xf32> to vector<4x1x8xf32>
    %c0_49 = arith.constant 0 : index
    %c0_50 = arith.constant 0 : index
    %c0_51 = arith.constant 0 : index
    %92 = vector.load %arg5[%c0_49, %c0_50, %c0_51] : memref<4x8x32xf32, #tpu.memory_space<vmem>>, vector<4x8x32xf32>
    "tpu.trace_start"() <{level = 10 : i32, message = "bma,bah->bmh"}> : () -> ()
    %cst_52 = arith.constant dense<0.000000e+00> : vector<4x1x32xf32>
    %93 = tpu.matmul %91, %92, %cst_52 {dimension_numbers = #tpu.dot_dimension_numbers<[2], [1], [1], [2], [0, 0, 0, 1, 1, 2], [0], [0]>} : vector<4x1x8xf32>, vector<4x8x32xf32>, vector<4x1x32xf32> -> vector<4x1x32xf32>
    "tpu.trace_stop"() : () -> ()
    %94 = vector.shape_cast %93 : vector<4x1x32xf32> to vector<4x32xf32>
    %c0_53 = arith.constant 0 : index
    %c0_54 = arith.constant 0 : index
    %95 = vector.load %arg30[%c0_53, %c0_54] : memref<64x32xf32, #tpu.memory_space<vmem>>, vector<32x32xf32>
    %cst_55 = arith.constant dense<0.000000e+00> : vector<4x32xf32>
    %96 = tpu.matmul %2, %95, %cst_55 {dimension_numbers = #tpu.dot_dimension_numbers<[1], [0], [0], [1], [0, 0, 1, 1], [], []>} : vector<4x32xf32>, vector<32x32xf32>, vector<4x32xf32> -> vector<4x32xf32>
    %c32 = arith.constant 32 : index
    %c0_56 = arith.constant 0 : index
    %97 = vector.load %arg30[%c32, %c0_56] : memref<64x32xf32, #tpu.memory_space<vmem>>, vector<32x32xf32>
    %cst_57 = arith.constant dense<0.000000e+00> : vector<4x32xf32>
    %98 = tpu.matmul %51, %97, %cst_57 {dimension_numbers = #tpu.dot_dimension_numbers<[1], [0], [0], [1], [0, 0, 1, 1], [], []>} : vector<4x32xf32>, vector<32x32xf32>, vector<4x32xf32> -> vector<4x32xf32>
    %99 = arith.addf %96, %98 : vector<4x32xf32>
    %c0_58 = arith.constant 0 : index
    %c0_59 = arith.constant 0 : index
    %100 = vector.load %arg31[%c0_58, %c0_59] : memref<1x32xf32, #tpu.memory_space<vmem>>, vector<1x32xf32>
    %101 = vector.broadcast %100 : vector<1x32xf32> to vector<4x32xf32>
    %102 = arith.addf %99, %101 : vector<4x32xf32>
    %cst_60 = arith.constant 0.000000e+00 : f32
    %103 = vector.broadcast %cst_60 : f32 to vector<4x32xf32>
    %104 = arith.maximumf %102, %103 : vector<4x32xf32>
    %105 = arith.negf %104 : vector<4x32xf32>
    %106 = math.exp %105 : vector<4x32xf32>
    %cst_61 = arith.constant 1.000000e+00 : f32
    %107 = vector.broadcast %cst_61 : f32 to vector<4x32xf32>
    %108 = arith.addf %107, %106 : vector<4x32xf32>
    %109 = arith.divf %107, %108 : vector<4x32xf32>
    %c0_62 = arith.constant 0 : index
    %c0_63 = arith.constant 0 : index
    %c0_64 = arith.constant 0 : index
    %110 = vector.load %arg16[%c0_62, %c0_63, %c0_64] : memref<4x4x32xf32, #tpu.memory_space<vmem>>, vector<4x4x32xf32>
    %cst_65 = arith.constant dense<0.000000e+00> : vector<4x32xf32>
    %111 = vector.multi_reduction <add>, %110, %cst_65 [1] : vector<4x4x32xf32> to vector<4x32xf32>
    %c0_66 = arith.constant 0 : index
    %c0_67 = arith.constant 0 : index
    %112 = vector.load %arg17[%c0_66, %c0_67] : memref<4x4xf32, #tpu.memory_space<vmem>>, vector<4x4xf32>
    %cst_68 = arith.constant dense<0.000000e+00> : vector<4xf32>
    %113 = vector.multi_reduction <add>, %112, %cst_68 [1] : vector<4x4xf32> to vector<4xf32>
    %114 = vector.shape_cast %113 : vector<4xf32> to vector<4x1xf32>
    %cst_69 = arith.constant 1.000000e-10 : f32
    %115 = vector.broadcast %cst_69 : f32 to vector<4x1xf32>
    %116 = arith.addf %114, %115 : vector<4x1xf32>
    %117 = vector.broadcast %116 : vector<4x1xf32> to vector<4x32xf32>
    %118 = arith.divf %111, %117 : vector<4x32xf32>
    %c0_70 = arith.constant 0 : index
    %c0_71 = arith.constant 0 : index
    %119 = vector.load %arg34[%c0_70, %c0_71] : memref<64x32xf32, #tpu.memory_space<vmem>>, vector<32x32xf32>
    %cst_72 = arith.constant dense<0.000000e+00> : vector<4x32xf32>
    %120 = tpu.matmul %118, %119, %cst_72 {dimension_numbers = #tpu.dot_dimension_numbers<[1], [0], [0], [1], [0, 0, 1, 1], [], []>} : vector<4x32xf32>, vector<32x32xf32>, vector<4x32xf32> -> vector<4x32xf32>
    %c32_73 = arith.constant 32 : index
    %c0_74 = arith.constant 0 : index
    %121 = vector.load %arg34[%c32_73, %c0_74] : memref<64x32xf32, #tpu.memory_space<vmem>>, vector<32x32xf32>
    %cst_75 = arith.constant dense<0.000000e+00> : vector<4x32xf32>
    %122 = tpu.matmul %94, %121, %cst_75 {dimension_numbers = #tpu.dot_dimension_numbers<[1], [0], [0], [1], [0, 0, 1, 1], [], []>} : vector<4x32xf32>, vector<32x32xf32>, vector<4x32xf32> -> vector<4x32xf32>
    %123 = arith.addf %120, %122 : vector<4x32xf32>
    %c0_76 = arith.constant 0 : index
    %c0_77 = arith.constant 0 : index
    %124 = vector.load %arg35[%c0_76, %c0_77] : memref<1x32xf32, #tpu.memory_space<vmem>>, vector<1x32xf32>
    %125 = vector.broadcast %124 : vector<1x32xf32> to vector<4x32xf32>
    %126 = arith.addf %123, %125 : vector<4x32xf32>
    %cst_78 = arith.constant 0.000000e+00 : f32
    %127 = vector.broadcast %cst_78 : f32 to vector<4x32xf32>
    %128 = arith.maximumf %126, %127 : vector<4x32xf32>
    %c0_79 = arith.constant 0 : index
    %c0_80 = arith.constant 0 : index
    %129 = vector.load %arg36[%c0_79, %c0_80] : memref<32x32xf32, #tpu.memory_space<vmem>>, vector<32x32xf32>
    %cst_81 = arith.constant dense<0.000000e+00> : vector<4x32xf32>
    %130 = tpu.matmul %128, %129, %cst_81 {dimension_numbers = #tpu.dot_dimension_numbers<[1], [0], [0], [1], [0, 0, 1, 1], [], []>} : vector<4x32xf32>, vector<32x32xf32>, vector<4x32xf32> -> vector<4x32xf32>
    %c0_82 = arith.constant 0 : index
    %c0_83 = arith.constant 0 : index
    %131 = vector.load %arg37[%c0_82, %c0_83] : memref<1x32xf32, #tpu.memory_space<vmem>>, vector<1x32xf32>
    %132 = vector.broadcast %131 : vector<1x32xf32> to vector<4x32xf32>
    %133 = arith.addf %130, %132 : vector<4x32xf32>
    %134 = arith.addf %94, %133 : vector<4x32xf32>
    %135 = vector.extract_strided_slice %56 {offsets = [0, 32], sizes = [4, 32], strides = [1, 1]} : vector<4x128xf32> to vector<4x32xf32>
    %c1_84 = arith.constant 1 : index
    %c0_85 = arith.constant 0 : index
    %136 = vector.load %arg28[%c1_84, %c0_85] : memref<4x32xf32, #tpu.memory_space<vmem>>, vector<1x32xf32>
    %137 = vector.shape_cast %136 : vector<1x32xf32> to vector<32xf32>
    %c1_86 = arith.constant 1 : index
    %c0_87 = arith.constant 0 : index
    %138 = vector.load %arg29[%c1_86, %c0_87] : memref<4x1xf32, #tpu.memory_space<vmem>>, vector<1x1xf32>
    %139 = vector.shape_cast %138 : vector<1x1xf32> to vector<1xf32>
    %c0_88 = arith.constant 0 : index
    %c0_89 = arith.constant 0 : index
    %c0_90 = arith.constant 0 : index
    %140 = vector.load %arg10[%c0_88, %c0_89, %c0_90] : memref<4x8x32xf32, #tpu.memory_space<vmem>>, vector<4x8x32xf32>
    %c0_91 = arith.constant 0 : index
    %c0_92 = arith.constant 0 : index
    %141 = vector.load %arg14[%c0_91, %c0_92] : memref<4x8xf32, #tpu.memory_space<vmem>>, vector<4x8xf32>
    %142 = vector.shape_cast %135 : vector<4x32xf32> to vector<4x1x32xf32>
    %143 = vector.broadcast %142 : vector<4x1x32xf32> to vector<4x8x32xf32>
    %144 = arith.addf %140, %143 : vector<4x8x32xf32>
    %145 = math.tanh %144 : vector<4x8x32xf32>
    %146 = vector.shape_cast %137 : vector<32xf32> to vector<1x1x32xf32>
    %147 = vector.broadcast %146 : vector<1x1x32xf32> to vector<4x8x32xf32>
    %148 = arith.mulf %145, %147 : vector<4x8x32xf32>
    %cst_93 = arith.constant dense<0.000000e+00> : vector<4x8xf32>
    %149 = vector.multi_reduction <add>, %148, %cst_93 [2] : vector<4x8x32xf32> to vector<4x8xf32>
    %150 = vector.shape_cast %139 : vector<1xf32> to vector<1x1xf32>
    %151 = vector.broadcast %150 : vector<1x1xf32> to vector<4x8xf32>
    %152 = arith.addf %149, %151 : vector<4x8xf32>
    %cst_94 = arith.constant dense<0xFF800000> : vector<4xf32>
    %153 = vector.multi_reduction <maximumf>, %152, %cst_94 [1] : vector<4x8xf32> to vector<4xf32>
    %154 = vector.shape_cast %153 : vector<4xf32> to vector<4x1xf32>
    %155 = vector.broadcast %154 : vector<4x1xf32> to vector<4x8xf32>
    %156 = arith.subf %152, %155 : vector<4x8xf32>
    %157 = math.exp %156 : vector<4x8xf32>
    %cst_95 = arith.constant dense<0.000000e+00> : vector<4xf32>
    %158 = vector.multi_reduction <add>, %157, %cst_95 [1] : vector<4x8xf32> to vector<4xf32>
    %159 = vector.shape_cast %158 : vector<4xf32> to vector<4x1xf32>
    %160 = arith.mulf %157, %141 : vector<4x8xf32>
    %cst_96 = arith.constant dense<0.000000e+00> : vector<4xf32>
    %161 = vector.multi_reduction <add>, %160, %cst_96 [1] : vector<4x8xf32> to vector<4xf32>
    %162 = vector.shape_cast %161 : vector<4xf32> to vector<4x1xf32>
    %cst_97 = arith.constant 1.000000e-10 : f32
    %163 = vector.broadcast %cst_97 : f32 to vector<4x1xf32>
    %164 = arith.mulf %163, %159 : vector<4x1xf32>
    %165 = arith.addf %162, %164 : vector<4x1xf32>
    %166 = tpu.reciprocal %165 {approx = true} : vector<4x1xf32> -> vector<4x1xf32>
    %167 = vector.broadcast %166 : vector<4x1xf32> to vector<4x8xf32>
    %168 = arith.mulf %160, %167 : vector<4x8xf32>
    %169 = vector.shape_cast %168 : vector<4x8xf32> to vector<4x1x8xf32>
    %c0_98 = arith.constant 0 : index
    %c0_99 = arith.constant 0 : index
    %c0_100 = arith.constant 0 : index
    %170 = vector.load %arg6[%c0_98, %c0_99, %c0_100] : memref<4x8x32xf32, #tpu.memory_space<vmem>>, vector<4x8x32xf32>
    "tpu.trace_start"() <{level = 10 : i32, message = "bma,bah->bmh"}> : () -> ()
    %cst_101 = arith.constant dense<0.000000e+00> : vector<4x1x32xf32>
    %171 = tpu.matmul %169, %170, %cst_101 {dimension_numbers = #tpu.dot_dimension_numbers<[2], [1], [1], [2], [0, 0, 0, 1, 1, 2], [0], [0]>} : vector<4x1x8xf32>, vector<4x8x32xf32>, vector<4x1x32xf32> -> vector<4x1x32xf32>
    "tpu.trace_stop"() : () -> ()
    %172 = vector.shape_cast %171 : vector<4x1x32xf32> to vector<4x32xf32>
    %c0_102 = arith.constant 0 : index
    %c0_103 = arith.constant 0 : index
    %173 = vector.load %arg32[%c0_102, %c0_103] : memref<64x32xf32, #tpu.memory_space<vmem>>, vector<32x32xf32>
    %cst_104 = arith.constant dense<0.000000e+00> : vector<4x32xf32>
    %174 = tpu.matmul %3, %173, %cst_104 {dimension_numbers = #tpu.dot_dimension_numbers<[1], [0], [0], [1], [0, 0, 1, 1], [], []>} : vector<4x32xf32>, vector<32x32xf32>, vector<4x32xf32> -> vector<4x32xf32>
    %c32_105 = arith.constant 32 : index
    %c0_106 = arith.constant 0 : index
    %175 = vector.load %arg32[%c32_105, %c0_106] : memref<64x32xf32, #tpu.memory_space<vmem>>, vector<32x32xf32>
    %cst_107 = arith.constant dense<0.000000e+00> : vector<4x32xf32>
    %176 = tpu.matmul %51, %175, %cst_107 {dimension_numbers = #tpu.dot_dimension_numbers<[1], [0], [0], [1], [0, 0, 1, 1], [], []>} : vector<4x32xf32>, vector<32x32xf32>, vector<4x32xf32> -> vector<4x32xf32>
    %177 = arith.addf %174, %176 : vector<4x32xf32>
    %c0_108 = arith.constant 0 : index
    %c0_109 = arith.constant 0 : index
    %178 = vector.load %arg33[%c0_108, %c0_109] : memref<1x32xf32, #tpu.memory_space<vmem>>, vector<1x32xf32>
    %179 = vector.broadcast %178 : vector<1x32xf32> to vector<4x32xf32>
    %180 = arith.addf %177, %179 : vector<4x32xf32>
    %cst_110 = arith.constant 0.000000e+00 : f32
    %181 = vector.broadcast %cst_110 : f32 to vector<4x32xf32>
    %182 = arith.maximumf %180, %181 : vector<4x32xf32>
    %183 = arith.negf %182 : vector<4x32xf32>
    %184 = math.exp %183 : vector<4x32xf32>
    %cst_111 = arith.constant 1.000000e+00 : f32
    %185 = vector.broadcast %cst_111 : f32 to vector<4x32xf32>
    %186 = arith.addf %185, %184 : vector<4x32xf32>
    %187 = arith.divf %185, %186 : vector<4x32xf32>
    %188 = vector.extract_strided_slice %56 {offsets = [0, 64], sizes = [4, 32], strides = [1, 1]} : vector<4x128xf32> to vector<4x32xf32>
    %c2 = arith.constant 2 : index
    %c0_112 = arith.constant 0 : index
    %189 = vector.load %arg28[%c2, %c0_112] : memref<4x32xf32, #tpu.memory_space<vmem>>, vector<1x32xf32>
    %190 = vector.shape_cast %189 : vector<1x32xf32> to vector<32xf32>
    %c2_113 = arith.constant 2 : index
    %c0_114 = arith.constant 0 : index
    %191 = vector.load %arg29[%c2_113, %c0_114] : memref<4x1xf32, #tpu.memory_space<vmem>>, vector<1x1xf32>
    %192 = vector.shape_cast %191 : vector<1x1xf32> to vector<1xf32>
    %c0_115 = arith.constant 0 : index
    %c0_116 = arith.constant 0 : index
    %c0_117 = arith.constant 0 : index
    %193 = vector.load %arg11[%c0_115, %c0_116, %c0_117] : memref<4x8x32xf32, #tpu.memory_space<vmem>>, vector<4x8x32xf32>
    %c0_118 = arith.constant 0 : index
    %c0_119 = arith.constant 0 : index
    %194 = vector.load %arg15[%c0_118, %c0_119] : memref<4x8xf32, #tpu.memory_space<vmem>>, vector<4x8xf32>
    %195 = vector.shape_cast %188 : vector<4x32xf32> to vector<4x1x32xf32>
    %196 = vector.broadcast %195 : vector<4x1x32xf32> to vector<4x8x32xf32>
    %197 = arith.addf %193, %196 : vector<4x8x32xf32>
    %198 = math.tanh %197 : vector<4x8x32xf32>
    %199 = vector.shape_cast %190 : vector<32xf32> to vector<1x1x32xf32>
    %200 = vector.broadcast %199 : vector<1x1x32xf32> to vector<4x8x32xf32>
    %201 = arith.mulf %198, %200 : vector<4x8x32xf32>
    %cst_120 = arith.constant dense<0.000000e+00> : vector<4x8xf32>
    %202 = vector.multi_reduction <add>, %201, %cst_120 [2] : vector<4x8x32xf32> to vector<4x8xf32>
    %203 = vector.shape_cast %192 : vector<1xf32> to vector<1x1xf32>
    %204 = vector.broadcast %203 : vector<1x1xf32> to vector<4x8xf32>
    %205 = arith.addf %202, %204 : vector<4x8xf32>
    %cst_121 = arith.constant dense<0xFF800000> : vector<4xf32>
    %206 = vector.multi_reduction <maximumf>, %205, %cst_121 [1] : vector<4x8xf32> to vector<4xf32>
    %207 = vector.shape_cast %206 : vector<4xf32> to vector<4x1xf32>
    %208 = vector.broadcast %207 : vector<4x1xf32> to vector<4x8xf32>
    %209 = arith.subf %205, %208 : vector<4x8xf32>
    %210 = math.exp %209 : vector<4x8xf32>
    %cst_122 = arith.constant dense<0.000000e+00> : vector<4xf32>
    %211 = vector.multi_reduction <add>, %210, %cst_122 [1] : vector<4x8xf32> to vector<4xf32>
    %212 = vector.shape_cast %211 : vector<4xf32> to vector<4x1xf32>
    %213 = arith.mulf %210, %194 : vector<4x8xf32>
    %cst_123 = arith.constant dense<0.000000e+00> : vector<4xf32>
    %214 = vector.multi_reduction <add>, %213, %cst_123 [1] : vector<4x8xf32> to vector<4xf32>
    %215 = vector.shape_cast %214 : vector<4xf32> to vector<4x1xf32>
    %cst_124 = arith.constant 1.000000e-10 : f32
    %216 = vector.broadcast %cst_124 : f32 to vector<4x1xf32>
    %217 = arith.mulf %216, %212 : vector<4x1xf32>
    %218 = arith.addf %215, %217 : vector<4x1xf32>
    %219 = tpu.reciprocal %218 {approx = true} : vector<4x1xf32> -> vector<4x1xf32>
    %220 = vector.broadcast %219 : vector<4x1xf32> to vector<4x8xf32>
    %221 = arith.mulf %213, %220 : vector<4x8xf32>
    %222 = vector.shape_cast %221 : vector<4x8xf32> to vector<4x1x8xf32>
    %c0_125 = arith.constant 0 : index
    %c0_126 = arith.constant 0 : index
    %c0_127 = arith.constant 0 : index
    %223 = vector.load %arg7[%c0_125, %c0_126, %c0_127] : memref<4x8x32xf32, #tpu.memory_space<vmem>>, vector<4x8x32xf32>
    "tpu.trace_start"() <{level = 10 : i32, message = "bma,bah->bmh"}> : () -> ()
    %cst_128 = arith.constant dense<0.000000e+00> : vector<4x1x32xf32>
    %224 = tpu.matmul %222, %223, %cst_128 {dimension_numbers = #tpu.dot_dimension_numbers<[2], [1], [1], [2], [0, 0, 0, 1, 1, 2], [0], [0]>} : vector<4x1x8xf32>, vector<4x8x32xf32>, vector<4x1x32xf32> -> vector<4x1x32xf32>
    "tpu.trace_stop"() : () -> ()
    %225 = vector.shape_cast %224 : vector<4x1x32xf32> to vector<4x32xf32>
    %226 = arith.mulf %134, %109 : vector<4x32xf32>
    %227 = arith.mulf %172, %187 : vector<4x32xf32>
    %228 = arith.addf %226, %227 : vector<4x32xf32>
    %229 = arith.addf %228, %225 : vector<4x32xf32>
    %230 = vector.extract_strided_slice %56 {offsets = [0, 96], sizes = [4, 32], strides = [1, 1]} : vector<4x128xf32> to vector<4x32xf32>
    %c3 = arith.constant 3 : index
    %c0_129 = arith.constant 0 : index
    %231 = vector.load %arg28[%c3, %c0_129] : memref<4x32xf32, #tpu.memory_space<vmem>>, vector<1x32xf32>
    %232 = vector.shape_cast %231 : vector<1x32xf32> to vector<32xf32>
    %c3_130 = arith.constant 3 : index
    %c0_131 = arith.constant 0 : index
    %233 = vector.load %arg29[%c3_130, %c0_131] : memref<4x1xf32, #tpu.memory_space<vmem>>, vector<1x1xf32>
    %234 = vector.shape_cast %233 : vector<1x1xf32> to vector<1xf32>
    %c0_132 = arith.constant 0 : index
    %c0_133 = arith.constant 0 : index
    %c0_134 = arith.constant 0 : index
    %235 = vector.load %arg12[%c0_132, %c0_133, %c0_134] : memref<4x8x32xf32, #tpu.memory_space<vmem>>, vector<4x8x32xf32>
    %c0_135 = arith.constant 0 : index
    %c0_136 = arith.constant 0 : index
    %236 = vector.load %arg15[%c0_135, %c0_136] : memref<4x8xf32, #tpu.memory_space<vmem>>, vector<4x8xf32>
    %237 = vector.shape_cast %230 : vector<4x32xf32> to vector<4x1x32xf32>
    %238 = vector.broadcast %237 : vector<4x1x32xf32> to vector<4x8x32xf32>
    %239 = arith.addf %235, %238 : vector<4x8x32xf32>
    %240 = math.tanh %239 : vector<4x8x32xf32>
    %241 = vector.shape_cast %232 : vector<32xf32> to vector<1x1x32xf32>
    %242 = vector.broadcast %241 : vector<1x1x32xf32> to vector<4x8x32xf32>
    %243 = arith.mulf %240, %242 : vector<4x8x32xf32>
    %cst_137 = arith.constant dense<0.000000e+00> : vector<4x8xf32>
    %244 = vector.multi_reduction <add>, %243, %cst_137 [2] : vector<4x8x32xf32> to vector<4x8xf32>
    %245 = vector.shape_cast %234 : vector<1xf32> to vector<1x1xf32>
    %246 = vector.broadcast %245 : vector<1x1xf32> to vector<4x8xf32>
    %247 = arith.addf %244, %246 : vector<4x8xf32>
    %cst_138 = arith.constant dense<0xFF800000> : vector<4xf32>
    %248 = vector.multi_reduction <maximumf>, %247, %cst_138 [1] : vector<4x8xf32> to vector<4xf32>
    %249 = vector.shape_cast %248 : vector<4xf32> to vector<4x1xf32>
    %250 = vector.broadcast %249 : vector<4x1xf32> to vector<4x8xf32>
    %251 = arith.subf %247, %250 : vector<4x8xf32>
    %252 = math.exp %251 : vector<4x8xf32>
    %cst_139 = arith.constant dense<0.000000e+00> : vector<4xf32>
    %253 = vector.multi_reduction <add>, %252, %cst_139 [1] : vector<4x8xf32> to vector<4xf32>
    %254 = vector.shape_cast %253 : vector<4xf32> to vector<4x1xf32>
    %255 = arith.mulf %252, %236 : vector<4x8xf32>
    %cst_140 = arith.constant dense<0.000000e+00> : vector<4xf32>
    %256 = vector.multi_reduction <add>, %255, %cst_140 [1] : vector<4x8xf32> to vector<4xf32>
    %257 = vector.shape_cast %256 : vector<4xf32> to vector<4x1xf32>
    %cst_141 = arith.constant 1.000000e-10 : f32
    %258 = vector.broadcast %cst_141 : f32 to vector<4x1xf32>
    %259 = arith.mulf %258, %254 : vector<4x1xf32>
    %260 = arith.addf %257, %259 : vector<4x1xf32>
    %261 = tpu.reciprocal %260 {approx = true} : vector<4x1xf32> -> vector<4x1xf32>
    %262 = vector.broadcast %261 : vector<4x1xf32> to vector<4x8xf32>
    %263 = arith.mulf %255, %262 : vector<4x8xf32>
    %264 = vector.shape_cast %263 : vector<4x8xf32> to vector<4x1x8xf32>
    %c0_142 = arith.constant 0 : index
    %c0_143 = arith.constant 0 : index
    %c0_144 = arith.constant 0 : index
    %265 = vector.load %arg8[%c0_142, %c0_143, %c0_144] : memref<4x8x32xf32, #tpu.memory_space<vmem>>, vector<4x8x32xf32>
    "tpu.trace_start"() <{level = 10 : i32, message = "bma,bah->bmh"}> : () -> ()
    %cst_145 = arith.constant dense<0.000000e+00> : vector<4x1x32xf32>
    %266 = tpu.matmul %264, %265, %cst_145 {dimension_numbers = #tpu.dot_dimension_numbers<[2], [1], [1], [2], [0, 0, 0, 1, 1, 2], [0], [0]>} : vector<4x1x8xf32>, vector<4x8x32xf32>, vector<4x1x32xf32> -> vector<4x1x32xf32>
    "tpu.trace_stop"() : () -> ()
    %267 = vector.shape_cast %266 : vector<4x1x32xf32> to vector<4x32xf32>
    %c0_146 = arith.constant 0 : index
    %c0_147 = arith.constant 0 : index
    %268 = vector.load %arg24[%c0_146, %c0_147] : memref<32x128xf32, #tpu.memory_space<vmem>>, vector<32x128xf32>
    %cst_148 = arith.constant dense<0.000000e+00> : vector<4x128xf32>
    %269 = tpu.matmul %7, %268, %cst_148 {dimension_numbers = #tpu.dot_dimension_numbers<[1], [0], [0], [1], [0, 0, 1, 1], [], []>} : vector<4x32xf32>, vector<32x128xf32>, vector<4x128xf32> -> vector<4x128xf32>
    %c0_149 = arith.constant 0 : index
    %c0_150 = arith.constant 0 : index
    %270 = vector.load %arg25[%c0_149, %c0_150] : memref<1x128xf32, #tpu.memory_space<vmem>>, vector<1x128xf32>
    %271 = vector.broadcast %270 : vector<1x128xf32> to vector<4x128xf32>
    %272 = arith.addf %269, %271 : vector<4x128xf32>
    %c0_151 = arith.constant 0 : index
    %c0_152 = arith.constant 0 : index
    %273 = vector.load %arg23[%c0_151, %c0_152] : memref<96x128xf32, #tpu.memory_space<vmem>>, vector<96x128xf32>
    %274 = vector.extract_strided_slice %273 {offsets = [0, 0], sizes = [32, 128], strides = [1, 1]} : vector<96x128xf32> to vector<32x128xf32>
    %cst_153 = arith.constant dense<0.000000e+00> : vector<4x128xf32>
    %275 = tpu.matmul %267, %274, %cst_153 {dimension_numbers = #tpu.dot_dimension_numbers<[1], [0], [0], [1], [0, 0, 1, 1], [], []>} : vector<4x32xf32>, vector<32x128xf32>, vector<4x128xf32> -> vector<4x128xf32>
    %276 = arith.addf %272, %275 : vector<4x128xf32>
    %277 = vector.extract_strided_slice %273 {offsets = [32, 0], sizes = [32, 128], strides = [1, 1]} : vector<96x128xf32> to vector<32x128xf32>
    %cst_154 = arith.constant dense<0.000000e+00> : vector<4x128xf32>
    %278 = tpu.matmul %229, %277, %cst_154 {dimension_numbers = #tpu.dot_dimension_numbers<[1], [0], [0], [1], [0, 0, 1, 1], [], []>} : vector<4x32xf32>, vector<32x128xf32>, vector<4x128xf32> -> vector<4x128xf32>
    %279 = arith.addf %276, %278 : vector<4x128xf32>
    %280 = vector.extract_strided_slice %273 {offsets = [64, 0], sizes = [32, 128], strides = [1, 1]} : vector<96x128xf32> to vector<32x128xf32>
    %cst_155 = arith.constant dense<0.000000e+00> : vector<4x128xf32>
    %281 = tpu.matmul %51, %280, %cst_155 {dimension_numbers = #tpu.dot_dimension_numbers<[1], [0], [0], [1], [0, 0, 1, 1], [], []>} : vector<4x32xf32>, vector<32x128xf32>, vector<4x128xf32> -> vector<4x128xf32>
    %282 = arith.addf %279, %281 : vector<4x128xf32>
    %283 = vector.extract_strided_slice %282 {offsets = [0, 0], sizes = [4, 32], strides = [1, 1]} : vector<4x128xf32> to vector<4x32xf32>
    %284 = arith.negf %283 : vector<4x32xf32>
    %285 = math.exp %284 : vector<4x32xf32>
    %cst_156 = arith.constant 1.000000e+00 : f32
    %286 = vector.broadcast %cst_156 : f32 to vector<4x32xf32>
    %287 = arith.addf %286, %285 : vector<4x32xf32>
    %288 = arith.divf %286, %287 : vector<4x32xf32>
    %289 = vector.extract_strided_slice %282 {offsets = [0, 32], sizes = [4, 32], strides = [1, 1]} : vector<4x128xf32> to vector<4x32xf32>
    %290 = arith.negf %289 : vector<4x32xf32>
    %291 = math.exp %290 : vector<4x32xf32>
    %cst_157 = arith.constant 1.000000e+00 : f32
    %292 = vector.broadcast %cst_157 : f32 to vector<4x32xf32>
    %293 = arith.addf %292, %291 : vector<4x32xf32>
    %294 = arith.divf %292, %293 : vector<4x32xf32>
    %295 = vector.extract_strided_slice %282 {offsets = [0, 64], sizes = [4, 32], strides = [1, 1]} : vector<4x128xf32> to vector<4x32xf32>
    %296 = math.tanh %295 : vector<4x32xf32>
    %297 = vector.extract_strided_slice %282 {offsets = [0, 96], sizes = [4, 32], strides = [1, 1]} : vector<4x128xf32> to vector<4x32xf32>
    %298 = arith.negf %297 : vector<4x32xf32>
    %299 = math.exp %298 : vector<4x32xf32>
    %cst_158 = arith.constant 1.000000e+00 : f32
    %300 = vector.broadcast %cst_158 : f32 to vector<4x32xf32>
    %301 = arith.addf %300, %299 : vector<4x32xf32>
    %302 = arith.divf %300, %301 : vector<4x32xf32>
    %303 = arith.mulf %294, %11 : vector<4x32xf32>
    %304 = arith.mulf %288, %296 : vector<4x32xf32>
    %305 = arith.addf %303, %304 : vector<4x32xf32>
    %306 = math.tanh %305 : vector<4x32xf32>
    %307 = arith.mulf %302, %306 : vector<4x32xf32>
    %c0_159 = arith.constant 0 : index
    %c0_160 = arith.constant 0 : index
    %308 = vector.load %arg38[%c0_159, %c0_160] : memref<4x32xf32, #tpu.memory_space<vmem>>, vector<4x32xf32>
    tpu.vector_store %arg38[%c0_159, %c0_160], %307 {strides = array<i32>} : memref<4x32xf32, #tpu.memory_space<vmem>>, vector<4x32xf32>,
    %c0_161 = arith.constant 0 : index
    %c0_162 = arith.constant 0 : index
    %c0_163 = arith.constant 0 : index
    %309 = vector.load %arg39[%c0_161, %c0_162, %c0_163] : memref<2x4x32xf32, #tpu.memory_space<vmem>>, vector<1x4x32xf32>
    %310 = vector.shape_cast %309 : vector<1x4x32xf32> to vector<4x32xf32>
    %311 = vector.shape_cast %51 : vector<4x32xf32> to vector<1x4x32xf32>
    tpu.vector_store %arg39[%c0_161, %c0_162, %c0_163], %311 {strides = array<i32>} : memref<2x4x32xf32, #tpu.memory_space<vmem>>, vector<1x4x32xf32>,
    %c1_164 = arith.constant 1 : index
    %c0_165 = arith.constant 0 : index
    %c0_166 = arith.constant 0 : index
    %312 = vector.load %arg39[%c1_164, %c0_165, %c0_166] : memref<2x4x32xf32, #tpu.memory_space<vmem>>, vector<1x4x32xf32>
    %313 = vector.shape_cast %312 : vector<1x4x32xf32> to vector<4x32xf32>
    %314 = vector.shape_cast %307 : vector<4x32xf32> to vector<1x4x32xf32>
    tpu.vector_store %arg39[%c1_164, %c0_165, %c0_166], %314 {strides = array<i32>} : memref<2x4x32xf32, #tpu.memory_space<vmem>>, vector<1x4x32xf32>,
    %c0_167 = arith.constant 0 : index
    %c0_168 = arith.constant 0 : index
    %c0_169 = arith.constant 0 : index
    %315 = vector.load %arg40[%c0_167, %c0_168, %c0_169] : memref<2x4x32xf32, #tpu.memory_space<vmem>>, vector<1x4x32xf32>
    %316 = vector.shape_cast %315 : vector<1x4x32xf32> to vector<4x32xf32>
    %317 = vector.shape_cast %49 : vector<4x32xf32> to vector<1x4x32xf32>
    tpu.vector_store %arg40[%c0_167, %c0_168, %c0_169], %317 {strides = array<i32>} : memref<2x4x32xf32, #tpu.memory_space<vmem>>, vector<1x4x32xf32>,
    %c1_170 = arith.constant 1 : index
    %c0_171 = arith.constant 0 : index
    %c0_172 = arith.constant 0 : index
    %318 = vector.load %arg40[%c1_170, %c0_171, %c0_172] : memref<2x4x32xf32, #tpu.memory_space<vmem>>, vector<1x4x32xf32>
    %319 = vector.shape_cast %318 : vector<1x4x32xf32> to vector<4x32xf32>
    %320 = vector.shape_cast %305 : vector<4x32xf32> to vector<1x4x32xf32>
    tpu.vector_store %arg40[%c1_170, %c0_171, %c0_172], %320 {strides = array<i32>} : memref<2x4x32xf32, #tpu.memory_space<vmem>>, vector<1x4x32xf32>,
    return
  }
  func.func @transform_0(%arg0: i32) -> (i32, i32) {
    %c0_i32 = arith.constant 0 : i32
    %c0_i32_0 = arith.constant 0 : i32
    return %arg0, %c0_i32 : i32, i32
  }
  func.func @transform_1(%arg0: i32) -> (i32, i32) {
    %c0_i32 = arith.constant 0 : i32
    %c0_i32_0 = arith.constant 0 : i32
    return %arg0, %c0_i32 : i32, i32
  }
  func.func @transform_2(%arg0: i32) -> (i32, i32) {
    %c0_i32 = arith.constant 0 : i32
    %c0_i32_0 = arith.constant 0 : i32
    return %arg0, %c0_i32 : i32, i32
  }
  func.func @transform_3(%arg0: i32) -> (i32, i32) {
    %c0_i32 = arith.constant 0 : i32
    %c0_i32_0 = arith.constant 0 : i32
    return %arg0, %c0_i32 : i32, i32
  }
  func.func @transform_4(%arg0: i32) -> (i32, i32, i32) {
    %c0_i32 = arith.constant 0 : i32
    %c0_i32_0 = arith.constant 0 : i32
    %c0_i32_1 = arith.constant 0 : i32
    return %arg0, %c0_i32, %c0_i32_0 : i32, i32, i32
  }
  func.func @transform_5(%arg0: i32) -> (i32, i32, i32) {
    %c0_i32 = arith.constant 0 : i32
    %c0_i32_0 = arith.constant 0 : i32
    %c0_i32_1 = arith.constant 0 : i32
    return %arg0, %c0_i32, %c0_i32_0 : i32, i32, i32
  }
  func.func @transform_6(%arg0: i32) -> (i32, i32, i32) {
    %c0_i32 = arith.constant 0 : i32
    %c0_i32_0 = arith.constant 0 : i32
    %c0_i32_1 = arith.constant 0 : i32
    return %arg0, %c0_i32, %c0_i32_0 : i32, i32, i32
  }
  func.func @transform_7(%arg0: i32) -> (i32, i32, i32) {
    %c0_i32 = arith.constant 0 : i32
    %c0_i32_0 = arith.constant 0 : i32
    %c0_i32_1 = arith.constant 0 : i32
    return %arg0, %c0_i32, %c0_i32_0 : i32, i32, i32
  }
  func.func @transform_8(%arg0: i32) -> (i32, i32, i32) {
    %c0_i32 = arith.constant 0 : i32
    %c0_i32_0 = arith.constant 0 : i32
    %c0_i32_1 = arith.constant 0 : i32
    return %arg0, %c0_i32, %c0_i32_0 : i32, i32, i32
  }
  func.func @transform_9(%arg0: i32) -> (i32, i32, i32) {
    %c0_i32 = arith.constant 0 : i32
    %c0_i32_0 = arith.constant 0 : i32
    %c0_i32_1 = arith.constant 0 : i32
    return %arg0, %c0_i32, %c0_i32_0 : i32, i32, i32
  }
  func.func @transform_10(%arg0: i32) -> (i32, i32, i32) {
    %c0_i32 = arith.constant 0 : i32
    %c0_i32_0 = arith.constant 0 : i32
    %c0_i32_1 = arith.constant 0 : i32
    return %arg0, %c0_i32, %c0_i32_0 : i32, i32, i32
  }
  func.func @transform_11(%arg0: i32) -> (i32, i32, i32) {
    %c0_i32 = arith.constant 0 : i32
    %c0_i32_0 = arith.constant 0 : i32
    %c0_i32_1 = arith.constant 0 : i32
    return %arg0, %c0_i32, %c0_i32_0 : i32, i32, i32
  }
  func.func @transform_12(%arg0: i32) -> (i32, i32) {
    %c0_i32 = arith.constant 0 : i32
    %c0_i32_0 = arith.constant 0 : i32
    return %arg0, %c0_i32 : i32, i32
  }
  func.func @transform_13(%arg0: i32) -> (i32, i32) {
    %c0_i32 = arith.constant 0 : i32
    %c0_i32_0 = arith.constant 0 : i32
    return %arg0, %c0_i32 : i32, i32
  }
  func.func @transform_14(%arg0: i32) -> (i32, i32) {
    %c0_i32 = arith.constant 0 : i32
    %c0_i32_0 = arith.constant 0 : i32
    return %arg0, %c0_i32 : i32, i32
  }
  func.func @transform_15(%arg0: i32) -> (i32, i32, i32) {
    %c0_i32 = arith.constant 0 : i32
    %c0_i32_0 = arith.constant 0 : i32
    %c0_i32_1 = arith.constant 0 : i32
    return %arg0, %c0_i32, %c0_i32_0 : i32, i32, i32
  }
  func.func @transform_16(%arg0: i32) -> (i32, i32) {
    %c0_i32 = arith.constant 0 : i32
    %c0_i32_0 = arith.constant 0 : i32
    return %arg0, %c0_i32 : i32, i32
  }
  func.func @transform_17(%arg0: i32) -> (i32, i32, i32) {
    %c0_i32 = arith.constant 0 : i32
    %c0_i32_0 = arith.constant 0 : i32
    %c0_i32_1 = arith.constant 0 : i32
    return %c0_i32, %arg0, %c0_i32_0 : i32, i32, i32
  }
  func.func @transform_18(%arg0: i32) -> (i32, i32, i32) {
    %c0_i32 = arith.constant 0 : i32
    %c0_i32_0 = arith.constant 0 : i32
    %c0_i32_1 = arith.constant 0 : i32
    return %c0_i32, %arg0, %c0_i32_0 : i32, i32, i32
  }
  func.func @transform_19(%arg0: i32) -> (i32, i32) {
    %c0_i32 = arith.constant 0 : i32
    %c0_i32_0 = arith.constant 0 : i32
    %c0_i32_1 = arith.constant 0 : i32
    return %c0_i32, %c0_i32_0 : i32, i32
  }
  func.func @transform_20(%arg0: i32) -> (i32, i32) {
    %c0_i32 = arith.constant 0 : i32
    %c0_i32_0 = arith.constant 0 : i32
    %c0_i32_1 = arith.constant 0 : i32
    return %c0_i32, %c0_i32_0 : i32, i32
  }
  func.func @transform_21(%arg0: i32) -> (i32, i32) {
    %c0_i32 = arith.constant 0 : i32
    %c0_i32_0 = arith.constant 0 : i32
    %c0_i32_1 = arith.constant 0 : i32
    return %c0_i32, %c0_i32_0 : i32, i32
  }
  func.func @transform_22(%arg0: i32) -> (i32, i32) {
    %c0_i32 = arith.constant 0 : i32
    %c0_i32_0 = arith.constant 0 : i32
    %c0_i32_1 = arith.constant 0 : i32
    return %c0_i32, %c0_i32_0 : i32, i32
  }
  func.func @transform_23(%arg0: i32) -> (i32, i32) {
    %c0_i32 = arith.constant 0 : i32
    %c0_i32_0 = arith.constant 0 : i32
    %c0_i32_1 = arith.constant 0 : i32
    return %c0_i32, %c0_i32_0 : i32, i32
  }
  func.func @transform_24(%arg0: i32) -> (i32, i32) {
    %c0_i32 = arith.constant 0 : i32
    %c0_i32_0 = arith.constant 0 : i32
    %c0_i32_1 = arith.constant 0 : i32
    return %c0_i32, %c0_i32_0 : i32, i32
  }
  func.func @transform_25(%arg0: i32) -> (i32, i32) {
    %c0_i32 = arith.constant 0 : i32
    %c0_i32_0 = arith.constant 0 : i32
    %c0_i32_1 = arith.constant 0 : i32
    return %c0_i32, %c0_i32_0 : i32, i32
  }
  func.func @transform_26(%arg0: i32) -> (i32, i32) {
    %c0_i32 = arith.constant 0 : i32
    %c0_i32_0 = arith.constant 0 : i32
    %c0_i32_1 = arith.constant 0 : i32
    return %c0_i32, %c0_i32_0 : i32, i32
  }
  func.func @transform_27(%arg0: i32) -> (i32, i32) {
    %c0_i32 = arith.constant 0 : i32
    %c0_i32_0 = arith.constant 0 : i32
    %c0_i32_1 = arith.constant 0 : i32
    return %c0_i32, %c0_i32_0 : i32, i32
  }
  func.func @transform_28(%arg0: i32) -> (i32, i32) {
    %c0_i32 = arith.constant 0 : i32
    %c0_i32_0 = arith.constant 0 : i32
    %c0_i32_1 = arith.constant 0 : i32
    return %c0_i32, %c0_i32_0 : i32, i32
  }
  func.func @transform_29(%arg0: i32) -> (i32, i32) {
    %c0_i32 = arith.constant 0 : i32
    %c0_i32_0 = arith.constant 0 : i32
    %c0_i32_1 = arith.constant 0 : i32
    return %c0_i32, %c0_i32_0 : i32, i32
  }
  func.func @transform_30(%arg0: i32) -> (i32, i32) {
    %c0_i32 = arith.constant 0 : i32
    %c0_i32_0 = arith.constant 0 : i32
    %c0_i32_1 = arith.constant 0 : i32
    return %c0_i32, %c0_i32_0 : i32, i32
  }
  func.func @transform_31(%arg0: i32) -> (i32, i32) {
    %c0_i32 = arith.constant 0 : i32
    %c0_i32_0 = arith.constant 0 : i32
    %c0_i32_1 = arith.constant 0 : i32
    return %c0_i32, %c0_i32_0 : i32, i32
  }
  func.func @transform_32(%arg0: i32) -> (i32, i32) {
    %c0_i32 = arith.constant 0 : i32
    %c0_i32_0 = arith.constant 0 : i32
    %c0_i32_1 = arith.constant 0 : i32
    return %c0_i32, %c0_i32_0 : i32, i32
  }
  func.func @transform_33(%arg0: i32) -> (i32, i32) {
    %c0_i32 = arith.constant 0 : i32
    %c0_i32_0 = arith.constant 0 : i32
    %c0_i32_1 = arith.constant 0 : i32
    return %c0_i32, %c0_i32_0 : i32, i32
  }
  func.func @transform_34(%arg0: i32) -> (i32, i32) {
    %c0_i32 = arith.constant 0 : i32
    %c0_i32_0 = arith.constant 0 : i32
    %c0_i32_1 = arith.constant 0 : i32
    return %c0_i32, %c0_i32_0 : i32, i32
  }
  func.func @transform_35(%arg0: i32) -> (i32, i32) {
    %c0_i32 = arith.constant 0 : i32
    %c0_i32_0 = arith.constant 0 : i32
    %c0_i32_1 = arith.constant 0 : i32
    return %c0_i32, %c0_i32_0 : i32, i32
  }
  func.func @transform_36(%arg0: i32) -> (i32, i32) {
    %c0_i32 = arith.constant 0 : i32
    %c0_i32_0 = arith.constant 0 : i32
    %c0_i32_1 = arith.constant 0 : i32
    return %c0_i32, %c0_i32_0 : i32, i32
  }
  func.func @transform_37(%arg0: i32) -> (i32, i32) {
    %c0_i32 = arith.constant 0 : i32
    %c0_i32_0 = arith.constant 0 : i32
    return %arg0, %c0_i32 : i32, i32
  }
  func.func @transform_38(%arg0: i32) -> (i32, i32, i32) {
    %c0_i32 = arith.constant 0 : i32
    %c0_i32_0 = arith.constant 0 : i32
    %c0_i32_1 = arith.constant 0 : i32
    return %c0_i32, %arg0, %c0_i32_0 : i32, i32, i32
  }
  func.func @transform_39(%arg0: i32) -> (i32, i32, i32) {
    %c0_i32 = arith.constant 0 : i32
    %c0_i32_0 = arith.constant 0 : i32
    %c0_i32_1 = arith.constant 0 : i32
    return %c0_i32, %arg0, %c0_i32_0 : i32, i32, i32
  }
}

</mosaic_0001>

<bundles_post_ra>
// kernel: topdown_core_hc.1
= control target key start
LH: loop header
LB: loop body
LE: loop exit
PB: predicated region body
PF: predicated region fallthrough
CT: control target
= control target key end

     0   :  { %s3215_s6 = smov 1   ;;  %s3216_s10 = smov 2   ;;  %s4255_s0 = inlined_call_operand.smem [shape: u32[40], index: -1, kind: input, shape index: {}] }
   0x1   :  { %s3287_s5 = sld [smem:[%s4255_s0]]   ;;  %s3217_s14 = smov 3  }
   0x2   :  { %s3292_s9 = sld [smem:[%s4255_s0 + %s3215_s6]]   ;;  %s3218_s18 = smov 4  }
   0x3   :  { %s3297_s13 = sld [smem:[%s4255_s0 + %s3216_s10]]   ;;  %s3219_s22 = smov 5  }
   0x4   :  { %s3302_s17 = sld [smem:[%s4255_s0 + %s3217_s14]]   ;;  %s3220_s26 = smov 6  }
   0x5   :  { %s3307_s21 = sld [smem:[%s4255_s0 + %s3218_s18]]   ;;  %s3221_s30 = smov 7  }
   0x6   :  { %s3312_s25 = sld [smem:[%s4255_s0 + %s3219_s22]]   ;;  %s3222_s4 = smov 8  }
   0x7   :  { %4266 = sst [smem:[#allocation40_spill]] %s3287_s5  ;;  %s3223_s10 = smov 9  }
   0x8   :  { %4267 = sst [smem:[#allocation41_spill]] %s3292_s9  ;;  %s3224_s15 = smov 10  }
   0x9   :  { %4268 = sst [smem:[#allocation42_spill]] %s3297_s13  ;;  %s3225_s20 = smov 11  }
   0xa   :  { %4269 = sst [smem:[#allocation43_spill]] %s3302_s17  ;;  %s3227_s1 = smov 13  }
   0xb   :  { %4270 = sst [smem:[#allocation44_spill]] %s3307_s21  ;;  %s3228_s7 = smov 14  }
   0xc   :  { %s3317_s29 = sld [smem:[%s4255_s0 + %s3220_s26]]   ;;  %s3226_s26 = smov 12  }
   0xd   :  { %s3322_s3 = sld [smem:[%s4255_s0 + %s3221_s30]]   ;;  %s3230_s22 = smov 16  }
   0xe   :  { %s3327_s8 = sld [smem:[%s4255_s0 + %s3222_s4]]   ;;  %s3231_s28 = smov 17  }
   0xf   :  { %s3332_s14 = sld [smem:[%s4255_s0 + %s3223_s10]]  }
  0x10   :  { %s3337_s19 = sld [smem:[%s4255_s0 + %s3224_s15]]   ;;  %s3229_s15 = smov 15  }
  0x11   :  { %s3342_s24 = sld [smem:[%s4255_s0 + %s3225_s20]]  }
  0x12   :  { %s3347_s30 = sld [smem:[%s4255_s0 + %s3226_s26]]  }
  0x13   :  { %s3352_s6 = sld [smem:[%s4255_s0 + %s3227_s1]]  }
  0x14   :  { %s3357_s12 = sld [smem:[%s4255_s0 + %s3228_s7]]   ;;  %s3232_s7 = smov 18  }
  0x15   :  { %s3362_s20 = sld [smem:[%s4255_s0 + %s3229_s15]]   ;;  %s3233_s15 = smov 19  }
  0x16   :  { %s3367_s27 = sld [smem:[%s4255_s0 + %s3230_s22]]   ;;  %s3234_s22 = smov 20  }
  0x17   :  { %s3372_s4 = sld [smem:[%s4255_s0 + %s3231_s28]]   ;;  %s3235_s28 = smov 21  }
  0x18   :  { %4271 = sst [smem:[#allocation45_spill]] %s3347_s30 }
  0x19   :  { %4272 = sst [smem:[#allocation46_spill]] %s3352_s6 }
  0x1a   :  { %s3377_s17 = sld [smem:[%s4255_s0 + %s3232_s7]]   ;;  %s3236_s7 = smov 22  }
  0x1b   :  { %4273 = sst [smem:[#allocation47_spill]] %s3362_s20 }
  0x1c   :  { %s3382_s20 = sld [smem:[%s4255_s0 + %s3233_s15]]   ;;  %s3237_s15 = smov 23  }
  0x1d   :  { %s3387_s13 = sld [smem:[%s4255_s0 + %s3234_s22]]   ;;  %s3238_s22 = smov 24  }
  0x1e   :  { %s3392_s21 = sld [smem:[%s4255_s0 + %s3235_s28]]   ;;  %s3239_s28 = smov 25  }
  0x1f   :  { %s3397_s6 = sld [smem:[%s4255_s0 + %s3236_s7]]   ;;  %s3240_s7 = smov 26  }
  0x20   :  { %s3402_s30 = sld [smem:[%s4255_s0 + %s3237_s15]]   ;;  %s3241_s15 = smov 27  }
  0x21   :  { %s3407_s5 = sld [smem:[%s4255_s0 + %s3238_s22]]   ;;  %s3242_s22 = smov 28  }
  0x22   :  { %4274 = sst [smem:[#allocation48_spill]] %s3382_s20 }
  0x23   :  { %s3422_s9 = sld [smem:[%s4255_s0 + %s3241_s15]]   ;;  %s3245_s15 = smov 31  }
  0x24   :  { %4275 = sst [smem:[#allocation49_spill]] %s3392_s21 }
  0x25   :  { %4276 = sst [smem:[#allocation50_spill]] %s3397_s6 }
  0x26   :  { %s3412_s21 = sld [smem:[%s4255_s0 + %s3239_s28]]   ;;  %s3243_s28 = smov 29  }
  0x27   :  { %4277 = sst [smem:[#allocation51_spill]] %s3407_s5 }
  0x28   :  { %s3417_s6 = sld [smem:[%s4255_s0 + %s3240_s7]]   ;;  %s3244_s7 = smov 30  }
  0x29   :  { %4279 = sst [smem:[#allocation53_spill]] %s3422_s9 }
  0x2a   :  { %s3427_s5 = sld [smem:[%s4255_s0 + %s3242_s22]]   ;;  %s3246_s22 = smov 32  }
  0x2b   :  { %s3432_s20 = sld [smem:[%s4255_s0 + %s3243_s28]]   ;;  %s3247_s28 = smov 33  }
  0x2c   :  { %s3442_s9 = sld [smem:[%s4255_s0 + %s3245_s15]]   ;;  %s3249_s15 = smov 35  }
  0x2e   :  { %4278 = sst [smem:[#allocation52_spill]] %s3417_s6 }
  0x2f   :  { %s3437_s6 = sld [smem:[%s4255_s0 + %s3244_s7]]   ;;  %s3248_s7 = smov 34  }
  0x30   :  { %4280 = sst [smem:[#allocation54_spill]] %s3427_s5 }
  0x31   :  { %4281 = sst [smem:[#allocation55_spill]] %s3432_s20 }
  0x32   :  { %4283 = sst [smem:[#allocation57_spill]] %s3442_s9 }
  0x33   :  { %s3447_s5 = sld [smem:[%s4255_s0 + %s3246_s22]]   ;;  %s3250_s22 = smov 36  }
  0x34   :  { %s3452_s20 = sld [smem:[%s4255_s0 + %s3247_s28]]   ;;  %s3251_s28 = smov 37  }
  0x35   :  { %4282 = sst [smem:[#allocation56_spill]] %s3437_s6 }
  0x36   :  { %s3457_s6 = sld [smem:[%s4255_s0 + %s3248_s7]]   ;;  %s3252_s7 = smov 38  }
  0x37   :  { %s3462_s9 = sld [smem:[%s4255_s0 + %s3249_s15]]   ;;  %s3253_s15 = smov 39  }
  0x39   :  { %4284 = sst [smem:[#allocation58_spill]] %s3447_s5 }
  0x3a   :  { %4285 = sst [smem:[#allocation59_spill]] %s3452_s20 }
  0x3b   :  { %s3467_s5 = sld [smem:[%s4255_s0 + %s3250_s22]]  }
  0x3c   :  { %4286 = sst [smem:[#allocation60_spill]] %s3457_s6 }
  0x3d   :  { %4287 = sst [smem:[#allocation61_spill]] %s3462_s9 }
  0x3e   :  { %s3472_s20 = sld [smem:[%s4255_s0 + %s3251_s28]]  }
  0x3f   :  { %s3477_s6 = sld [smem:[%s4255_s0 + %s3252_s7]]  }
  0x40   :  { %s3482_s9 = sld [smem:[%s4255_s0 + %s3253_s15]]  }
  0x41   :  { %85 = vsyncpa [#allocation3], 0 }
  0x42   :  { %86 = vsyncpa [#allocation6], 0 }
  0x43   :  { %87 = vsyncpa [#allocation9], 0 }
  0x44   :  { %88 = vsyncpa [#allocation12], 0 }
  0x45   :  { %89 = vsyncpa [#allocation15], 0 }
  0x46   :  { %90 = vsyncpa [#allocation18], 0 }
  0x47   :  { %91 = vsyncpa [#allocation21], 0 }
  0x48   :  { %92 = vsyncpa [#allocation24], 0 }
  0x49   :  { %93 = vsyncpa [#allocation4], 0 }
  0x4a   :  { %94 = vsyncpa [#allocation28], 0  ;;  %s122_s22 = sshll.u32 %s3317_s29, 4  ;;  %s3254_s23 = smov [#allocation5]   ;;  %s123_s22 = int_to_ptr.hbm [resolvable:$true] %s122_s22 }
  0x4b   :  { %s124_s26 = sshll.u32 %s3254_s23, 4  ;;  %s148_s0 = sshll.u32 %s3327_s8, 4  ;;  %s125_s26 = int_to_ptr.vmem [resolvable:$true] %s124_s26  ;;  %s149_s0 = int_to_ptr.hbm [resolvable:$true] %s148_s0 }
  0x4c   :  { %s2763_s28 = sshra.s32 %s123_s22, 4  ;;  %s2767_s2 = scalar_lea.hbm %s3317_s29, 32  ;;  %s2764_s28 = int_to_ptr.hbm [resolvable:$true] %s2763_s28 }
  0x4d   :  { %s2765_s1 = scalar_lea.hbm %s2764_s28, 32  ;;  %p2768_p1 = scmp.lt.s32.totalorder %s2764_s28, %s3317_s29 }
  0x4e   :  { %p2766_p0 = scmp.ne.s32.totalorder %s2764_s28, %s2765_s1  ;;  %p2769_p2 = scmp.lt.s32.totalorder %s2767_s2, %s2765_s1 }
  0x50   :  { %p2770_p3 = por %p2769_p2, %p2768_p1 }
  0x52   :  { %p2771_p4 = pnand %p2770_p3, %p2766_p0 }
  0x54   :  { %2774 = shalt.err (!%p2771_p4)
}
  0x55   :  { %s3255_s7 = smov 128   ;;  %s3256_s10 = smov 8  }
  0x56   :  { %130 = dma.hbm_to_vmem [thread:$0]  %s123_s22, 512, %s125_s26, [#allocation6], %s3255_s7, %s3255_s7, %s3256_s10  }
  0x57   :  { %s3257_s11 = smov [#allocation8]   ;;  %s174_s16 = sshll.u32 %s3337_s19, 4  ;;  %s3492_s16 = int_to_ptr.hbm [resolvable:$true] %s174_s16 }
  0x58   :  { %s150_s15 = sshll.u32 %s3257_s11, 4  ;;  %s2787_s29 = sshra.s32 %s149_s0, 4  ;;  %s151_s15 = int_to_ptr.vmem [resolvable:$true] %s150_s15  ;;  %s2788_s29 = int_to_ptr.hbm [resolvable:$true] %s2787_s29 }
  0x59   :  { %s2789_s18 = scalar_lea.hbm %s2788_s29, 32  ;;  %s2791_s23 = scalar_lea.hbm %s3327_s8, 32 }
  0x5a   :  { %p2790_p5 = scmp.ne.s32.totalorder %s2788_s29, %s2789_s18  ;;  %p2792_p6 = scmp.lt.s32.totalorder %s2788_s29, %s3327_s8 }
  0x5b   :  { %p2793_p7 = scmp.lt.s32.totalorder %s2791_s23, %s2789_s18 }
  0x5d   :  { %p2794_p8 = por %p2793_p7, %p2792_p6 }
  0x5f   :  { %p2795_p9 = pnand %p2794_p8, %p2790_p5 }
  0x61   :  { %2798 = shalt.err (!%p2795_p9)
}
  0x62   :  { %156 = dma.hbm_to_vmem [thread:$0]  %s149_s0, 512, %s151_s15, [#allocation9], %s3255_s7, %s3255_s7, %s3256_s10  }
  0x63   :  { %s205_s22 = sshll.u32 %s3357_s12, 4  ;;  %s3258_s26 = smov [#allocation11]   ;;  %s206_s22 = int_to_ptr.hbm [resolvable:$true] %s205_s22 }
  0x64   :  { %s176_s28 = sshll.u32 %s3258_s26, 4  ;;  %s2811_s1 = sshra.s32 %s3492_s16, 4  ;;  %s177_s28 = int_to_ptr.vmem [resolvable:$true] %s176_s28  ;;  %s2812_s1 = int_to_ptr.hbm [resolvable:$true] %s2811_s1 }
  0x65   :  { %s2813_s8 = scalar_lea.hbm %s2812_s1, 32  ;;  %s2815_s2 = scalar_lea.hbm %s3337_s19, 32 }
  0x66   :  { %p2814_p10 = scmp.ne.s32.totalorder %s2812_s1, %s2813_s8  ;;  %p2816_p11 = scmp.lt.s32.totalorder %s2812_s1, %s3337_s19 }
  0x67   :  { %p2817_p12 = scmp.lt.s32.totalorder %s2815_s2, %s2813_s8 }
  0x69   :  { %p2818_p13 = por %p2817_p12, %p2816_p11 }
  0x6b   :  { %p2819_p0 = pnand %p2818_p13, %p2814_p10 }
  0x6d   :  { %2822 = shalt.err (!%p2819_p0)
}
  0x6e   :  { %182 = dma.hbm_to_vmem [thread:$0]  %s3492_s16, 512, %s177_s28, [#allocation12], %s3255_s7, %s3255_s7, %s3256_s10  }
  0x6f   :  { %s3259_s0 = smov [#allocation14]   ;;  %s228_s15 = sshll.u32 %s3372_s4, 4  ;;  %s3508_s15 = int_to_ptr.hbm [resolvable:$true] %s228_s15 }
  0x70   :  { %s207_s11 = sshll.u32 %s3259_s0, 4  ;;  %s2835_s29 = sshra.s32 %s206_s22, 4  ;;  %s208_s11 = int_to_ptr.vmem [resolvable:$true] %s207_s11  ;;  %s2836_s29 = int_to_ptr.hbm [resolvable:$true] %s2835_s29 }
  0x71   :  { %s2837_s19 = scalar_lea.hbm %s2836_s29, 4  ;;  %s2839_s18 = scalar_lea.hbm %s3357_s12, 4 }
  0x72   :  { %p2838_p1 = scmp.ne.s32.totalorder %s2836_s29, %s2837_s19  ;;  %p2840_p2 = scmp.lt.s32.totalorder %s2836_s29, %s3357_s12 }
  0x73   :  { %p2841_p3 = scmp.lt.s32.totalorder %s2839_s18, %s2837_s19 }
  0x75   :  { %p2842_p4 = por %p2841_p3, %p2840_p2 }
  0x77   :  { %p2843_p5 = pnand %p2842_p4, %p2838_p1 }
  0x79   :  { %2846 = shalt.err (!%p2843_p5)
}
  0x7a   :  { %210 = dma.hbm_to_vmem [thread:$0]  %s206_s22, 64, %s208_s11, [#allocation15]  }
  0x7b   :  { %s3260_s16 = smov [#allocation17]   ;;  %s256_s26 = sshll.u32 %s3387_s13, 4  ;;  %s257_s26 = int_to_ptr.hbm [resolvable:$true] %s256_s26 }
  0x7c   :  { %s230_s23 = sshll.u32 %s3260_s16, 4  ;;  %s2859_s28 = sshra.s32 %s3508_s15, 4  ;;  %s231_s23 = int_to_ptr.vmem [resolvable:$true] %s230_s23  ;;  %s2860_s28 = int_to_ptr.hbm [resolvable:$true] %s2859_s28 }
  0x7d   :  { %s2861_s1 = scalar_lea.hbm %s2860_s28, 8  ;;  %s2863_s8 = scalar_lea.hbm %s3372_s4, 8 }
  0x7e   :  { %p2862_p6 = scmp.ne.s32.totalorder %s2860_s28, %s2861_s1  ;;  %p2864_p7 = scmp.lt.s32.totalorder %s2860_s28, %s3372_s4 }
  0x7f   :  { %p2865_p8 = scmp.lt.s32.totalorder %s2863_s8, %s2861_s1 }
  0x81   :  { %p2866_p9 = por %p2865_p8, %p2864_p7 }
  0x83   :  { %p2867_p10 = pnand %p2866_p9, %p2862_p6 }
  0x85   :  { %2870 = shalt.err (!%p2867_p10)
}
  0x86   :  { %s3261_s12 = smov 64   ;;  %s3262_s22 = smov 4  }
  0x87   :  { %236 = dma.hbm_to_vmem [thread:$0]  %s3508_s15, 128, %s231_s23, [#allocation18], %s3261_s12, %s3261_s12, %s3262_s22  }
  0x88   :  { %s3263_s2 = smov [#allocation20]   ;;  %s288_s11 = sshll.u32 %s3412_s21, 4  ;;  %s3521_s11 = int_to_ptr.hbm [resolvable:$true] %s288_s11 }
  0x89   :  { %s258_s0 = sshll.u32 %s3263_s2, 4  ;;  %s2883_s4 = sshra.s32 %s257_s26, 4  ;;  %s259_s0 = int_to_ptr.vmem [resolvable:$true] %s258_s0  ;;  %s2884_s4 = int_to_ptr.hbm [resolvable:$true] %s2883_s4 }
  0x8a   :  { %s2885_s29 = scalar_lea.hbm %s2884_s4, 32  ;;  %s2887_s19 = scalar_lea.hbm %s3387_s13, 32 }
  0x8b   :  { %p2886_p11 = scmp.ne.s32.totalorder %s2884_s4, %s2885_s29  ;;  %p2888_p12 = scmp.lt.s32.totalorder %s2884_s4, %s3387_s13 }
  0x8c   :  { %p2889_p13 = scmp.lt.s32.totalorder %s2887_s19, %s2885_s29 }
  0x8e   :  { %p2890_p0 = por %p2889_p13, %p2888_p12 }
  0x90   :  { %p2891_p1 = pnand %p2890_p0, %p2886_p11 }
  0x92   :  { %2894 = shalt.err (!%p2891_p1)
}
  0x93   :  { %264 = dma.hbm_to_vmem [thread:$0]  %s257_s26, 512, %s259_s0, [#allocation21], %s3255_s7, %s3255_s7, %s3256_s10  }
  0x94   :  { %s109_s15 = sshll.u32 %s3312_s25, 4  ;;  %s3264_s18 = smov [#allocation23]   ;;  %s3529_s15 = int_to_ptr.hbm [resolvable:$true] %s109_s15 }
  0x95   :  { %s290_s16 = sshll.u32 %s3264_s18, 4  ;;  %s2907_s23 = sshra.s32 %s3521_s11, 4  ;;  %s291_s16 = int_to_ptr.vmem [resolvable:$true] %s290_s16  ;;  %s2908_s23 = int_to_ptr.hbm [resolvable:$true] %s2907_s23 }
  0x96   :  { %s2909_s13 = scalar_lea.hbm %s2908_s23, 32  ;;  %s2911_s28 = scalar_lea.hbm %s3412_s21, 32 }
  0x97   :  { %p2910_p2 = scmp.ne.s32.totalorder %s2908_s23, %s2909_s13  ;;  %p2912_p3 = scmp.lt.s32.totalorder %s2908_s23, %s3412_s21 }
  0x98   :  { %p2913_p4 = scmp.lt.s32.totalorder %s2911_s28, %s2909_s13 }
  0x9a   :  { %p2914_p5 = por %p2913_p4, %p2912_p3 }
  0x9c   :  { %p2915_p6 = pnand %p2914_p5, %p2910_p2 }
  0x9e   :  { %2918 = shalt.err (!%p2915_p6)
}
  0x9f   :  { %296 = dma.hbm_to_vmem [thread:$0]  %s3521_s11, 512, %s291_s16, [#allocation24], %s3255_s7, %s3255_s7, %s3256_s10  }
  0xa0   :  { %s3265_s26 = smov [#allocation2]   ;;  %s135_s8 = sshll.u32 %s3322_s3, 4  ;;  %s3539_s8 = int_to_ptr.hbm [resolvable:$true] %s135_s8 }
  0xa1   :  { %s111_s1 = sshll.u32 %s3265_s26, 4  ;;  %s2931_s21 = sshra.s32 %s3529_s15, 4  ;;  %s112_s1 = int_to_ptr.vmem [resolvable:$true] %s111_s1  ;;  %s2932_s21 = int_to_ptr.hbm [resolvable:$true] %s2931_s21 }
  0xa2   :  { %s2933_s2 = scalar_lea.hbm %s2932_s21, 32  ;;  %s2935_s0 = scalar_lea.hbm %s3312_s25, 32 }
  0xa3   :  { %p2934_p7 = scmp.ne.s32.totalorder %s2932_s21, %s2933_s2  ;;  %p2936_p8 = scmp.lt.s32.totalorder %s2932_s21, %s3312_s25 }
  0xa4   :  { %p2937_p9 = scmp.lt.s32.totalorder %s2935_s0, %s2933_s2 }
  0xa6   :  { %p2938_p10 = por %p2937_p9, %p2936_p8 }
  0xa8   :  { %p2939_p11 = pnand %p2938_p10, %p2934_p7 }
  0xaa   :  { %2942 = shalt.err (!%p2939_p11)
}
  0xab   :  { %117 = dma.hbm_to_vmem [thread:$0]  %s3529_s15, 512, %s112_s1, [#allocation3], %s3255_s7, %s3255_s7, %s3256_s10  }
  0xac   :  { %s161_s11 = sshll.u32 %s3332_s14, 4  ;;  %s3266_s4 = smov [#allocation7]   ;;  %s3549_s11 = int_to_ptr.hbm [resolvable:$true] %s161_s11 }
  0xad   :  { %s137_s29 = sshll.u32 %s3266_s4, 4  ;;  %s2955_s25 = sshra.s32 %s3539_s8, 4  ;;  %s138_s29 = int_to_ptr.vmem [resolvable:$true] %s137_s29  ;;  %s2956_s25 = int_to_ptr.hbm [resolvable:$true] %s2955_s25 }
  0xae   :  { %s2957_s19 = scalar_lea.hbm %s2956_s25, 32  ;;  %s2959_s18 = scalar_lea.hbm %s3322_s3, 32 }
  0xaf   :  { %p2958_p12 = scmp.ne.s32.totalorder %s2956_s25, %s2957_s19  ;;  %p2960_p13 = scmp.lt.s32.totalorder %s2956_s25, %s3322_s3 }
  0xb0   :  { %p2961_p0 = scmp.lt.s32.totalorder %s2959_s18, %s2957_s19 }
  0xb2   :  { %p2962_p1 = por %p2961_p0, %p2960_p13 }
  0xb4   :  { %p2963_p2 = pnand %p2962_p1, %p2958_p12 }
  0xb6   :  { %2966 = shalt.err (!%p2963_p2)
}
  0xb7   :  { %143 = dma.hbm_to_vmem [thread:$0]  %s3539_s8, 512, %s138_s29, [#allocation6], %s3255_s7, %s3255_s7, %s3256_s10  }
  0xb8   :  { %s3267_s15 = smov [#allocation10]   ;;  %s187_s23 = sshll.u32 %s3342_s24, 4  ;;  %s3559_s23 = int_to_ptr.hbm [resolvable:$true] %s187_s23 }
  0xb9   :  { %s163_s16 = sshll.u32 %s3267_s15, 4  ;;  %s2979_s3 = sshra.s32 %s3549_s11, 4  ;;  %s164_s16 = int_to_ptr.vmem [resolvable:$true] %s163_s16  ;;  %s2980_s3 = int_to_ptr.hbm [resolvable:$true] %s2979_s3 }
  0xba   :  { %s2981_s13 = scalar_lea.hbm %s2980_s3, 32  ;;  %s2983_s28 = scalar_lea.hbm %s3332_s14, 32 }
  0xbb   :  { %p2982_p3 = scmp.ne.s32.totalorder %s2980_s3, %s2981_s13  ;;  %p2984_p4 = scmp.lt.s32.totalorder %s2980_s3, %s3332_s14 }
  0xbc   :  { %p2985_p5 = scmp.lt.s32.totalorder %s2983_s28, %s2981_s13 }
  0xbe   :  { %p2986_p6 = por %p2985_p5, %p2984_p4 }
  0xc0   :  { %p2987_p7 = pnand %p2986_p6, %p2982_p3 }
  0xc2   :  { %2990 = shalt.err (!%p2987_p7)
}
  0xc3   :  { %169 = dma.hbm_to_vmem [thread:$0]  %s3549_s11, 512, %s164_s16, [#allocation9], %s3255_s7, %s3255_s7, %s3256_s10  }
  0xc4   :  { %s218_s26 = sshll.u32 %s3367_s27, 4  ;;  %s3268_s1 = smov [#allocation13]   ;;  %s219_s26 = int_to_ptr.hbm [resolvable:$true] %s218_s26 }
  0xc5   :  { %s189_s8 = sshll.u32 %s3268_s1, 4  ;;  %s3003_s21 = sshra.s32 %s3559_s23, 4  ;;  %s190_s8 = int_to_ptr.vmem [resolvable:$true] %s189_s8  ;;  %s3004_s21 = int_to_ptr.hbm [resolvable:$true] %s3003_s21 }
  0xc6   :  { %s3005_s14 = scalar_lea.hbm %s3004_s21, 32  ;;  %s3007_s2 = scalar_lea.hbm %s3342_s24, 32 }
  0xc7   :  { %p3006_p8 = scmp.ne.s32.totalorder %s3004_s21, %s3005_s14  ;;  %p3008_p9 = scmp.lt.s32.totalorder %s3004_s21, %s3342_s24 }
  0xc8   :  { %p3009_p10 = scmp.lt.s32.totalorder %s3007_s2, %s3005_s14 }
  0xca   :  { %p3010_p11 = por %p3009_p10, %p3008_p9 }
  0xcc   :  { %p3011_p12 = pnand %p3010_p11, %p3006_p8 }
  0xce   :  { %3014 = shalt.err (!%p3011_p12)
}
  0xcf   :  { %195 = dma.hbm_to_vmem [thread:$0]  %s3559_s23, 512, %s190_s8, [#allocation12], %s3255_s7, %s3255_s7, %s3256_s10  }
  0xd0   :  { %s3269_s0 = smov [#allocation16]   ;;  %s241_s4 = sshll.u32 %s3377_s17, 4  ;;  %s3577_s4 = int_to_ptr.hbm [resolvable:$true] %s241_s4 }
  0xd1   :  { %s220_s11 = sshll.u32 %s3269_s0, 4  ;;  %s3027_s29 = sshra.s32 %s219_s26, 4  ;;  %s221_s11 = int_to_ptr.vmem [resolvable:$true] %s220_s11  ;;  %s3028_s29 = int_to_ptr.hbm [resolvable:$true] %s3027_s29 }
  0xd2   :  { %s3029_s24 = scalar_lea.hbm %s3028_s29, 4  ;;  %s3031_s25 = scalar_lea.hbm %s3367_s27, 4 }
  0xd3   :  { %p3030_p13 = scmp.ne.s32.totalorder %s3028_s29, %s3029_s24  ;;  %p3032_p0 = scmp.lt.s32.totalorder %s3028_s29, %s3367_s27 }
  0xd4   :  { %p3033_p1 = scmp.lt.s32.totalorder %s3031_s25, %s3029_s24 }
  0xd6   :  { %p3034_p2 = por %p3033_p1, %p3032_p0 }
  0xd8   :  { %p3035_p3 = pnand %p3034_p2, %p3030_p13 }
  0xda   :  { %3038 = shalt.err (!%p3035_p3)
}
  0xdb   :  { %223 = dma.hbm_to_vmem [thread:$0]  %s219_s26, 64, %s221_s11, [#allocation15]  }
  0xdc   :  { %s273_s19 = sshll.u32 %s3402_s30, 4  ;;  %s3270_s18 = smov [#allocation19]   ;;  %s3582_s19 = int_to_ptr.hbm [resolvable:$true] %s273_s19 }
  0xdd   :  { %s243_s15 = sshll.u32 %s3270_s18, 4  ;;  %s3051_s16 = sshra.s32 %s3577_s4, 4  ;;  %s244_s15 = int_to_ptr.vmem [resolvable:$true] %s243_s15  ;;  %s3052_s16 = int_to_ptr.hbm [resolvable:$true] %s3051_s16 }
  0xde   :  { %s3053_s23 = scalar_lea.hbm %s3052_s16, 8  ;;  %s3055_s27 = scalar_lea.hbm %s3377_s17, 8 }
  0xdf   :  { %p3054_p4 = scmp.ne.s32.totalorder %s3052_s16, %s3053_s23  ;;  %p3056_p5 = scmp.lt.s32.totalorder %s3052_s16, %s3377_s17 }
  0xe0   :  { %p3057_p6 = scmp.lt.s32.totalorder %s3055_s27, %s3053_s23 }
  0xe2   :  { %p3058_p7 = por %p3057_p6, %p3056_p5 }
  0xe4   :  { %p3059_p8 = pnand %p3058_p7, %p3054_p4 }
  0xe6   :  { %3062 = shalt.err (!%p3059_p8)
}
  0xe7   :  { %s4288_s3 = sld [smem:[#allocation61_spill]]  ;;  %s3271_s13 = smov [#allocation22]  }
  0xe8   :  { %249 = dma.hbm_to_vmem [thread:$0]  %s3577_s4, 128, %s244_s15, [#allocation18], %s3261_s12, %s3261_s12, %s3262_s22  }
  0xe9   :  { %s275_s28 = sshll.u32 %s3271_s13, 4  ;;  %s3075_s1 = sshra.s32 %s3582_s19, 4  ;;  %s276_s28 = int_to_ptr.vmem [resolvable:$true] %s275_s28  ;;  %s3076_s1 = int_to_ptr.hbm [resolvable:$true] %s3075_s1 }
  0xea   :  { %s3077_s17 = scalar_lea.hbm %s3076_s1, 32  ;;  %s3079_s8 = scalar_lea.hbm %s3402_s30, 32 }
  0xeb   :  { %p3078_p9 = scmp.ne.s32.totalorder %s3076_s1, %s3077_s17  ;;  %p3080_p10 = scmp.lt.s32.totalorder %s3076_s1, %s3402_s30 }
  0xec   :  { %p3081_p11 = scmp.lt.s32.totalorder %s3079_s8, %s3077_s17 }
  0xed   :  { %s319_s26 = sshll.u32 %s4288_s3, 4  ;;  %s320_s26 = int_to_ptr.hbm [resolvable:$true] %s319_s26 }
  0xee   :  { %p3082_p12 = por %p3081_p11, %p3080_p10 }
  0xf0   :  { %p3083_p13 = pnand %p3082_p12, %p3078_p9 }
  0xf2   :  { %3086 = shalt.err (!%p3083_p13)
}
  0xf3   :  { %281 = dma.hbm_to_vmem [thread:$0]  %s3582_s19, 512, %s276_s28, [#allocation21], %s3255_s7, %s3255_s7, %s3256_s10  }
  0xf4   :  { %s3272_s21 = smov [#allocation25]   ;;  %s3099_s2 = sshra.s32 %s320_s26, 4  ;;  %s3100_s2 = int_to_ptr.hbm [resolvable:$true] %s3099_s2 }
  0xf5   :  { %s321_s14 = sshll.u32 %s3272_s21, 4  ;;  %s3101_s0 = scalar_lea.hbm %s3100_s2, 32  ;;  %s322_s14 = int_to_ptr.vmem [resolvable:$true] %s321_s14 }
  0xf6   :  { %p3102_p0 = scmp.ne.s32.totalorder %s3100_s2, %s3101_s0  ;;  %s3103_s30 = scalar_lea.hbm %s4288_s3, 32 }
  0xf7   :  { %p3104_p1 = scmp.lt.s32.totalorder %s3100_s2, %s4288_s3  ;;  %p3105_p2 = scmp.lt.s32.totalorder %s3103_s30, %s3101_s0 }
  0xf9   :  { %p3106_p3 = por %p3105_p2, %p3104_p1 }
  0xfb   :  { %p3107_p4 = pnand %p3106_p3, %p3102_p0 }
  0xfd   :  { %3110 = shalt.err (!%p3107_p4)
}
  0xfe   :  { %327 = dma.hbm_to_vmem [thread:$0]  %s320_s26, 512, %s322_s14, [#allocation24], %s3255_s7, %s3255_s7, %s3256_s10  }
  0xff   :  { %3195 = dma.done.wait [#allocation3], 512  }
 0x100   :  { %3196 = vsyncadd [#allocation3], 4294966784 }
 0x101   :  { %3197 = dma.done.wait [#allocation6], 1024  }
 0x102   :  { %3198 = vsyncadd [#allocation6], 4294966272 }
 0x103   :  { %3199 = dma.done.wait [#allocation9], 1024  }
 0x104   :  { %3200 = vsyncadd [#allocation9], 4294966272 }
 0x105   :  { %3201 = dma.done.wait [#allocation12], 1024  }
 0x106   :  { %3202 = vsyncadd [#allocation12], 4294966272 }
 0x107   :  { %3203 = dma.done.wait [#allocation15], 128  }
 0x108   :  { %3204 = vsyncadd [#allocation15], 4294967168 }
 0x109   :  { %3205 = dma.done.wait [#allocation18], 256  }
 0x10a   :  { %3206 = vsyncadd [#allocation18], 4294967040 }
 0x10b   :  { %3207 = dma.done.wait [#allocation21], 1024  }
 0x10c   :  { %3208 = vsyncadd [#allocation21], 4294966272 }
 0x10d   :  { %3209 = dma.done.wait [#allocation24], 1024  }
 0x10e   :  { %3210 = vsyncadd [#allocation24], 4294966272  ;;  %s4289_s11 = sld [smem:[#allocation48_spill]]  ;;  %v403_v1 = vld [vmem:[#allocation20 + $0x18] sm:$0xff]  ;;  %v402_v4 = vld [vmem:[#allocation20 + $0x10] sm:$0xff]  ;;  %vm408_vm0 = vcmask 261120   ;;  %v646_v57 = vlaneseq }
 0x10f   :  { %424 = vmatpush.msra.mxu0 %v403_v1  ;;  %s4290_s7 = sld [smem:[#allocation41_spill]]  ;;  %v401_v8 = vld [vmem:[#allocation20 + $0x8] sm:$0xff]  ;;  %v400_v12 = vld [vmem:[#allocation20] sm:$0xff]  ;;  %v394_v16 = vld [vmem:[#allocation17] sm:$0xf]  ;;  %s3273_s29 = smov 32  }
 0x110   :  { %s4291_s10 = sld [smem:[#allocation40_spill]]  ;;  %v396_v19 = vld [vmem:[#allocation17 + $0x4] sm:$0xf]  ;;  %v397_v30 = vld [vmem:[#allocation19] sm:$0xf]  ;;  %v558_v53 = vld [vmem:[#allocation23 + $0x8] sm:$0xff] }
 0x111   :  { %425 = vmatpush.msra.mxu0 %v402_v4  ;;  %s4292_s4 = sld [smem:[#allocation49_spill]]  ;;  %v560_v51 = vld [vmem:[#allocation23 + $0x18] sm:$0xff]  ;;  %v559_v52 = vld [vmem:[#allocation23 + $0x10] sm:$0xff]  ;;  %v557_v54 = vld [vmem:[#allocation23] sm:$0xff]  ;;  %v3632_v58 = vshrl.u32 %v646_v57, 7  ;;  %vm984_vm5 = vcmask 257024  }
 0x112   :  { %s4293_s24 = sld [smem:[#allocation45_spill]]  ;;  %s3274_s18 = smov 96   ;;  %vm652_vm6 = vcmask 1041409   ;;  %vm654_vm7 = vcmask 1042434   ;;  %vm656_vm8 = vcmask 1043459   ;;  %vm659_vm9 = vcmask 60416  }
 0x113   :  { %426 = vmatpush.msra.mxu0 %v401_v8  ;;  %2632 = vset.pattern.permute.xlu1 %v3632_v58  ;;  %s4294_s25 = sld [smem:[#allocation52_spill]]  ;;  %v593_v8 = vld [vmem:[#allocation8 + $0x8] sm:$0xff]  ;;  %vm1014_vm10 = vcmask 27648   ;;  %vm800_vm11 = vcmask 64512  }
 0x114   :  { %v439_v0 = vld [vmem:[%s4289_s11 + $0x38] sm:$0xff]  ;;  %v438_v2 = vld [vmem:[%s4289_s11 + $0x30] sm:$0xff]  ;;  %v437_v6 = vld [vmem:[%s4289_s11 + $0x28] sm:$0xff]  ;;  %2631 = vset.pattern.permute.xlu0 %v3632_v58  ;;  %2633 = vset.pattern.permute.xlu2 %v3632_v58  ;;  %s4295_s19 = sld [smem:[#allocation53_spill]] }
 0x115   :  { %483 = vmatpush.msra.mxu2 %v439_v0  ;;  %v443_v3 = vld [vmem:[%s4289_s11 + $0x58] sm:$0xff]  ;;  %v442_v7 = vld [vmem:[%s4289_s11 + $0x50] sm:$0xff]  ;;  %v441_v10 = vld [vmem:[%s4289_s11 + $0x48] sm:$0xff]  ;;  %427 = vmatpush.msra.mxu0 %v400_v12  ;;  %s4296_s15 = sld [smem:[#allocation54_spill]] }
 0x116   :  { %v435_v5 = vld [vmem:[%s4289_s11 + $0x18] sm:$0xff]  ;;  %507 = vmatpush.msra.mxu3 %v443_v3  ;;  %v434_v9 = vld [vmem:[%s4289_s11 + $0x10] sm:$0xff]  ;;  %v436_v11 = vld [vmem:[%s4289_s11 + $0x20] sm:$0xff]  ;;  %2523 = vmatmul.msk.f32.vlgmr.msra.gmra.mxu0 %vm408_vm0, %v394_v16  ;;  %s4297_s27 = sld [smem:[#allocation46_spill]] }
 0x117   :  { %459 = vmatpush.msra.mxu1 %v435_v5  ;;  %484 = vmatpush.msra.mxu2 %v438_v2  ;;  %v433_v13 = vld [vmem:[%s4289_s11 + $0x8] sm:$0xff]  ;;  %v391_v14 = vld [vmem:[%s4290_s7] sm:$0xf]  ;;  %s4298_s3 = sld [smem:[#allocation44_spill]]  ;;  %s3276_s7 = smov [#allocation26]  }
 0x118   :  { %508 = vmatpush.msra.mxu3 %v442_v7  ;;  %v440_v15 = vld [vmem:[%s4289_s11 + $0x40] sm:$0xff]  ;;  %582 = vmatpush.msrb.mxu0 %v560_v51  ;;  %v594_v7 = vld [vmem:[#allocation8 + $0x10] sm:$0xff]  ;;  %s4299_s13 = sld [smem:[#allocation55_spill]] }
 0x119   :  { %460 = vmatpush.msra.mxu1 %v434_v9  ;;  %485 = vmatpush.msra.mxu2 %v437_v6  ;;  %v390_v17 = vld [vmem:[%s4291_s10] sm:$0xf]  ;;  %s4300_s28 = sld [smem:[#allocation42_spill]]  ;;  %s2430_s10 = sshll.u32 %s3276_s7, 4  ;;  %s2431_s10 = int_to_ptr.vmem [resolvable:$true] %s2430_s10 }
 0x11a   :  { %509 = vmatpush.msra.mxu3 %v441_v10  ;;  %v432_v18 = vld [vmem:[%s4289_s11] sm:$0xff]  ;;  %583 = vmatpush.msrb.mxu0 %v559_v52  ;;  %s4301_s17 = sld [smem:[#allocation47_spill]] }
 0x11b   :  { %461 = vmatpush.msra.mxu1 %v433_v13  ;;  %486 = vmatpush.msra.mxu2 %v436_v11  ;;  %v2647_v20 = vld [vmem:[%s4292_s4] ss:$0 sm:$0xff]  ;;  %s4302_s8 = sld [smem:[#allocation59_spill]]  ;;  %s2432_s4 = sshll.u32 %s3472_s20, 4  ;;  %s2433_s4 = int_to_ptr.hbm [resolvable:$true] %s2432_s4 }
 0x11c   :  { %2525 = vmatmul.msk.f32.vlgmr.msra.gmra.mxu2 %vm408_vm0, %v391_v14  ;;  %510 = vmatpush.msra.mxu3 %v440_v15  ;;  %v596_v59 = vld [vmem:[%s4293_s24] sm:$0xf]  ;;  %s4307_s21 = sld [smem:[#allocation60_spill]]  ;;  %s3277_s24 = smov [#allocation27]  }
 0x11d   :  { %2526 = vmatmul.msk.f32.vlgmr.msra.gmra.mxu3 %vm408_vm0, %v390_v17  ;;  %462 = vmatpush.msra.mxu1 %v432_v18  ;;  %v719_v60 = vperm.slane %v596_v59, 1  ;;  %v712_v61 = vperm.slane %v596_v59, 0  ;;  %v726_v62 = vperm.slane %v596_v59, 2  ;;  %v733_v63 = vperm.slane %v596_v59, 3  ;;  %v2648_v1 = vld [vmem:[%s4294_s25] ss:$0 sm:$0xff] }
 0x11e   :  { %2524 = vmatmul.msk.f32.vlgmr.msra.gmra.mxu1 %vm408_vm0, %v396_v19  ;;  %584 = vmatpush.msrb.mxu0 %v558_v53  ;;  %v2649_v13 = vld [vmem:[%s4295_s19] ss:$0 sm:$0xff]  ;;  %s4308_s14 = sld [smem:[#allocation57_spill]]  ;;  %s4221_s25 = sshll.u32 %s3277_s24, 4  ;;  %s2441_s25 = int_to_ptr.vmem [resolvable:$true] %s4221_s25 }
 0x11f   :  { %s4309_s2 = sld [smem:[#allocation43_spill]] }
 0x120   :  { %585 = vmatpush.msrb.mxu0 %v557_v54  ;;  %s4310_s0 = sld [smem:[#allocation50_spill]] }
 0x121   :  { %s4311_s30 = sld [smem:[#allocation58_spill]] }
 0x122   :  { %s4312_s11 = sld [smem:[#allocation56_spill]] }
 0x193   :  { %v429_v21 = vpop.f32.mrf.mxu0 }
 0x194   :  { %v430_v22 = vadd.f32 %v2647_v20, %v429_v21 }
 0x19b   :  { %v464_v23 = vpop.f32.mrf.mxu1 }
 0x19c   :  { %v467_v24 = vadd.f32 %v464_v23, %v430_v22  ;;  %v591_v22 = vld [vmem:[%s4296_s15] sm:$0x1] }
 0x19d   :  { %2559 = vpush %v591_v22  ;;  %v592_v23 = vld [vmem:[#allocation8] sm:$0xff] }
 0x19f   :  { %v488_v25 = vpop.f32.mrf.mxu2 }
 0x1a0   :  { %v491_v26 = vadd.f32 %v488_v25, %v467_v24  ;;  %v512_v27 = vpop.f32.mrf.mxu3 }
 0x1a2   :  { %v515_v28 = vadd.f32 %v512_v27, %v491_v26 }
 0x1a4   :  { %2658 = vtanh.f32 %v515_v28  ;;  %v2527_v31 = vmul.f32 -1.442695, %v515_v28 }
 0x1a6   :  { %2660 = vpow2.f32 %v2527_v31 }
 0x1aa   :  { %v2659_v29 = vpop.eup %2658 }
 0x1ab   :  { %542 = vrot.lane.b32.xlu0 %v2659_v29, %s3261_s12  ;;  %v1210_v29 = vld [vmem:[#allocation10] sm:$0xff] }
 0x1ac   :  { %v2661_v32 = vpop.eup %2660 }
 0x1ad   :  { %v519_v33 = vadd.f32 1.0, %v2661_v32  ;;  %v3678_v32 = vld [vmem:[%s4295_s19 + $0x1] ss:$0 sm:$0xff] }
 0x1af   :  { %2662 = vrcp.f32 %v519_v33  ;;  %v531_v39 = vand.u32 2147483648, %v519_v33  ;;  %vm525_vm2 = vweird.f32 %v519_v33  ;;  %v529_v40 = vand.u32 2147483647, %v519_v33 }
 0x1b1   :  { %v532_v42 = vor.u32 1.1754944e-38, %v531_v39  ;;  %vm530_vm4 = vcmp.eq.f32.partialorder %v529_v40, 8.507059e+37 }
 0x1b3   :  { %537 = vrot.lane.b32.xlu0 %v397_v30, %s3273_s29 }
 0x1b5   :  { %v2663_v34 = vpop.eup %2662 }
 0x1b6   :  { %v521_v35 = vmul.f32 %v2663_v34, %v519_v33  ;;  %vm526_vm1 = vweird.f32 %v2663_v34 }
 0x1b7   :  { %vm527_vm3 = vmor %vm525_vm2, %vm526_vm1 }
 0x1b8   :  { %v522_v36 = vsub.f32 1.0, %v521_v35 }
 0x1ba   :  { %v523_v37 = vmul.f32 %v2663_v34, %v522_v36 }
 0x1bb   :  { %717 = vperm.xlu0 %2631, %v712_v61  }
 0x1bc   :  { %v524_v38 = vadd.f32 %v2663_v34, %v523_v37 }
 0x1be   :  { %v528_v41 = vsel %vm527_vm3, %v2663_v34, %v524_v38  ;;  %v1212_v38 = vld [vmem:[#allocation10 + $0x10] sm:$0xff] }
 0x1bf   :  { %v533_v44 = vsel %vm530_vm4, %v532_v42, %v528_v41  ;;  %v595_v41 = vld [vmem:[#allocation8 + $0x18] sm:$0xff] }
 0x1ce   :  { %s2560_s16 = spop %2559 }
 0x21d   :  { %v543_v43 = vpop.permute.xlu0 %542 }
 0x21e   :  { %v545_v45 = vmul.f32 %v543_v43, %v533_v44 }
 0x220   :  { %547 = vrot.lane.b32.xlu1 %v545_v45, %s3273_s29  ;;  %v1209_v45 = vld [vmem:[%s4296_s15 + $0x1] sm:$0x1] }
 0x221   :  { %2561 = vpush %v1209_v45  ;;  %v1213_v45 = vld [vmem:[#allocation10 + $0x18] sm:$0xff] }
 0x225   :  { %v538_v46 = vpop.permute.xlu0 %537 }
 0x226   :  { %v540_v47 = vmul.f32 %v538_v46, %v533_v44  ;;  %v1211_v46 = vld [vmem:[#allocation10 + $0x8] sm:$0xff] }
 0x252   :  { %s2562_s23 = spop %2561 }
 0x292   :  { %v548_v48 = vpop.permute.xlu1 %547 }
 0x293   :  { %v3626_v49 = vadd.f32 %v548_v48, %v540_v47 }
 0x295   :  { %2664 = vtanh.f32 %v3626_v49 }
 0x29b   :  { %v2665_v50 = vpop.eup %2664 }
 0x29c   :  { %553 = vrot.lane.b32.xlu1 %v2665_v50, %s3261_s12 }
 0x2a4   :  { %724 = vperm.xlu1 %2632, %v719_v60   ;;  %v718_v60 = vpop.permute.xlu0 %717 }
 0x2ac   :  { %738 = vperm.xlu1 %2632, %v733_v63   ;;  %v636_v63 = vstv %s2560_s16 }
 0x30e   :  { %v554_v55 = vpop.permute.xlu1 %553 }
 0x30f   :  { %v556_v56 = vmul.f32 %v554_v55, %v533_v44 }
 0x311   :  { %566 = vrot.lane.b32.xlu2 %v556_v56, %s3273_s29 }
 0x316   :  { %v3695_v59 = vpop.permute.xlu1 %724 }
 0x319   :  { %731 = vperm.xlu2 %2633, %v726_v62  }
 0x31e   :  { %v3697_v62 = vpop.permute.xlu1 %738 }
 0x36b   :  { %v3638_v0 = vpop.permute.xlu2 %566 }
 0x36c   :  { %2528 = vmatmul.msk.f32.vlgmr.msrb.gmra.mxu0 %vm408_vm0, %v3638_v0  ;;  %2411 = vst.msk [vmem:[#allocation27] sm:$0xf] %vm984_vm5, %v3638_v0 }
 0x373   :  { %v3675_v28 = vpop.permute.xlu2 %731 }
 0x3e9   :  { %v587_v2 = vpop.f32.mrf.mxu0 }
 0x3ea   :  { %v588_v3 = vadd.f32 %v2648_v1, %v587_v2 }
 0x3ec   :  { %v598_v4 = vrot.slane %v588_v3, 1  ;;  %v599_v5 = vrot.slane %v588_v3, 2  ;;  %v3645_v6 = vperm.slane %v588_v3, 0  ;;  %v600_v20 = vrot.slane %v588_v3, 3 }
 0x3ee   :  { %v3647_v9 = vperm.slane %v598_v4, 0  ;;  %v3649_v10 = vperm.slane %v599_v5, 0  ;;  %1215 = vrot.lane.b32.xlu2 %v3645_v6, %s3274_s18  ;;  %v3664_v21 = vperm.slane %v600_v20, 0  ;;  %v609_v24 = vadd.f32 %v3645_v6, %v592_v23 }
 0x3ef   :  { %v3702_v4 = vand.u32 127, %v646_v57  ;;  %v3275_v20 = vmov 0  }
 0x3f0   :  { %v611_v11 = vadd.f32 %v3649_v10, %v594_v7  ;;  %v610_v12 = vadd.f32 %v3647_v9, %v593_v8  ;;  %v612_v42 = vadd.f32 %v3664_v21, %v595_v41  ;;  %2636 = vset.pattern.permute.xlu0 %v3275_v20  ;;  %2635 = vset.pattern.permute.xlu1 %v3275_v20 }
 0x3f1   :  { %2634 = vset.pattern.permute.xlu2 %v3275_v20 }
 0x3f2   :  { %2666 = vtanh.f32 %v611_v11 }
 0x3f3   :  { %2668 = vtanh.f32 %v610_v12 }
 0x3f4   :  { %2670 = vtanh.f32 %v609_v24 }
 0x3f6   :  { %1598 = vrot.lane.b32.xlu2 %v3645_v6, %s3261_s12 }
 0x3f8   :  { %v2667_v14 = vpop.eup %2666 }
 0x3f9   :  { %v2669_v15 = vpop.eup %2668  ;;  %v620_v16 = vmul.f32 %v2667_v14, %v2649_v13 }
 0x3fa   :  { %v619_v17 = vmul.f32 %v2669_v15, %v2649_v13  ;;  %v2671_v25 = vpop.eup %2670 }
 0x3fb   :  { %v628_v18 = vsel %vm408_vm0, %v620_v16, 0.0  ;;  %v618_v26 = vmul.f32 %v2671_v25, %v2649_v13 }
 0x3fc   :  { %629 = vadd.xlane.f32.xlu1 %v628_v18  ;;  %v625_v19 = vsel %vm408_vm0, %v619_v17, 0.0 }
 0x3fd   :  { %626 = vadd.xlane.f32.xlu0 %v625_v19  ;;  %v622_v27 = vsel %vm408_vm0, %v618_v26, 0.0 }
 0x3fe   :  { %1217 = vrot.lane.b32.xlu2 %v3647_v9, %s3274_s18 }
 0x406   :  { %1219 = vrot.lane.b32.xlu2 %v3649_v10, %s3274_s18 }
 0x40e   :  { %1221 = vrot.lane.b32.xlu2 %v3664_v21, %s3274_s18 }
 0x411   :  { %1600 = vrot.lane.b32.xlu0 %v3647_v9, %s3261_s12 }
 0x415   :  { %1604 = vrot.lane.b32.xlu1 %v3664_v21, %s3261_s12 }
 0x437   :  { %623 = vadd.xlane.f32.xlu2 %v622_v27 }
 0x448   :  { %v1216_v30 = vpop.permute.xlu2 %1215 }
 0x449   :  { %v1227_v31 = vadd.f32 %v1216_v30, %v1210_v29 }
 0x44b   :  { %2672 = vtanh.f32 %v1227_v31 }
 0x44f   :  { %1602 = vrot.lane.b32.xlu2 %v3649_v10, %s3261_s12 }
 0x450   :  { %v3682_v33 = vpop.permute.xlu2 %1598 }
 0x451   :  { %v2673_v34 = vpop.eup %2672 }
 0x452   :  { %v1236_v35 = vmul.f32 %v2673_v34, %v3678_v32 }
 0x454   :  { %v1240_v36 = vsel %vm408_vm0, %v1236_v35, 0.0 }
 0x455   :  { %1241 = vadd.xlane.f32.xlu0 %v1240_v36 }
 0x458   :  { %v1218_v37 = vpop.permute.xlu2 %1217 }
 0x459   :  { %v1228_v48 = vadd.f32 %v1218_v37, %v1211_v46 }
 0x460   :  { %v1220_v39 = vpop.permute.xlu2 %1219 }
 0x461   :  { %v1229_v40 = vadd.f32 %v1220_v39, %v1212_v38 }
 0x463   :  { %2674 = vtanh.f32 %v1229_v40 }
 0x464   :  { %2676 = vtanh.f32 %v612_v42 }
 0x465   :  { %2678 = vtanh.f32 %v1228_v48  ;;  %v1594_v48 = vld [vmem:[#allocation11 + $0x8] sm:$0xff] }
 0x468   :  { %v3693_v56 = vpop.permute.xlu2 %1221 }
 0x469   :  { %v2675_v43 = vpop.eup %2674  ;;  %v1230_v46 = vadd.f32 %v3693_v56, %v1213_v45 }
 0x46a   :  { %v1238_v44 = vmul.f32 %v2675_v43, %v3678_v32  ;;  %v2677_v50 = vpop.eup %2676 }
 0x46b   :  { %v621_v51 = vmul.f32 %v2677_v50, %v2649_v13  ;;  %v2679_v53 = vpop.eup %2678 }
 0x46c   :  { %v1246_v47 = vsel %vm408_vm0, %v1238_v44, 0.0  ;;  %v1237_v54 = vmul.f32 %v2679_v53, %v3678_v32  ;;  %v3743_v53 = vld [vmem:[%s4295_s19 + $0x2] ss:$0 sm:$0xff] }
 0x46d   :  { %1247 = vadd.xlane.f32.xlu1 %v1246_v47  ;;  %v631_v52 = vsel %vm408_vm0, %v621_v51, 0.0 }
 0x46e   :  { %v1243_v55 = vsel %vm408_vm0, %v1237_v54, 0.0 }
 0x46f   :  { %v630_v7 = vpop.xlane.xlu1 %629 }
 0x470   :  { %v627_v1 = vpop.xlane.xlu0 %626  ;;  %v640_v11 = vadd.f32 %v636_v63, %v630_v7 }
 0x471   :  { %v639_v5 = vadd.f32 %v636_v63, %v627_v1 }
 0x472   :  { %v650_v16 = vperm.slane %v640_v11, %v3702_v4 }
 0x473   :  { %v649_v12 = vperm.slane %v639_v5, %v3702_v4 }
 0x478   :  { %632 = vadd.xlane.f32.xlu2 %v631_v52 }
 0x480   :  { %1244 = vadd.xlane.f32.xlu2 %v1243_v55 }
 0x483   :  { %v1601_v50 = vpop.permute.xlu0 %1600 }
 0x484   :  { %v1611_v51 = vadd.f32 %v1601_v50, %v1594_v48 }
 0x4aa   :  { %v624_v61 = vpop.xlane.xlu2 %623 }
 0x4ab   :  { %v638_v3 = vadd.f32 %v636_v63, %v624_v61 }
 0x4ad   :  { %v648_v8 = vperm.slane %v638_v3, %v3702_v4 }
 0x4af   :  { %v653_v15 = vsel %vm652_vm6, %v649_v12, %v648_v8 }
 0x4b0   :  { %v655_v57 = vsel %vm654_vm7, %v650_v16, %v653_v15 }
 0x4b2   :  { %v3699_v2 = vpop.permute.xlu2 %1602 }
 0x4c8   :  { %v1242_v1 = vpop.xlane.xlu0 %1241 }
 0x4eb   :  { %v633_v13 = vpop.xlane.xlu2 %632 }
 0x4ec   :  { %v641_v14 = vadd.f32 %v636_v63, %v633_v13  ;;  %v1593_v63 = vld [vmem:[#allocation11] sm:$0xff] }
 0x4ee   :  { %v651_v17 = vperm.slane %v641_v14, %v3702_v4 }
 0x4f0   :  { %v657_v18 = vsel %vm656_vm8, %v651_v17, %v655_v57 }
 0x4f1   :  { %v660_v19 = vsel %vm659_vm9, %v657_v18, -inf }
 0x4f2   :  { %661 = vmax.xlane.f32.xlu2 %v660_v19 }
 0x4f3   :  { %v3715_v22 = vpop.xlane.xlu2 %1244 }
 0x565   :  { %v662_v23 = vpop.xlane.xlu2 %661 }
 0x566   :  { %v664_v24 = vperm.slane %v662_v23, 0  ;;  %v665_v25 = vperm.slane %v662_v23, 1  ;;  %v667_v26 = vperm.slane %v662_v23, 3  ;;  %v666_v27 = vperm.slane %v662_v23, 2 }
 0x568   :  { %v672_v29 = vsub.f32 %v638_v3, %v664_v24  ;;  %v673_v30 = vsub.f32 %v639_v5, %v665_v25  ;;  %v675_v31 = vsub.f32 %v641_v14, %v667_v26  ;;  %v674_v37 = vsub.f32 %v640_v11, %v666_v27  ;;  %v1596_v25 = vld [vmem:[#allocation11 + $0x18] sm:$0xff] }
 0x569   :  { %v1610_v3 = vadd.f32 %v3682_v33, %v1593_v63  ;;  %v2652_v63 = vld [vmem:[%s4295_s19 + $0x3] ss:$0 sm:$0xff]  ;;  %s2442_s19 = sshll.u32 %s3477_s6, 4  ;;  %s4228_s19 = int_to_ptr.hbm [resolvable:$true] %s2442_s19 }
 0x56a   :  { %v676_v34 = vmul.f32 1.442695, %v672_v29  ;;  %v678_v35 = vmul.f32 1.442695, %v673_v30  ;;  %v682_v36 = vmul.f32 1.442695, %v675_v31 }
 0x56b   :  { %v680_v38 = vmul.f32 1.442695, %v674_v37 }
 0x56c   :  { %2680 = vpow2.f32 %v676_v34 }
 0x56d   :  { %2682 = vpow2.f32 %v678_v35 }
 0x56e   :  { %2684 = vpow2.f32 %v682_v36 }
 0x56f   :  { %2686 = vpow2.f32 %v680_v38 }
 0x570   :  { %2688 = vtanh.f32 %v1230_v46 }
 0x571   :  { %2690 = vtanh.f32 %v1611_v51 }
 0x572   :  { %v2681_v39 = vpop.eup %2680  ;;  %2692 = vtanh.f32 %v1610_v3 }
 0x573   :  { %v2683_v40 = vpop.eup %2682  ;;  %689 = vperm.xlu2 %2634, %v2681_v39   ;;  %v3719_v43 = vmul.f32 %v2681_v39, %v718_v60  ;;  %v1592_v60 = vld [vmem:[%s4296_s15 + $0x2] sm:$0x1] }
 0x574   :  { %692 = vperm.xlu1 %2635, %v2683_v40   ;;  %v2685_v41 = vpop.eup %2684  ;;  %2563 = vpush %v1592_v60 }
 0x575   :  { %698 = vperm.xlu0 %2636, %v2685_v41   ;;  %v2687_v42 = vpop.eup %2686 }
 0x576   :  { %v3725_v44 = vmul.f32 %v2687_v42, %v3675_v28  ;;  %v3737_v28 = vmul.f32 %v2685_v41, %v3697_v62 }
 0x57b   :  { %695 = vperm.xlu2 %2634, %v2687_v42   ;;  %v1254_v42 = vstv %s2562_s23 }
 0x57c   :  { %1939 = vrot.lane.b32.xlu1 %v3647_v9, %s3273_s29  ;;  %v3732_v9 = vmul.f32 %v2683_v40, %v3695_v59  ;;  %v1605_v59 = vpop.permute.xlu1 %1604  ;;  %v3778_v46 = vadd.f32 %v1254_v42, %v3715_v22 }
 0x57d   :  { %v1613_v26 = vadd.f32 %v1605_v59, %v1596_v25  ;;  %v1934_v59 = vld [vmem:[#allocation13 + $0x10] sm:$0xff] }
 0x57f   :  { %2694 = vtanh.f32 %v1613_v26  ;;  %v1932_v26 = vld [vmem:[#allocation13] sm:$0xff] }
 0x583   :  { %1937 = vrot.lane.b32.xlu2 %v3645_v6, %s3273_s29  ;;  %v2689_v6 = vpop.eup %2688 }
 0x584   :  { %753 = vperm.xlu1 %2635, %v3719_v43   ;;  %v2691_v52 = vpop.eup %2690  ;;  %v1248_v61 = vpop.xlane.xlu1 %1247 }
 0x585   :  { %v1620_v54 = vmul.f32 %v2691_v52, %v3743_v53  ;;  %v2693_v17 = vpop.eup %2692 }
 0x586   :  { %v1619_v18 = vmul.f32 %v2693_v17, %v3743_v53  ;;  %v2695_v40 = vpop.eup %2694 }
 0x587   :  { %v1626_v55 = vsel %vm408_vm0, %v1620_v54, 0.0  ;;  %v1622_v41 = vmul.f32 %v2695_v40, %v3743_v53 }
 0x588   :  { %v1623_v23 = vsel %vm408_vm0, %v1619_v18, 0.0 }
 0x589   :  { %v1632_v45 = vsel %vm408_vm0, %v1622_v41, 0.0 }
 0x58b   :  { %1943 = vrot.lane.b32.xlu2 %v3664_v21, %s3273_s29  ;;  %v1239_v21 = vmul.f32 %v2689_v6, %v3678_v32  ;;  %v3780_v6 = vadd.f32 %v1254_v42, %v1242_v1 }
 0x58c   :  { %759 = vperm.xlu1 %2635, %v3725_v44  }
 0x58d   :  { %v1249_v47 = vsel %vm408_vm0, %v1239_v21, 0.0  ;;  %v1265_v21 = vperm.slane %v3778_v46, %v3702_v4  ;;  %v1264_v48 = vperm.slane %v3780_v6, %v3702_v4 }
 0x58f   :  { %v1268_v52 = vsel %vm652_vm6, %v1265_v21, %v1264_v48 }
 0x593   :  { %756 = vperm.xlu2 %2634, %v3732_v9  }
 0x594   :  { %2637 = vset.pattern.permute.xlu1 %v3632_v58 }
 0x59b   :  { %762 = vperm.xlu2 %2634, %v3737_v28  }
 0x59f   :  { %1250 = vadd.xlane.f32.xlu0 %v1249_v47  ;;  %v3784_v47 = vadd.f32 %v1254_v42, %v1248_v61 }
 0x5a1   :  { %v1266_v22 = vperm.slane %v3784_v47, %v3702_v4 }
 0x5a5   :  { %s2564_s26 = spop %2563 }
 0x5b3   :  { %1941 = vrot.lane.b32.xlu0 %v3649_v10, %s3273_s29 }
 0x5b6   :  { %1627 = vadd.xlane.f32.xlu1 %v1626_v55  ;;  %v1269_v55 = vsel %vm654_vm7, %v1266_v22, %v1268_v52  ;;  %v792_v52 = vld [vmem:[%s4298_s3 + $0x8] sm:$0xff]  ;;  %v907_v22 = vld [vmem:[%s4299_s13 + $0x18] sm:$0xff] }
 0x5b7   :  { %845 = vmatpush.msrb.mxu2 %v792_v52 }
 0x5b9   :  { %947 = vmatpush.msra.mxu2 %v907_v22 }
 0x5cd   :  { %v690_v32 = vpop.permute.xlu2 %689 }
 0x5ce   :  { %v700_v7 = vperm.slane %v690_v32, %v3702_v4 }
 0x5d5   :  { %v696_v56 = vpop.permute.xlu2 %695 }
 0x5d6   :  { %v702_v8 = vperm.slane %v696_v56, %v3702_v4 }
 0x5dd   :  { %v3750_v62 = vpop.permute.xlu2 %1937 }
 0x5e5   :  { %v3757_v13 = vpop.permute.xlu2 %1943 }
 0x5e6   :  { %v693_v5 = vpop.permute.xlu1 %692 }
 0x5e7   :  { %v701_v10 = vperm.slane %v693_v5, %v3702_v4  ;;  %v699_v11 = vpop.permute.xlu0 %698 }
 0x5e8   :  { %v703_v12 = vperm.slane %v699_v11, %v3702_v4 }
 0x5e9   :  { %v704_v14 = vsel %vm652_vm6, %v701_v10, %v700_v7  ;;  %v3801_v7 = vld [vmem:[%s4297_s27] sm:$0xf]  ;;  %s3139_s27 = scalar_lea.hbm %s3472_s20, 4 }
 0x5ea   :  { %v705_v15 = vsel %vm654_vm7, %v702_v8, %v704_v14  ;;  %v1331_v10 = vperm.slane %v3801_v7, 1  ;;  %v1931_v8 = vld [vmem:[%s4296_s15 + $0x3] sm:$0x1]  ;;  %s3278_s15 = smov [#allocation29]  }
 0x5eb   :  { %v706_v16 = vsel %vm656_vm8, %v703_v12, %v705_v15  ;;  %2565 = vpush %v1931_v8  ;;  %s4224_s16 = sshll.u32 %s3278_s15, 4  ;;  %s2454_s16 = int_to_ptr.vmem [resolvable:$true] %s4224_s16 }
 0x5ec   :  { %v708_v33 = vsel %vm659_vm9, %v706_v16, 0.0 }
 0x5ed   :  { %709 = vadd.xlane.f32.xlu0 %v708_v33  ;;  %v757_v19 = vpop.permute.xlu2 %756 }
 0x5ee   :  { %v3763_v57 = vpop.permute.xlu1 %1939  ;;  %v765_v30 = vperm.slane %v757_v19, %v3702_v4 }
 0x5f5   :  { %1624 = vadd.xlane.f32.xlu0 %v1623_v23  ;;  %v763_v29 = vpop.permute.xlu2 %762 }
 0x5f6   :  { %v754_v24 = vpop.permute.xlu1 %753  ;;  %v767_v35 = vperm.slane %v763_v29, %v3702_v4  ;;  %v1949_v29 = vadd.f32 %v3750_v62, %v1932_v26 }
 0x5f7   :  { %v764_v27 = vperm.slane %v754_v24, %v3702_v4 }
 0x5f9   :  { %v768_v36 = vsel %vm652_vm6, %v765_v30, %v764_v27  ;;  %v1595_v27 = vld [vmem:[#allocation11 + $0x10] sm:$0xff] }
 0x5fa   :  { %v1612_v30 = vadd.f32 %v3699_v2, %v1595_v27 }
 0x5fe   :  { %v760_v31 = vpop.permute.xlu1 %759 }
 0x5ff   :  { %v766_v34 = vperm.slane %v760_v31, %v3702_v4  ;;  %v1933_v31 = vld [vmem:[#allocation13 + $0x8] sm:$0xff] }
 0x601   :  { %v769_v37 = vsel %vm654_vm7, %v766_v34, %v768_v36 }
 0x602   :  { %v770_v38 = vsel %vm656_vm8, %v767_v35, %v769_v37 }
 0x603   :  { %v772_v39 = vsel %vm659_vm9, %v770_v38, 0.0  ;;  %v1013_v38 = vld [vmem:[#allocation16] sm:$0xf] }
 0x604   :  { %773 = vadd.xlane.f32.xlu1 %v772_v39  ;;  %v1015_v2 = vsel %vm1014_vm10, %v1013_v38, 0.0 }
 0x60c   :  { %1633 = vadd.xlane.f32.xlu1 %v1632_v45 }
 0x612   :  { %v1251_v50 = vpop.xlane.xlu0 %1250 }
 0x613   :  { %v3788_v51 = vadd.f32 %v1254_v42, %v1251_v50 }
 0x615   :  { %v1267_v54 = vperm.slane %v3788_v51, %v3702_v4 }
 0x617   :  { %v1270_v32 = vsel %vm656_vm8, %v1267_v54, %v1269_v55  ;;  %v906_v54 = vld [vmem:[%s4299_s13 + $0x10] sm:$0xff] }
 0x618   :  { %v1272_v56 = vsel %vm659_vm9, %v1270_v32, -inf  ;;  %948 = vmatpush.msra.mxu2 %v906_v54  ;;  %v1345_v32 = vperm.slane %v3801_v7, 3 }
 0x619   :  { %1273 = vmax.xlane.f32.xlu2 %v1272_v56 }
 0x61c   :  { %s2566_s1 = spop %2565 }
 0x625   :  { %v1942_v60 = vpop.permute.xlu0 %1941 }
 0x626   :  { %v1951_v61 = vadd.f32 %v1942_v60, %v1934_v59  ;;  %v791_v59 = vld [vmem:[%s4298_s3] sm:$0xff]  ;;  %v793_v60 = vld [vmem:[%s4298_s3 + $0x10] sm:$0xff] }
 0x627   :  { %818 = vmatpush.msrb.mxu1 %v791_v59  ;;  %872 = vmatpush.msrb.mxu3 %v793_v60 }
 0x628   :  { %2696 = vtanh.f32 %v1951_v61  ;;  %v905_v61 = vld [vmem:[%s4299_s13 + $0x8] sm:$0xff] }
 0x629   :  { %v3806_v11 = vpop.xlane.xlu1 %1627  ;;  %949 = vmatpush.msra.mxu2 %v905_v61 }
 0x62e   :  { %v2697_v1 = vpop.eup %2696 }
 0x62f   :  { %v1960_v3 = vmul.f32 %v2697_v1, %v2652_v63  ;;  %v904_v1 = vld [vmem:[%s4299_s13] sm:$0xff] }
 0x630   :  { %950 = vmatpush.msra.mxu2 %v904_v1 }
 0x631   :  { %v1968_v5 = vsel %vm408_vm0, %v1960_v3, 0.0  ;;  %v910_v3 = vld [vmem:[%s4299_s13 + $0x30] sm:$0xff] }
 0x632   :  { %1969 = vadd.xlane.f32.xlu1 %v1968_v5 }
 0x64b   :  { %1336 = vperm.xlu1 %2637, %v1331_v10   ;;  %v909_v10 = vld [vmem:[%s4299_s13 + $0x28] sm:$0xff] }
 0x653   :  { %2639 = vset.pattern.permute.xlu1 %v3275_v20 }
 0x660   :  { %v710_v12 = vpop.xlane.xlu0 %709 }
 0x661   :  { %v775_v14 = vmul.f32 1e-10, %v710_v12  ;;  %v908_v12 = vld [vmem:[%s4299_s13 + $0x20] sm:$0xff] }
 0x677   :  { %v774_v15 = vpop.xlane.xlu1 %773 }
 0x678   :  { %v776_v16 = vadd.f32 %v775_v14, %v774_v15 }
 0x67a   :  { %2698 = vrcp.f32 %v776_v16  ;;  %v392_v16 = vld [vmem:[%s4300_s28] sm:$0xf] }
 0x67b   :  { %2700 = vtanh.f32 %v1949_v29 }
 0x67c   :  { %2702 = vtanh.f32 %v1612_v30 }
 0x67f   :  { %v1634_v14 = vpop.xlane.xlu1 %1633 }
 0x680   :  { %v3808_v33 = vpop.eup %2698 }
 0x681   :  { %v781_v17 = vperm.slane %v3808_v33, 2  ;;  %v780_v18 = vperm.slane %v3808_v33, 1  ;;  %v779_v19 = vperm.slane %v3808_v33, 0  ;;  %v2701_v34 = vpop.eup %2700  ;;  %v782_v56 = vperm.slane %v3808_v33, 3 }
 0x682   :  { %v2703_v35 = vpop.eup %2702  ;;  %v1958_v36 = vmul.f32 %v2701_v34, %v2652_v63 }
 0x683   :  { %v789_v23 = vmul.f32 %v781_v17, %v3725_v44  ;;  %v788_v24 = vmul.f32 %v780_v18, %v3732_v9  ;;  %v787_v25 = vmul.f32 %v779_v19, %v3719_v43  ;;  %v1935_v44 = vld [vmem:[#allocation13 + $0x18] sm:$0xff]  ;;  %v1950_v43 = vadd.f32 %v3763_v57, %v1933_v31 }
 0x684   :  { %v1952_v9 = vadd.f32 %v3757_v13, %v1935_v44  ;;  %v1621_v37 = vmul.f32 %v2703_v35, %v3743_v53  ;;  %v1962_v62 = vsel %vm408_vm0, %v1958_v36, 0.0  ;;  %v790_v5 = vmul.f32 %v782_v56, %v3737_v28  ;;  %v1625_v28 = vpop.xlane.xlu0 %1624 }
 0x685   :  { %852 = vperm.xlu0 %2636, %v789_v23   ;;  %825 = vperm.xlu2 %2634, %v788_v24  }
 0x686   :  { %797 = vperm.xlu1 %2639, %v787_v25   ;;  %2704 = vtanh.f32 %v1952_v9  ;;  %v1629_v40 = vsel %vm408_vm0, %v1621_v37, 0.0  ;;  %v1637_v25 = vstv %s2564_s26 }
 0x687   :  { %2706 = vtanh.f32 %v1950_v43  ;;  %v3860_v26 = vadd.f32 %v1637_v25, %v1625_v28  ;;  %v3864_v29 = vadd.f32 %v1637_v25, %v3806_v11  ;;  %v3868_v31 = vadd.f32 %v1637_v25, %v1634_v14  ;;  %v794_v43 = vld [vmem:[%s4298_s3 + $0x18] sm:$0xff] }
 0x688   :  { %899 = vmatpush.msra.mxu0 %v794_v43 }
 0x689   :  { %v1647_v44 = vperm.slane %v3860_v26, %v3702_v4  ;;  %v1648_v36 = vperm.slane %v3864_v29, %v3702_v4  ;;  %v1650_v37 = vperm.slane %v3868_v31, %v3702_v4 }
 0x68b   :  { %v1651_v38 = vsel %vm652_vm6, %v1648_v36, %v1647_v44  ;;  %v981_v44 = vld [vmem:[%s4301_s17 + $0x4] sm:$0xf]  ;;  %v980_v36 = vld [vmem:[%s4301_s17] sm:$0xf] }
 0x68c   :  { %v2705_v39 = vpop.eup %2704  ;;  %v3825_v42 = vpop.xlane.xlu2 %1273  ;;  %v992_v43 = vsel %vm984_vm5, %v981_v44, 0.0 }
 0x68d   :  { %2638 = vset.pattern.permute.xlu2 %v3632_v58  ;;  %2641 = vset.pattern.permute.xlu0 %v3632_v58  ;;  %v2707_v13 = vpop.eup %2706  ;;  %v1961_v57 = vmul.f32 %v2705_v39, %v2652_v63  ;;  %v1279_v45 = vperm.slane %v3825_v42, 3  ;;  %v1278_v27 = vperm.slane %v3825_v42, 2 }
 0x68e   :  { %v1959_v41 = vmul.f32 %v2707_v13, %v2652_v63  ;;  %v911_v63 = vld [vmem:[%s4299_s13 + $0x38] sm:$0xff] }
 0x68f   :  { %v1971_v53 = vsel %vm408_vm0, %v1961_v57, 0.0  ;;  %v1287_v48 = vsub.f32 %v3788_v51, %v1279_v45  ;;  %v1338_v51 = vperm.slane %v3801_v7, 2  ;;  %924 = vmatpush.msra.mxu1 %v911_v63  ;;  %v1286_v34 = vsub.f32 %v3784_v47, %v1278_v27 }
 0x690   :  { %v1965_v21 = vsel %vm408_vm0, %v1959_v41, 0.0 }
 0x691   :  { %v1294_v50 = vmul.f32 1.442695, %v1287_v48  ;;  %925 = vmatpush.msra.mxu1 %v910_v3  ;;  %v1292_v39 = vmul.f32 1.442695, %v1286_v34  ;;  %v1277_v48 = vperm.slane %v3825_v42, 1 }
 0x693   :  { %2708 = vpow2.f32 %v1294_v50  ;;  %926 = vmatpush.msra.mxu1 %v909_v10  ;;  %v1285_v59 = vsub.f32 %v3778_v46, %v1277_v48  ;;  %v1597_v10 = vld [vmem:[#allocation14] sm:$0xf] }
 0x694   :  { %2710 = vpow2.f32 %v1292_v39  ;;  %v1707_v46 = vperm.slane %v1597_v10, 0  ;;  %v985_v39 = vsel %vm984_vm5, %v980_v36, 0.0 }
 0x695   :  { %927 = vmatpush.msra.mxu1 %v908_v12  ;;  %v1290_v3 = vmul.f32 1.442695, %v1285_v59 }
 0x697   :  { %2712 = vpow2.f32 %v1290_v3  ;;  %v1089_v3 = vld [vmem:[%s4302_s8 + $0x10] sm:$0xff] }
 0x699   :  { %v3834_v55 = vpop.eup %2708 }
 0x69a   :  { %v2711_v56 = vpop.eup %2710 }
 0x6a5   :  { %v1970_v33 = vpop.xlane.xlu1 %1969 }
 0x6ae   :  { %1963 = vadd.xlane.f32.xlu2 %v1962_v62  ;;  %v1976_v62 = vstv %s2566_s1 }
 0x6af   :  { %1630 = vadd.xlane.f32.xlu0 %v1629_v40  ;;  %v3886_v41 = vadd.f32 %v1976_v62, %v1970_v33  ;;  %v1276_v33 = vperm.slane %v3825_v42, 0  ;;  %v1714_v42 = vperm.slane %v1597_v10, 1 }
 0x6b0   :  { %1016 = vadd.xlane.f32.xlu1 %v1015_v2 }
 0x6b1   :  { %v1988_v22 = vperm.slane %v3886_v41, %v3702_v4 }
 0x6b6   :  { %1972 = vadd.xlane.f32.xlu2 %v1971_v53 }
 0x6b7   :  { %1966 = vadd.xlane.f32.xlu0 %v1965_v21 }
 0x6bd   :  { %v1337_v17 = vpop.permute.xlu1 %1336 }
 0x6c9   :  { %1310 = vperm.xlu1 %2639, %v3834_v55  }
 0x6ce   :  { %1343 = vperm.xlu2 %2638, %v1338_v51  }
 0x6d6   :  { %1350 = vperm.xlu2 %2638, %v1345_v32  }
 0x6de   :  { %2640 = vset.pattern.permute.xlu2 %v3275_v20 }
 0x6df   :  { %879 = vperm.xlu2 %2640, %v790_v5   ;;  %v826_v8 = vpop.permute.xlu2 %825 }
 0x6e0   :  { %v827_v15 = vperm.slane %v826_v8, %v3702_v4  ;;  %v2713_v8 = vpop.eup %2712 }
 0x6e1   :  { %v3910_v12 = vmul.f32 %v2713_v8, %v1337_v17  ;;  %v1936_v17 = vld [vmem:[#allocation14] sm:$0xf] }
 0x6e2   :  { %2530 = vmatmul.msk.f32.vlgmr.msrb.gmra.mxu2 %vm800_vm11, %v827_v15 }
 0x6ea   :  { %2534 = vmatmul.msk.f32.vlgmr.msra.gmra.mxu2 %vm408_vm0, %v392_v16  ;;  %v1324_v16 = vperm.slane %v3801_v7, 0  ;;  %v2046_v7 = vperm.slane %v1936_v17, 0 }
 0x6f7   :  { %v853_v18 = vpop.permute.xlu0 %852 }
 0x6f8   :  { %v854_v19 = vperm.slane %v853_v18, %v3702_v4  ;;  %v798_v23 = vpop.permute.xlu1 %797  ;;  %v1721_v18 = vperm.slane %v1597_v10, 2 }
 0x6f9   :  { %v799_v24 = vperm.slane %v798_v23, %v3702_v4  ;;  %v2053_v23 = vperm.slane %v1936_v17, 1 }
 0x6fa   :  { %2531 = vmatmul.msk.f32.vlgmr.msrb.gmra.mxu3 %vm800_vm11, %v854_v19  ;;  %v1284_v19 = vsub.f32 %v3780_v6, %v1276_v33  ;;  %v2067_v6 = vperm.slane %v1936_v17, 3 }
 0x6fb   :  { %2529 = vmatmul.msk.f32.vlgmr.msrb.gmra.mxu1 %vm800_vm11, %v799_v24 }
 0x6fc   :  { %v1288_v24 = vmul.f32 1.442695, %v1284_v19 }
 0x6fe   :  { %2714 = vpow2.f32 %v1288_v24 }
 0x703   :  { %2533 = vmatmul.msk.f32.vlgmr.msra.gmra.mxu1 %vm408_vm0, %v3638_v0 }
 0x721   :  { %v1964_v30 = vpop.xlane.xlu2 %1963 }
 0x722   :  { %v1631_v9 = vpop.xlane.xlu0 %1630  ;;  %v3883_v40 = vadd.f32 %v1976_v62, %v1964_v30 }
 0x723   :  { %v3872_v35 = vadd.f32 %v1637_v25, %v1631_v9  ;;  %v3923_v25 = vpop.eup %2714  ;;  %v1017_v27 = vpop.xlane.xlu1 %1016  ;;  %v982_v9 = vld [vmem:[%s4301_s17 + $0x8] sm:$0xf] }
 0x724   :  { %v1986_v50 = vperm.slane %v3883_v40, %v3702_v4  ;;  %v3929_v30 = vadd.f32 1e-10, %v1017_v27 }
 0x725   :  { %v1649_v11 = vperm.slane %v3872_v35, %v3702_v4 }
 0x726   :  { %2716 = vrcp.f32 %v3929_v30  ;;  %v3936_v34 = vrot.slane %v3929_v30, 1  ;;  %v3954_v59 = vrot.slane %v3929_v30, 2  ;;  %vm1032_vm12 = vweird.f32 %v3929_v30 }
 0x727   :  { %v1652_v2 = vsel %vm654_vm7, %v1649_v11, %v1651_v38  ;;  %v983_v11 = vld [vmem:[%s4301_s17 + $0xc] sm:$0xf]  ;;  %v999_v38 = vsel %vm984_vm5, %v982_v9, 0.0 }
 0x728   :  { %v1653_v47 = vsel %vm656_vm8, %v1650_v37, %v1652_v2  ;;  %v993_v37 = vrot.slane %v992_v43, 4  ;;  %v1093_v2 = vld [vmem:[%s4302_s8 + $0x30] sm:$0xff]  ;;  %2718 = vrcp.f32 %v3936_v34  ;;  %vm1047_vm15 = vweird.f32 %v3936_v34 }
 0x729   :  { %v1973_v13 = vpop.xlane.xlu2 %1972  ;;  %v1655_v57 = vsel %vm659_vm9, %v1653_v47, -inf  ;;  %2720 = vrcp.f32 %v3954_v59  ;;  %vm1062_vm10 = vweird.f32 %v3954_v59 }
 0x72a   :  { %v1967_v53 = vpop.xlane.xlu0 %1966  ;;  %1656 = vmax.xlane.f32.xlu2 %v1655_v57  ;;  %v3888_v45 = vadd.f32 %v1976_v62, %v1973_v13  ;;  %v994_v47 = vadd.f32 %v993_v37, %v992_v43  ;;  %v1000_v13 = vrot.slane %v999_v38, 4  ;;  %v1006_v57 = vsel %vm984_vm5, %v983_v11, 0.0 }
 0x72b   :  { %v3890_v21 = vadd.f32 %v1976_v62, %v1967_v53  ;;  %v986_v53 = vrot.slane %v985_v39, 4 }
 0x72c   :  { %v1989_v54 = vperm.slane %v3888_v45, %v3702_v4  ;;  %v3942_v62 = vpop.eup %2716  ;;  %v995_v48 = vrot.slane %v994_v47, 2 }
 0x72d   :  { %v1987_v52 = vperm.slane %v3890_v21, %v3702_v4  ;;  %vm1033_vm13 = vweird.f32 %v3942_v62 }
 0x72e   :  { %vm3975_vm14 = vmor %vm1032_vm12, %vm1033_vm13 }
 0x72f   :  { %v1990_v51 = vsel %vm652_vm6, %v1987_v52, %v1986_v50  ;;  %v1001_v50 = vadd.f32 %v1000_v13, %v999_v38  ;;  %v1028_v52 = vmul.f32 %v3942_v62, %v3929_v30 }
 0x730   :  { %v1991_v32 = vsel %vm654_vm7, %v1988_v22, %v1990_v51  ;;  %v1092_v22 = vld [vmem:[%s4302_s8 + $0x28] sm:$0xff]  ;;  %v1090_v51 = vld [vmem:[%s4302_s8 + $0x18] sm:$0xff] }
 0x731   :  { %v1344_v60 = vpop.permute.xlu2 %1343  ;;  %v1992_v61 = vsel %vm656_vm8, %v1989_v54, %v1991_v32  ;;  %v1091_v54 = vld [vmem:[%s4302_s8 + $0x20] sm:$0xff]  ;;  %v987_v32 = vadd.f32 %v986_v53, %v985_v39  ;;  %1151 = vmatpush.msrb.mxu0 %v1090_v51  ;;  %v1051_v39 = vand.u32 2147483647, %v3936_v34 }
 0x732   :  { %v3905_v63 = vmul.f32 %v2711_v56, %v1344_v60  ;;  %v1994_v1 = vsel %vm659_vm9, %v1992_v61, -inf  ;;  %v1029_v61 = vsub.f32 1.0, %v1028_v52 }
 0x733   :  { %1995 = vmax.xlane.f32.xlu0 %v1994_v1  ;;  %v988_v60 = vrot.slane %v987_v32, 2  ;;  %v2719_v1 = vpop.eup %2718  ;;  %1152 = vmatpush.msrb.mxu0 %v1089_v3  ;;  %vm1052_vm4 = vcmp.eq.f32.partialorder %v1051_v39, 8.507059e+37 }
 0x734   :  { %1371 = vperm.xlu1 %2639, %v3905_v63   ;;  %v2721_v44 = vpop.eup %2720  ;;  %vm1048_vm1 = vweird.f32 %v2719_v1 }
 0x735   :  { %v989_v33 = vadd.f32 %v988_v60, %v987_v32  ;;  %vm1049_vm3 = vmor %vm1047_vm15, %vm1048_vm1  ;;  %v1058_v53 = vmul.f32 %v2721_v44, %v3954_v59  ;;  %vm1063_vm12 = vweird.f32 %v2721_v44 }
 0x736   :  { %vm3993_vm15 = vmor %vm1062_vm10, %vm1063_vm12 }
 0x737   :  { %v1059_v52 = vsub.f32 1.0, %v1058_v53 }
 0x739   :  { %v1351_v5 = vpop.permute.xlu2 %1350  ;;  %v1060_v60 = vmul.f32 %v2721_v44, %v1059_v52 }
 0x73a   :  { %v3918_v28 = vmul.f32 %v3834_v55, %v1351_v5  ;;  %v1728_v55 = vperm.slane %v1597_v10, 3  ;;  %v996_v5 = vadd.f32 %v995_v48, %v994_v47  ;;  %v1002_v10 = vrot.slane %v1001_v50, 2 }
 0x73c   :  { %2642 = vset.pattern.permute.xlu1 %v3632_v58  ;;  %v1003_v24 = vadd.f32 %v1002_v10, %v1001_v50 }
 0x73e   :  { %v1004_v36 = vrot.slane %v1003_v24, 1 }
 0x740   :  { %v1005_v10 = vadd.f32 %v1004_v36, %v1003_v24 }
 0x741   :  { %v880_v14 = vpop.permute.xlu2 %879 }
 0x742   :  { %v881_v15 = vperm.slane %v880_v14, %v3702_v4  ;;  %1368 = vperm.xlu2 %2640, %v3910_v12  }
 0x744   :  { %2532 = vmatmul.msk.f32.vlgmr.msra.gmra.mxu0 %vm800_vm11, %v881_v15  ;;  %1712 = vperm.xlu1 %2642, %v1707_v46   ;;  %v1088_v46 = vld [vmem:[%s4302_s8 + $0x8] sm:$0xff]  ;;  %v3961_v15 = vrot.slane %v3929_v30, 3 }
 0x745   :  { %1153 = vmatpush.msrb.mxu0 %v1088_v46  ;;  %v1061_v46 = vadd.f32 %v2721_v44, %v1060_v60 }
 0x746   :  { %2722 = vrcp.f32 %v3961_v15  ;;  %vm1077_vm13 = vweird.f32 %v3961_v15 }
 0x747   :  { %1329 = vperm.xlu0 %2641, %v1324_v16   ;;  %v1087_v16 = vld [vmem:[%s4302_s8] sm:$0xff] }
 0x748   :  { %1154 = vmatpush.msrb.mxu0 %v1087_v16 }
 0x74a   :  { %1374 = vperm.xlu2 %2640, %v3918_v28  }
 0x74c   :  { %1726 = vperm.xlu1 %2642, %v1721_v18   ;;  %v1030_v18 = vmul.f32 %v3942_v62, %v1029_v61  ;;  %v2723_v47 = vpop.eup %2722 }
 0x74f   :  { %2058 = vperm.xlu0 %2641, %v2053_v23   ;;  %v997_v23 = vrot.slane %v996_v5, 1 }
 0x751   :  { %v998_v43 = vadd.f32 %v997_v23, %v996_v5  ;;  %v1081_v5 = vand.u32 2147483647, %v3961_v15 }
 0x752   :  { %2643 = vset.pattern.permute.xlu2 %v3632_v58  ;;  %v2060_v58 = vperm.slane %v1936_v17, 2  ;;  %v1043_v17 = vmul.f32 %v2719_v1, %v3936_v34 }
 0x754   :  { %2051 = vperm.xlu1 %2642, %v2046_v7   ;;  %v990_v7 = vrot.slane %v989_v33, 1  ;;  %v1044_v27 = vsub.f32 1.0, %v1043_v17 }
 0x756   :  { %v991_v37 = vadd.f32 %v990_v7, %v989_v33  ;;  %v1065_v7 = vsel %vm3993_vm15, %v2721_v44, %v1061_v46 }
 0x757   :  { %2644 = vset.pattern.permute.xlu0 %v3275_v20 }
 0x758   :  { %1301 = vperm.xlu0 %2644, %v3923_v25  }
 0x75a   :  { %1719 = vperm.xlu2 %2643, %v1714_v42  }
 0x75c   :  { %2072 = vperm.xlu1 %2642, %v2067_v6   ;;  %v1031_v6 = vadd.f32 %v3942_v62, %v1030_v18 }
 0x760   :  { %1304 = vperm.xlu0 %2644, %v2713_v8  }
 0x762   :  { %1733 = vperm.xlu2 %2643, %v1728_v55   ;;  %v1036_v55 = vand.u32 2147483647, %v3929_v30 }
 0x764   :  { %2646 = vset.pattern.permute.xlu1 %v3275_v20  ;;  %vm1037_vm2 = vcmp.eq.f32.partialorder %v1036_v55, 8.507059e+37 }
 0x765   :  { %v4012_v44 = vpop.f32.mrf.mxu2 }
 0x766   :  { %v1099_v39 = vrot.slane %v4012_v44, 7 }
 0x768   :  { %1307 = vperm.xlu0 %2644, %v2711_v56   ;;  %v1007_v56 = vrot.slane %v1006_v57, 4 }
 0x76a   :  { %2065 = vperm.xlu2 %2643, %v2060_v58   ;;  %v1008_v14 = vadd.f32 %v1007_v56, %v1006_v57  ;;  %v1038_v58 = vand.u32 2147483648, %v3929_v30  ;;  %v1053_v30 = vand.u32 2147483648, %v3936_v34  ;;  %v1066_v34 = vand.u32 2147483647, %v3954_v59 }
 0x76c   :  { %v1009_v42 = vrot.slane %v1008_v14, 2  ;;  %v1054_v48 = vor.u32 1.1754944e-38, %v1053_v30  ;;  %vm1067_vm1 = vcmp.eq.f32.partialorder %v1066_v34, 8.507059e+37 }
 0x76e   :  { %v1010_v38 = vadd.f32 %v1009_v42, %v1008_v14 }
 0x772   :  { %2645 = vset.pattern.permute.xlu2 %v3275_v20  ;;  %v1094_v20 = vld [vmem:[%s4302_s8 + $0x38] sm:$0xff] }
 0x773   :  { %1119 = vmatpush.msra.mxu3 %v1094_v20  ;;  %v1039_v20 = vor.u32 1.1754944e-38, %v1038_v58 }
 0x775   :  { %1120 = vmatpush.msra.mxu3 %v1093_v2  ;;  %v1045_v2 = vmul.f32 %v2719_v1, %v1044_v27 }
 0x777   :  { %1121 = vmatpush.msra.mxu3 %v1092_v22  ;;  %v1046_v57 = vadd.f32 %v2719_v1, %v1045_v2  ;;  %v1068_v22 = vand.u32 2147483648, %v3954_v59  ;;  %v1083_v59 = vand.u32 2147483648, %v3961_v15 }
 0x779   :  { %1122 = vmatpush.msra.mxu3 %v1091_v54  ;;  %v1050_v50 = vsel %vm1049_vm3, %v2719_v1, %v1046_v57  ;;  %v1011_v54 = vrot.slane %v1010_v38, 1  ;;  %v1069_v1 = vor.u32 1.1754944e-38, %v1068_v22  ;;  %v1084_v42 = vor.u32 1.1754944e-38, %v1083_v59 }
 0x77a   :  { %v1055_v32 = vsel %vm1052_vm4, %v1054_v48, %v1050_v50  ;;  %vm1082_vm3 = vcmp.eq.f32.partialorder %v1081_v5, 8.507059e+37 }
 0x77b   :  { %v1056_v56 = vmul.f32 %v1055_v32, %v998_v43  ;;  %v1012_v23 = vadd.f32 %v1011_v54, %v1010_v38  ;;  %v4015_v38 = vpop.f32.mrf.mxu1 }
 0x77c   :  { %v1100_v53 = vsel %vm652_vm6, %v1099_v39, %v4015_v38 }
 0x77d   :  { %v1131_v18 = vrot.slane %v1056_v56, 7  ;;  %v4008_v27 = vpop.f32.mrf.mxu3 }
 0x79d   :  { %v3957_v8 = vpop.xlane.xlu2 %1656 }
 0x79e   :  { %v1659_v19 = vperm.slane %v3957_v8, 0  ;;  %v1662_v14 = vperm.slane %v3957_v8, 3  ;;  %v1660_v54 = vperm.slane %v3957_v8, 1 }
 0x7a0   :  { %v1667_v9 = vsub.f32 %v3860_v26, %v1659_v19  ;;  %v1035_v26 = vsel %vm3975_vm14, %v3942_v62, %v1031_v6  ;;  %v1073_v62 = vmul.f32 %v2723_v47, %v3961_v15  ;;  %vm1078_vm14 = vweird.f32 %v2723_v47 }
 0x7a1   :  { %v1040_v51 = vsel %vm1037_vm2, %v1039_v20, %v1035_v26  ;;  %vm1079_vm2 = vmor %vm1077_vm13, %vm1078_vm14  ;;  %v1070_v6 = vsel %vm1067_vm1, %v1069_v1, %v1065_v7  ;;  %v1670_v15 = vsub.f32 %v3868_v31, %v1662_v14  ;;  %v1101_v20 = vrot.slane %v4008_v27, 6 }
 0x7a2   :  { %v1074_v3 = vsub.f32 1.0, %v1073_v62  ;;  %v1041_v16 = vmul.f32 %v1040_v51, %v991_v37  ;;  %v1671_v17 = vmul.f32 1.442695, %v1667_v9  ;;  %v1071_v58 = vmul.f32 %v1070_v6, %v1005_v10  ;;  %v1311_v37 = vpop.permute.xlu1 %1310 }
 0x7a3   :  { %v1677_v26 = vmul.f32 1.442695, %v1670_v15  ;;  %v1102_v34 = vsel %vm654_vm7, %v1101_v20, %v1100_v53  ;;  %v1668_v56 = vsub.f32 %v3864_v29, %v1660_v54 }
 0x7a4   :  { %v1075_v33 = vmul.f32 %v2723_v47, %v1074_v3  ;;  %v1132_v43 = vsel %vm652_vm6, %v1131_v18, %v1041_v16  ;;  %2724 = vpow2.f32 %v1671_v17  ;;  %v1133_v11 = vrot.slane %v1071_v58, 6 }
 0x7a5   :  { %v4020_v30 = vpop.permute.xlu2 %1368  ;;  %2726 = vpow2.f32 %v1677_v26  ;;  %v1673_v61 = vmul.f32 1.442695, %v1668_v56  ;;  %v1315_v17 = vperm.slane %v1311_v37, %v3702_v4 }
 0x7a6   :  { %v3982_v13 = vpop.xlane.xlu0 %1995  ;;  %v1076_v55 = vadd.f32 %v2723_v47, %v1075_v33  ;;  %v1134_v2 = vsel %vm654_vm7, %v1133_v11, %v1132_v43  ;;  %v1661_v11 = vperm.slane %v3957_v8, 2 }
 0x7a7   :  { %2728 = vpow2.f32 %v1673_v61  ;;  %v2000_v14 = vperm.slane %v3982_v13, 2  ;;  %v1999_v6 = vperm.slane %v3982_v13, 1  ;;  %v1166_v61 = vld [vmem:[#allocation25 + $0x8] sm:$0xff] }
 0x7a8   :  { %v1080_v9 = vsel %vm1079_vm2, %v2723_v47, %v1076_v55 }
 0x7a9   :  { %v1085_v36 = vsel %vm1082_vm3, %v1084_v42, %v1080_v9  ;;  %v2007_v15 = vsub.f32 %v3890_v21, %v1999_v6  ;;  %v1998_v21 = vperm.slane %v3982_v13, 0 }
 0x7aa   :  { %v2725_v52 = vpop.eup %2724  ;;  %v4033_v51 = vpop.permute.xlu1 %1371 }
 0x7ab   :  { %v2727_v62 = vpop.eup %2726  ;;  %v2006_v8 = vsub.f32 %v3883_v40, %v1998_v21 }
 0x7ad   :  { %v4036_v60 = vpop.permute.xlu2 %1374  ;;  %v2729_v46 = vpop.eup %2728  ;;  %v2010_v53 = vmul.f32 1.442695, %v2006_v8 }
 0x7b5   :  { %v1720_v59 = vpop.permute.xlu2 %1719 }
 0x7b6   :  { %v1713_v1 = vpop.permute.xlu1 %1712  ;;  %v4043_v16 = vmul.f32 %v2729_v46, %v1720_v59 }
 0x7b7   :  { %v4038_v3 = vmul.f32 %v2725_v52, %v1713_v1  ;;  %v1378_v1 = vperm.slane %v4033_v51, %v3702_v4 }
 0x7b9   :  { %v1330_v19 = vpop.permute.xlu0 %1329 }
 0x7ba   :  { %v4006_v24 = vmul.f32 %v3923_v25, %v1330_v19  ;;  %v1086_v25 = vmul.f32 %v1085_v36, %v1012_v23  ;;  %v2008_v23 = vsub.f32 %v3886_v41, %v2000_v14  ;;  %v2012_v36 = vmul.f32 1.442695, %v2007_v15 }
 0x7bc   :  { %1365 = vperm.xlu0 %2644, %v4006_v24   ;;  %v1135_v47 = vrot.slane %v1086_v25, 5  ;;  %v2014_v9 = vmul.f32 1.442695, %v2008_v23  ;;  %v1669_v25 = vsub.f32 %v3872_v35, %v1661_v11  ;;  %v2001_v35 = vperm.slane %v3982_v13, 3  ;;  %v1168_v13 = vld [vmem:[#allocation25 + $0x18] sm:$0xff] }
 0x7bd   :  { %v1734_v55 = vpop.permute.xlu2 %1733  ;;  %1188 = vmatpush.msrb.mxu1 %v1168_v13 }
 0x7be   :  { %v1136_v50 = vsel %vm656_vm8, %v1135_v47, %v1134_v2  ;;  %v4055_v43 = vmul.f32 %v2727_v62, %v1734_v55  ;;  %2730 = vpow2.f32 %v2014_v9  ;;  %v1675_v2 = vmul.f32 1.442695, %v1669_v25  ;;  %v1727_v39 = vpop.permute.xlu1 %1726 }
 0x7bf   :  { %2537 = vmatmul.msk.f32.vlgmr.msrb.gmra.mxu0 %vm408_vm0, %v1136_v50  ;;  %2732 = vpow2.f32 %v2012_v36 }
 0x7c0   :  { %2734 = vpow2.f32 %v1675_v2 }
 0x7c1   :  { %v4022_v57 = vpop.f32.mrf.mxu0  ;;  %v2059_v31 = vpop.permute.xlu0 %2058  ;;  %2736 = vpow2.f32 %v2010_v53 }
 0x7c2   :  { %v1103_v48 = vrot.slane %v4022_v57, 5 }
 0x7c4   :  { %1684 = vperm.xlu0 %2644, %v2725_v52   ;;  %v1104_v22 = vsel %vm656_vm8, %v1103_v48, %v1102_v34  ;;  %v2731_v41 = vpop.eup %2730 }
 0x7c5   :  { %2536 = vmatmul.msk.f32.vlgmr.msra.gmra.mxu3 %vm408_vm0, %v1104_v22  ;;  %v2733_v37 = vpop.eup %2732  ;;  %v2066_v23 = vpop.permute.xlu2 %2065 }
 0x7c6   :  { %v4061_v20 = vmul.f32 %v2733_v37, %v2059_v31  ;;  %v2735_v47 = vpop.eup %2734  ;;  %v2009_v31 = vsub.f32 %v3888_v45, %v2001_v35  ;;  %v2052_v48 = vpop.permute.xlu1 %2051  ;;  %v1377_v45 = vperm.slane %v4020_v30, %v3702_v4 }
 0x7c7   :  { %v4065_v26 = vmul.f32 %v2735_v47, %v1727_v39  ;;  %v2737_v52 = vpop.eup %2736 }
 0x7c8   :  { %v2016_v50 = vmul.f32 1.442695, %v2009_v31  ;;  %v4071_v34 = vmul.f32 %v2737_v52, %v2052_v48 }
 0x7ca   :  { %v1302_v32 = vpop.permute.xlu0 %1301  ;;  %2738 = vpow2.f32 %v2016_v50 }
 0x7cb   :  { %v1312_v29 = vperm.slane %v1302_v32, %v3702_v4  ;;  %v1167_v32 = vld [vmem:[#allocation25 + $0x10] sm:$0xff] }
 0x7cc   :  { %1693 = vperm.xlu0 %2644, %v2727_v62   ;;  %1189 = vmatpush.msrb.mxu1 %v1167_v32 }
 0x7ce   :  { %v2073_v22 = vpop.permute.xlu1 %2072  ;;  %1190 = vmatpush.msrb.mxu1 %v1166_v61 }
 0x7d0   :  { %v2739_v54 = vpop.eup %2738 }
 0x7d1   :  { %v4074_v40 = vmul.f32 %v2739_v54, %v2073_v22 }
 0x7d2   :  { %v1305_v5 = vpop.permute.xlu0 %1304 }
 0x7d3   :  { %v1313_v10 = vperm.slane %v1305_v5, %v3702_v4  ;;  %v1379_v5 = vperm.slane %v4036_v60, %v3702_v4 }
 0x7d4   :  { %1748 = vperm.xlu0 %2644, %v4038_v3  }
 0x7d5   :  { %v1316_v19 = vsel %vm652_vm6, %v1313_v10, %v1312_v29  ;;  %v1165_v10 = vld [vmem:[#allocation25] sm:$0xff] }
 0x7d6   :  { %1191 = vmatpush.msrb.mxu1 %v1165_v10 }
 0x7da   :  { %v1308_v33 = vpop.permute.xlu0 %1307 }
 0x7db   :  { %v1314_v18 = vperm.slane %v1308_v33, %v3702_v4  ;;  %v2654_v33 = vld [vmem:[%s4307_s21] ss:$0 sm:$0xff] }
 0x7dc   :  { %1751 = vperm.xlu0 %2644, %v4043_v16  }
 0x7dd   :  { %v1317_v7 = vsel %vm654_vm7, %v1314_v18, %v1316_v19 }
 0x7de   :  { %v1318_v42 = vsel %vm656_vm8, %v1315_v17, %v1317_v7  ;;  %v4090_v7 = vmul.f32 %v2731_v41, %v2066_v23 }
 0x7df   :  { %v1320_v58 = vsel %vm659_vm9, %v1318_v42, 0.0 }
 0x7e0   :  { %1321 = vadd.xlane.f32.xlu2 %v1320_v58 }
 0x7e4   :  { %1757 = vperm.xlu0 %2644, %v4055_v43  }
 0x7ec   :  { %2029 = vperm.xlu0 %2644, %v2731_v41  }
 0x7f4   :  { %2090 = vperm.xlu0 %2644, %v4061_v20  }
 0x7f8   :  { %1687 = vperm.xlu2 %2645, %v2729_v46  }
 0x800   :  { %1754 = vperm.xlu2 %2645, %v4065_v26  }
 0x808   :  { %2026 = vperm.xlu2 %2645, %v2733_v37  }
 0x810   :  { %2087 = vperm.xlu2 %2645, %v4071_v34  }
 0x818   :  { %2096 = vperm.xlu2 %2645, %v4074_v40  }
 0x82e   :  { %v1366_v62 = vpop.permute.xlu0 %1365 }
 0x82f   :  { %v1376_v56 = vperm.slane %v1366_v62, %v3702_v4 }
 0x831   :  { %v1380_v59 = vsel %vm652_vm6, %v1377_v45, %v1376_v56 }
 0x832   :  { %v1381_v46 = vsel %vm654_vm7, %v1378_v1, %v1380_v59 }
 0x833   :  { %v1382_v14 = vsel %vm656_vm8, %v1379_v5, %v1381_v46 }
 0x834   :  { %v1384_v30 = vsel %vm659_vm9, %v1382_v14, 0.0 }
 0x835   :  { %1385 = vadd.xlane.f32.xlu1 %v1384_v30 }
 0x836   :  { %v1685_v60 = vpop.permute.xlu0 %1684 }
 0x837   :  { %v1695_v62 = vperm.slane %v1685_v60, %v3702_v4 }
 0x83c   :  { %v1156_v29 = vpop.f32.mrf.mxu0 }
 0x83e   :  { %v1694_v42 = vpop.permute.xlu0 %1693 }
 0x83f   :  { %v1698_v61 = vperm.slane %v1694_v42, %v3702_v4 }
 0x846   :  { %v1749_v55 = vpop.permute.xlu0 %1748 }
 0x847   :  { %v1759_v25 = vperm.slane %v1749_v55, %v3702_v4 }
 0x848   :  { %v1124_v18 = vpop.f32.mrf.mxu3 }
 0x849   :  { %v1157_v51 = vadd.f32 %v1156_v29, %v1124_v18 }
 0x84b   :  { %v1163_v17 = vadd.f32 %v2654_v33, %v1157_v51 }
 0x84d   :  { %v1164_v19 = vmax.f32 %v1163_v17, 0.0 }
 0x84e   :  { %1690 = vperm.xlu1 %2646, %v2735_v47   ;;  %v1752_v9 = vpop.permute.xlu0 %1751 }
 0x84f   :  { %2538 = vmatmul.msk.f32.vlgmr.msrb.gmra.mxu1 %vm408_vm0, %v1164_v19  ;;  %v1760_v36 = vperm.slane %v1752_v9, %v3702_v4 }
 0x851   :  { %v1763_v2 = vsel %vm652_vm6, %v1760_v36, %v1759_v25 }
 0x853   :  { %v1322_v6 = vpop.xlane.xlu2 %1321 }
 0x854   :  { %v1387_v8 = vmul.f32 1e-10, %v1322_v6 }
 0x856   :  { %2023 = vperm.xlu1 %2646, %v2737_v52   ;;  %v1758_v37 = vpop.permute.xlu0 %1757 }
 0x857   :  { %v1762_v21 = vperm.slane %v1758_v37, %v3702_v4 }
 0x85b   :  { %v1688_v58 = vpop.permute.xlu2 %1687 }
 0x85c   :  { %v1696_v32 = vperm.slane %v1688_v58, %v3702_v4 }
 0x85e   :  { %2032 = vperm.xlu1 %2646, %v2739_v54   ;;  %v1699_v1 = vsel %vm652_vm6, %v1696_v32, %v1695_v62  ;;  %v2030_v10 = vpop.permute.xlu0 %2029 }
 0x85f   :  { %v2036_v36 = vperm.slane %v2030_v10, %v3702_v4 }
 0x863   :  { %v1755_v15 = vpop.permute.xlu2 %1754 }
 0x864   :  { %v1761_v11 = vperm.slane %v1755_v15, %v3702_v4 }
 0x866   :  { %2093 = vperm.xlu1 %2646, %v4090_v7   ;;  %v1764_v41 = vsel %vm654_vm7, %v1761_v11, %v1763_v2  ;;  %v2091_v30 = vpop.permute.xlu0 %2090 }
 0x867   :  { %v1765_v39 = vsel %vm656_vm8, %v1762_v21, %v1764_v41  ;;  %v2099_v18 = vperm.slane %v2091_v30, %v3702_v4  ;;  %v1403_v21 = vld [vmem:[#allocation2] sm:$0xff] }
 0x868   :  { %v1767_v47 = vsel %vm659_vm9, %v1765_v39, 0.0  ;;  %1429 = vmatpush.msrb.mxu2 %v1403_v21  ;;  %v1522_v39 = vld [vmem:[%s4308_s14 + $0x38] sm:$0xff] }
 0x86a   :  { %1535 = vmatpush.msra.mxu2 %v1522_v39 }
 0x890   :  { %1768 = vadd.xlane.f32.xlu1 %v1767_v47  ;;  %v1521_v47 = vld [vmem:[%s4308_s14 + $0x30] sm:$0xff] }
 0x891   :  { %1536 = vmatpush.msra.mxu2 %v1521_v47 }
 0x8a8   :  { %v1386_v35 = vpop.xlane.xlu1 %1385 }
 0x8a9   :  { %v1388_v53 = vadd.f32 %v1387_v8, %v1386_v35  ;;  %v1520_v8 = vld [vmem:[%s4308_s14 + $0x28] sm:$0xff] }
 0x8aa   :  { %1537 = vmatpush.msra.mxu2 %v1520_v8  ;;  %v1404_v35 = vld [vmem:[#allocation2 + $0x8] sm:$0xff]  ;;  %v2125_v8 = vld [vmem:[#allocation7] sm:$0xff] }
 0x8ab   :  { %2740 = vrcp.f32 %v1388_v53  ;;  %v1519_v53 = vld [vmem:[%s4308_s14 + $0x20] sm:$0xff]  ;;  %1456 = vmatpush.msrb.mxu3 %v1404_v35  ;;  %v2276_v35 = vld [vmem:[%s4310_s0 + $0x58] sm:$0xff] }
 0x8ac   :  { %1538 = vmatpush.msra.mxu2 %v1519_v53  ;;  %v2275_v53 = vld [vmem:[%s4310_s0 + $0x50] sm:$0xff] }
 0x8b1   :  { %v2741_v31 = vpop.eup %2740 }
 0x8b2   :  { %v1394_v48 = vperm.slane %v2741_v31, 3  ;;  %v1391_v50 = vperm.slane %v2741_v31, 0  ;;  %v1392_v54 = vperm.slane %v2741_v31, 1  ;;  %v1393_v2 = vperm.slane %v2741_v31, 2  ;;  %v1517_v31 = vld [vmem:[%s4308_s14 + $0x10] sm:$0xff] }
 0x8b4   :  { %v1402_v52 = vmul.f32 %v1394_v48, %v3918_v28  ;;  %v1399_v22 = vmul.f32 %v1391_v50, %v4006_v24  ;;  %v1400_v13 = vmul.f32 %v1392_v54, %v3910_v12  ;;  %v2027_v28 = vpop.permute.xlu2 %2026  ;;  %v1401_v41 = vmul.f32 %v1393_v2, %v3905_v63  ;;  %v1518_v48 = vld [vmem:[%s4308_s14 + $0x18] sm:$0xff]  ;;  %v1516_v63 = vld [vmem:[%s4308_s14 + $0x8] sm:$0xff]  ;;  %v1515_v50 = vld [vmem:[%s4308_s14] sm:$0xff] }
 0x8b5   :  { %v2035_v55 = vperm.slane %v2027_v28, %v3702_v4  ;;  %1558 = vmatpush.msra.mxu3 %v1518_v48  ;;  %v2127_v2 = vld [vmem:[#allocation7 + $0x10] sm:$0xff] }
 0x8b6   :  { %1490 = vperm.xlu1 %2646, %v1402_v52   ;;  %1409 = vperm.xlu2 %2645, %v1399_v22   ;;  %v1406_v52 = vld [vmem:[#allocation2 + $0x18] sm:$0xff] }
 0x8b7   :  { %1559 = vmatpush.msra.mxu3 %v1517_v31  ;;  %1510 = vmatpush.msra.mxu1 %v1406_v52  ;;  %v2274_v52 = vld [vmem:[%s4310_s0 + $0x48] sm:$0xff] }
 0x8b9   :  { %1560 = vmatpush.msra.mxu3 %v1516_v63 }
 0x8bb   :  { %1561 = vmatpush.msra.mxu3 %v1515_v50 }
 0x8bc   :  { %v2088_v46 = vpop.permute.xlu2 %2087 }
 0x8bd   :  { %v2098_v29 = vperm.slane %v2088_v46, %v3702_v4  ;;  %v1405_v46 = vld [vmem:[#allocation2 + $0x10] sm:$0xff] }
 0x8be   :  { %1436 = vperm.xlu2 %2645, %v1400_v13   ;;  %1483 = vmatpush.msra.mxu0 %v1405_v46 }
 0x8bf   :  { %v2102_v19 = vsel %vm652_vm6, %v2099_v18, %v2098_v29 }
 0x8c0   :  { %v1691_v45 = vpop.permute.xlu1 %1690 }
 0x8c1   :  { %v1697_v56 = vperm.slane %v1691_v45, %v3702_v4  ;;  %v393_v45 = vld [vmem:[%s4309_s2] sm:$0xf] }
 0x8c3   :  { %v1700_v24 = vsel %vm654_vm7, %v1697_v56, %v1699_v1 }
 0x8c4   :  { %v1701_v5 = vsel %vm656_vm8, %v1698_v61, %v1700_v24  ;;  %v2097_v33 = vpop.permute.xlu2 %2096 }
 0x8c5   :  { %v1703_v59 = vsel %vm659_vm9, %v1701_v5, 0.0  ;;  %v2101_v60 = vperm.slane %v2097_v33, %v3702_v4 }
 0x8c6   :  { %1704 = vadd.xlane.f32.xlu0 %v1703_v59 }
 0x8c8   :  { %v2024_v12 = vpop.permute.xlu1 %2023 }
 0x8c9   :  { %v2034_v23 = vperm.slane %v2024_v12, %v3702_v4 }
 0x8cb   :  { %v2038_v9 = vsel %vm652_vm6, %v2035_v55, %v2034_v23 }
 0x8cc   :  { %v2039_v11 = vsel %vm654_vm7, %v2036_v36, %v2038_v9  ;;  %v1788_v36 = vld [vmem:[#allocation5 + $0x10] sm:$0xff] }
 0x8d0   :  { %v2033_v14 = vpop.permute.xlu1 %2032 }
 0x8d1   :  { %v2037_v15 = vperm.slane %v2033_v14, %v3702_v4 }
 0x8d3   :  { %v2040_v25 = vsel %vm656_vm8, %v2037_v15, %v2039_v11 }
 0x8d4   :  { %v2042_v37 = vsel %vm659_vm9, %v2040_v25, 0.0 }
 0x8d8   :  { %v2094_v51 = vpop.permute.xlu1 %2093 }
 0x8d9   :  { %v2100_v17 = vperm.slane %v2094_v51, %v3702_v4 }
 0x8db   :  { %v2103_v42 = vsel %vm654_vm7, %v2100_v17, %v2102_v19 }
 0x8dc   :  { %v2104_v6 = vsel %vm656_vm8, %v2101_v60, %v2103_v42 }
 0x8dd   :  { %v2106_v58 = vsel %vm659_vm9, %v2104_v6, 0.0 }
 0x8de   :  { %2107 = vadd.xlane.f32.xlu0 %v2106_v58 }
 0x8e7   :  { %2043 = vadd.xlane.f32.xlu2 %v2042_v37  ;;  %v1787_v37 = vld [vmem:[#allocation5 + $0x8] sm:$0xff] }
 0x8e8   :  { %1839 = vmatpush.msrb.mxu1 %v1787_v37  ;;  %v2655_v37 = vld [vmem:[%s3467_s5] ss:$0 sm:$0xff]  ;;  %s4313_s5 = sld [smem:[#allocation51_spill]] }
 0x8f2   :  { %1463 = vperm.xlu0 %2644, %v1401_v41  }
 0x903   :  { %v1769_v62 = vpop.xlane.xlu1 %1768 }
 0x910   :  { %v1410_v22 = vpop.permute.xlu2 %1409 }
 0x911   :  { %v1411_v54 = vperm.slane %v1410_v22, %v3702_v4  ;;  %v2273_v22 = vld [vmem:[%s4310_s0 + $0x40] sm:$0xff] }
 0x913   :  { %2539 = vmatmul.msk.f32.vlgmr.msrb.gmra.mxu2 %vm800_vm11, %v1411_v54 }
 0x914   :  { %1866 = vmatpush.msrb.mxu2 %v1788_v36  ;;  %v2240_v36 = vld [vmem:[#allocation22 + $0x18] sm:$0xff] }
 0x918   :  { %v1437_v13 = vpop.permute.xlu2 %1436 }
 0x919   :  { %v1438_v32 = vperm.slane %v1437_v13, %v3702_v4 }
 0x91b   :  { %2540 = vmatmul.msk.f32.vlgmr.msrb.gmra.mxu3 %vm800_vm11, %v1438_v32  ;;  %2543 = vmatmul.msk.f32.vlgmr.msra.gmra.mxu2 %vm408_vm0, %v3638_v0 }
 0x91c   :  { %2205 = vmatpush.msra.mxu2 %v2127_v2 }
 0x923   :  { %2544 = vmatmul.msk.f32.vlgmr.msra.gmra.mxu3 %vm408_vm0, %v393_v45 }
 0x928   :  { %v1491_v56 = vpop.permute.xlu1 %1490 }
 0x929   :  { %v1492_v61 = vperm.slane %v1491_v56, %v3702_v4 }
 0x92b   :  { %2542 = vmatmul.msk.f32.vlgmr.msra.gmra.mxu1 %vm800_vm11, %v1492_v61  ;;  %v952_v61 = vpop.f32.mrf.mxu2 }
 0x939   :  { %v1705_v1 = vpop.xlane.xlu0 %1704 }
 0x93a   :  { %v1770_v28 = vmul.f32 1e-10, %v1705_v1 }
 0x93c   :  { %v1771_v24 = vadd.f32 %v1770_v28, %v1769_v62 }
 0x93e   :  { %2742 = vrcp.f32 %v1771_v24 }
 0x944   :  { %v2743_v5 = vpop.eup %2742 }
 0x945   :  { %v1777_v59 = vperm.slane %v2743_v5, 3  ;;  %v1776_v12 = vperm.slane %v2743_v5, 2  ;;  %v1775_v10 = vperm.slane %v2743_v5, 1  ;;  %v1774_v33 = vperm.slane %v2743_v5, 0 }
 0x947   :  { %v1785_v14 = vmul.f32 %v1777_v59, %v4055_v43  ;;  %v1784_v30 = vmul.f32 %v1776_v12, %v4065_v26  ;;  %v1783_v29 = vmul.f32 %v1775_v10, %v4043_v16  ;;  %v1782_v18 = vmul.f32 %v1774_v33, %v4038_v3  ;;  %v2656_v12 = vld [vmem:[%s4311_s30] ss:$0 sm:$0xff]  ;;  %v929_v10 = vpop.f32.mrf.mxu1 }
 0x948   :  { %v953_v46 = vadd.f32 %v952_v61, %v929_v10 }
 0x949   :  { %1873 = vperm.xlu1 %2646, %v1785_v14   ;;  %1846 = vperm.xlu2 %2645, %v1784_v30   ;;  %v2653_v14 = vld [vmem:[%s4312_s11] ss:$0 sm:$0xff] }
 0x94a   :  { %1819 = vperm.xlu0 %2644, %v1783_v29   ;;  %v959_v29 = vadd.f32 %v2653_v14, %v953_v46 }
 0x94c   :  { %v960_v33 = vmax.f32 %v959_v29, 0.0 }
 0x951   :  { %1792 = vperm.xlu1 %2646, %v1782_v18   ;;  %v2108_v19 = vpop.xlane.xlu0 %2107 }
 0x95a   :  { %v2044_v51 = vpop.xlane.xlu2 %2043 }
 0x95b   :  { %v2109_v17 = vmul.f32 1e-10, %v2044_v51  ;;  %v2535_v51 = vmul.f32 -1.442695, %v960_v33 }
 0x95d   :  { %v2110_v60 = vadd.f32 %v2109_v17, %v2108_v19 }
 0x95f   :  { %2744 = vrcp.f32 %v2110_v60 }
 0x964   :  { %v1464_v23 = vpop.permute.xlu0 %1463 }
 0x965   :  { %v2745_v42 = vpop.eup %2744  ;;  %v1465_v43 = vperm.slane %v1464_v23, %v3702_v4 }
 0x966   :  { %v2114_v6 = vperm.slane %v2745_v42, 1  ;;  %v2115_v26 = vperm.slane %v2745_v42, 2  ;;  %v2116_v55 = vperm.slane %v2745_v42, 3  ;;  %v2113_v9 = vperm.slane %v2745_v42, 0 }
 0x967   :  { %2541 = vmatmul.msk.f32.vlgmr.msra.gmra.mxu0 %vm800_vm11, %v1465_v43 }
 0x968   :  { %v2122_v16 = vmul.f32 %v2114_v6, %v4061_v20  ;;  %v2123_v58 = vmul.f32 %v2115_v26, %v4090_v7  ;;  %v2124_v3 = vmul.f32 %v2116_v55, %v4074_v40  ;;  %v2121_v15 = vmul.f32 %v2113_v9, %v4071_v34  ;;  %v1789_v20 = vld [vmem:[#allocation5 + $0x18] sm:$0xff]  ;;  %v1786_v7 = vld [vmem:[#allocation5] sm:$0xff]  ;;  %v2126_v40 = vld [vmem:[#allocation7 + $0x8] sm:$0xff] }
 0x969   :  { %1893 = vmatpush.msrb.mxu3 %v1789_v20  ;;  %1812 = vmatpush.msrb.mxu0 %v1786_v7  ;;  %v2128_v34 = vld [vmem:[#allocation7 + $0x18] sm:$0xff] }
 0x96a   :  { %2158 = vperm.xlu2 %2645, %v2122_v16   ;;  %2185 = vperm.xlu0 %2644, %v2123_v58   ;;  %v2272_v55 = vld [vmem:[%s4310_s0 + $0x38] sm:$0xff]  ;;  %v2271_v16 = vld [vmem:[%s4310_s0 + $0x30] sm:$0xff]  ;;  %v2270_v58 = vld [vmem:[%s4310_s0 + $0x28] sm:$0xff] }
 0x96b   :  { %2212 = vperm.xlu1 %2646, %v2124_v3   ;;  %2178 = vmatpush.msra.mxu1 %v2126_v40  ;;  %v1193_v40 = vpop.f32.mrf.mxu1 }
 0x96c   :  { %2232 = vmatpush.msra.mxu3 %v2128_v34  ;;  %2151 = vmatpush.msra.mxu0 %v2125_v8 }
 0x972   :  { %2131 = vperm.xlu0 %2644, %v2121_v15   ;;  %v2269_v15 = vld [vmem:[%s4310_s0 + $0x20] sm:$0xff] }
 0x996   :  { %v4181_v28 = vpop.f32.mrf.mxu2 }
 0x99e   :  { %v4179_v1 = vpop.f32.mrf.mxu3  ;;  %v1540_v5 = vpop.f32.mrf.mxu2 }
 0x9a3   :  { %v1847_v11 = vpop.permute.xlu2 %1846 }
 0x9a4   :  { %v1848_v25 = vperm.slane %v1847_v11, %v3702_v4  ;;  %v2239_v11 = vld [vmem:[#allocation22 + $0x10] sm:$0xff] }
 0x9a6   :  { %2548 = vmatmul.msk.f32.vlgmr.msrb.gmra.mxu2 %vm800_vm11, %v1848_v25  ;;  %v1563_v24 = vpop.f32.mrf.mxu3  ;;  %v2268_v25 = vld [vmem:[%s4310_s0 + $0x18] sm:$0xff] }
 0x9a7   :  { %v1564_v59 = vadd.f32 %v1563_v24, %v1540_v5  ;;  %2334 = vmatpush.msrb.mxu2 %v2272_v55  ;;  %v2267_v55 = vld [vmem:[%s4310_s0 + $0x10] sm:$0xff] }
 0x9a9   :  { %v1570_v30 = vadd.f32 %v2656_v12, %v1564_v59  ;;  %2335 = vmatpush.msrb.mxu2 %v2271_v16 }
 0x9ab   :  { %2336 = vmatpush.msrb.mxu2 %v2270_v58 }
 0x9ad   :  { %2337 = vmatpush.msrb.mxu2 %v2269_v15  ;;  %v2265_v15 = vld [vmem:[%s4310_s0] sm:$0xff] }
 0x9bb   :  { %v1874_v41 = vpop.permute.xlu1 %1873 }
 0x9bc   :  { %v1820_v21 = vpop.permute.xlu0 %1819  ;;  %v1875_v39 = vperm.slane %v1874_v41, %v3702_v4  ;;  %v1194_v41 = vadd.f32 %v2655_v37, %v1193_v40  ;;  %v399_v37 = vld [vmem:[#allocation19 + $0x4] sm:$0xf] }
 0x9bd   :  { %v1821_v47 = vperm.slane %v1820_v21, %v3702_v4  ;;  %2385 = vrot.lane.b32.xlu2 %v399_v37, %s3273_s29 }
 0x9be   :  { %2549 = vmatmul.msk.f32.vlgmr.msrb.gmra.mxu3 %vm800_vm11, %v1875_v39  ;;  %v1204_v29 = vadd.f32 %v1194_v41, %v4015_v38 }
 0x9bf   :  { %2547 = vmatmul.msk.f32.vlgmr.msrb.gmra.mxu1 %vm800_vm11, %v1821_v47  ;;  %2355 = vmatpush.msrb.mxu3 %v2276_v35 }
 0x9c0   :  { %2301 = vmatpush.msrb.mxu1 %v2268_v25  ;;  %v2762_v25 = vld [vmem:[#allocation17 + $0x4] sm:$0xf] }
 0x9c1   :  { %2356 = vmatpush.msrb.mxu3 %v2275_v53 }
 0x9c2   :  { %2302 = vmatpush.msrb.mxu1 %v2267_v55 }
 0x9c3   :  { %v1793_v48 = vpop.permute.xlu1 %1792  ;;  %2357 = vmatpush.msrb.mxu3 %v2274_v52  ;;  %v1198_v52 = vrot.slane %v1194_v41, 2 }
 0x9c4   :  { %v1794_v31 = vperm.slane %v1793_v48, %v3702_v4  ;;  %v2159_v63 = vpop.permute.xlu2 %2158 }
 0x9c5   :  { %v2160_v50 = vperm.slane %v2159_v63, %v3702_v4  ;;  %2358 = vmatpush.msrb.mxu3 %v2273_v22  ;;  %v1512_v63 = vpop.f32.mrf.mxu1  ;;  %v1206_v61 = vadd.f32 %v1198_v52, %v4008_v27 }
 0x9c6   :  { %2546 = vmatmul.msk.f32.vlgmr.msrb.gmra.mxu0 %vm800_vm11, %v1794_v31  ;;  %v1197_v31 = vrot.slane %v1194_v41, 1 }
 0x9c7   :  { %2551 = vmatmul.msk.f32.vlgmr.msra.gmra.mxu1 %vm800_vm11, %v2160_v50  ;;  %2257 = vmatpush.msrb.mxu0 %v2240_v36 }
 0x9c9   :  { %2258 = vmatpush.msrb.mxu0 %v2239_v11 }
 0x9dc   :  { %v2186_v54 = vpop.permute.xlu0 %2185 }
 0x9dd   :  { %v2187_v13 = vperm.slane %v2186_v54, %v3702_v4  ;;  %v2213_v32 = vpop.permute.xlu1 %2212  ;;  %v1199_v54 = vrot.slane %v1194_v41, 3 }
 0x9de   :  { %v2214_v62 = vperm.slane %v2213_v32, %v3702_v4 }
 0x9df   :  { %2552 = vmatmul.msk.f32.vlgmr.msra.gmra.mxu2 %vm800_vm11, %v2187_v13  ;;  %v1207_v59 = vadd.f32 %v1199_v54, %v4022_v57 }
 0x9e0   :  { %2553 = vmatmul.msk.f32.vlgmr.msra.gmra.mxu3 %vm800_vm11, %v2214_v62 }
 0x9e4   :  { %v2132_v45 = vpop.permute.xlu0 %2131  ;;  %v1485_v62 = vpop.f32.mrf.mxu0 }
 0x9e5   :  { %v2133_v56 = vperm.slane %v2132_v45, %v3702_v4  ;;  %v1571_v4 = vmax.f32 %v1570_v30, 0.0  ;;  %v1205_v45 = vadd.f32 %v1197_v31, %v4012_v44 }
 0x9e7   :  { %2550 = vmatmul.msk.f32.vlgmr.msra.gmra.mxu0 %vm800_vm11, %v2133_v56  ;;  %v2545_v18 = vmul.f32 -1.442695, %v1571_v4 }
 0x9e8   :  { %2557 = vmatmul.msk.f32.vlgmr.msrb.gmra.mxu3 %vm408_vm0, %v3638_v0 }
 0x9e9   :  { %2746 = vpow2.f32 %v2545_v18 }
 0x9ea   :  { %2748 = vpow2.f32 %v2535_v51 }
 0x9ef   :  { %v2747_v0 = vpop.eup %2746 }
 0x9f0   :  { %v1575_v17 = vadd.f32 1.0, %v2747_v0  ;;  %v2749_v19 = vpop.eup %2748 }
 0x9f1   :  { %v964_v60 = vadd.f32 1.0, %v2749_v19 }
 0x9f2   :  { %2750 = vrcp.f32 %v1575_v17  ;;  %v1587_v2 = vand.u32 2147483648, %v1575_v17  ;;  %vm1581_vm11 = vweird.f32 %v1575_v17  ;;  %v1585_v34 = vand.u32 2147483647, %v1575_v17 }
 0x9f3   :  { %2752 = vrcp.f32 %v964_v60  ;;  %v976_v8 = vand.u32 2147483648, %v964_v60  ;;  %vm970_vm13 = vweird.f32 %v964_v60  ;;  %v974_v35 = vand.u32 2147483647, %v964_v60 }
 0x9f4   :  { %v1588_v47 = vor.u32 1.1754944e-38, %v1587_v2  ;;  %vm1586_vm12 = vcmp.eq.f32.partialorder %v1585_v34, 8.507059e+37 }
 0x9f5   :  { %v977_v50 = vor.u32 1.1754944e-38, %v976_v8  ;;  %vm975_vm15 = vcmp.eq.f32.partialorder %v974_v35, 8.507059e+37  ;;  %v2657_v35 = vld [vmem:[%s4313_s5] ss:$0 sm:$0xff] }
 0x9f8   :  { %v2751_v23 = vpop.eup %2750 }
 0x9f9   :  { %v1577_v42 = vmul.f32 %v2751_v23, %v1575_v17  ;;  %v2753_v43 = vpop.eup %2752  ;;  %vm1582_vm9 = vweird.f32 %v2751_v23 }
 0x9fa   :  { %v966_v6 = vmul.f32 %v2753_v43, %v964_v60  ;;  %vm1583_vm4 = vmor %vm1581_vm11, %vm1582_vm9  ;;  %vm971_vm10 = vweird.f32 %v2753_v43 }
 0x9fb   :  { %v1578_v26 = vsub.f32 1.0, %v1577_v42  ;;  %vm972_vm14 = vmor %vm970_vm13, %vm971_vm10 }
 0x9fc   :  { %v967_v3 = vsub.f32 1.0, %v966_v6 }
 0x9fd   :  { %v1579_v9 = vmul.f32 %v2751_v23, %v1578_v26  ;;  %v2238_v26 = vld [vmem:[#allocation22 + $0x8] sm:$0xff] }
 0x9fe   :  { %v968_v7 = vmul.f32 %v2753_v43, %v967_v3  ;;  %2259 = vmatpush.msrb.mxu0 %v2238_v26  ;;  %v2237_v3 = vld [vmem:[#allocation22] sm:$0xff] }
 0x9ff   :  { %v1580_v20 = vadd.f32 %v2751_v23, %v1579_v9  ;;  %v2266_v9 = vld [vmem:[%s4310_s0 + $0x8] sm:$0xff] }
 0xa00   :  { %v969_v39 = vadd.f32 %v2753_v43, %v968_v7  ;;  %2260 = vmatpush.msrb.mxu0 %v2237_v3  ;;  %2303 = vmatpush.msrb.mxu1 %v2266_v9 }
 0xa01   :  { %v1584_v21 = vsel %vm1583_vm4, %v2751_v23, %v1580_v20  ;;  %2554 = vmatmul.msk.f32.vlgmr.msrb.gmra.mxu0 %vm408_vm0, %v2762_v25 }
 0xa02   :  { %v1589_v53 = vsel %vm1586_vm12, %v1588_v47, %v1584_v21  ;;  %v973_v48 = vsel %vm972_vm14, %v2753_v43, %v969_v39  ;;  %2304 = vmatpush.msrb.mxu1 %v2265_v15 }
 0xa03   :  { %v1911_v22 = vrot.slane %v1589_v53, 1  ;;  %v978_v13 = vsel %vm975_vm15, %v977_v50, %v973_v48  ;;  %v1913_v32 = vrot.slane %v1589_v53, 3  ;;  %v1912_v56 = vrot.slane %v1589_v53, 2 }
 0xa04   :  { %v1899_v24 = vrot.slane %v978_v13, 1  ;;  %v1900_v10 = vrot.slane %v978_v13, 2  ;;  %v1901_v30 = vrot.slane %v978_v13, 3  ;;  %v1918_v27 = vmul.f32 %v1589_v53, %v4181_v28 }
 0xa05   :  { %v1919_v5 = vmul.f32 %v1911_v22, %v4179_v1  ;;  %v1920_v12 = vmul.f32 %v1912_v56, %v1485_v62  ;;  %v1921_v46 = vmul.f32 %v1913_v32, %v1512_v63  ;;  %v1906_v19 = vmul.f32 %v1204_v29, %v978_v13 }
 0xa06   :  { %v1907_v14 = vmul.f32 %v1899_v24, %v1205_v45  ;;  %v1908_v4 = vmul.f32 %v1900_v10, %v1206_v61  ;;  %v1909_v51 = vmul.f32 %v1901_v30, %v1207_v59 }
 0xa07   :  { %v1922_v42 = vadd.f32 %v1918_v27, %v1906_v19 }
 0xa08   :  { %v1923_v44 = vadd.f32 %v1919_v5, %v1907_v14  ;;  %v1924_v0 = vadd.f32 %v1920_v12, %v1908_v4  ;;  %v1925_v1 = vadd.f32 %v1921_v46, %v1909_v51 }
 0xa29   :  { %v1868_v18 = vpop.f32.mrf.mxu2 }
 0xa2a   :  { %v1928_v57 = vadd.f32 %v1924_v0, %v1868_v18 }
 0xa2c   :  { %v2316_v16 = vrot.slane %v1928_v57, 6 }
 0xa3c   :  { %v1841_v33 = vpop.f32.mrf.mxu1 }
 0xa3d   :  { %v1927_v17 = vadd.f32 %v1923_v44, %v1841_v33  ;;  %v2386_v33 = vpop.permute.xlu2 %2385 }
 0xa3f   :  { %v2314_v38 = vrot.slane %v1927_v17, 7 }
 0xa41   :  { %v1895_v60 = vpop.f32.mrf.mxu3 }
 0xa42   :  { %v1929_v23 = vadd.f32 %v1925_v1, %v1895_v60 }
 0xa43   :  { %v1814_v43 = vpop.f32.mrf.mxu0 }
 0xa44   :  { %v1926_v6 = vadd.f32 %v1922_v42, %v1814_v43  ;;  %v2318_v58 = vrot.slane %v1929_v23, 5  ;;  %v2180_v20 = vpop.f32.mrf.mxu1 }
 0xa45   :  { %v2281_v40 = vrot.slane %v2180_v20, 7 }
 0xa46   :  { %v2315_v28 = vsel %vm652_vm6, %v2314_v38, %v1926_v6 }
 0xa47   :  { %v2317_v36 = vsel %vm654_vm7, %v2316_v16, %v2315_v28 }
 0xa48   :  { %v2319_v11 = vsel %vm656_vm8, %v2318_v58, %v2317_v36 }
 0xa49   :  { %2556 = vmatmul.msk.f32.vlgmr.msrb.gmra.mxu2 %vm408_vm0, %v2319_v11 }
 0xa62   :  { %v2207_v7 = vpop.f32.mrf.mxu2 }
 0xa63   :  { %v2283_v2 = vrot.slane %v2207_v7, 6  ;;  %v2234_v34 = vpop.f32.mrf.mxu3 }
 0xa64   :  { %v2153_v41 = vpop.f32.mrf.mxu0  ;;  %v2285_v21 = vrot.slane %v2234_v34, 5 }
 0xa65   :  { %v2282_v39 = vsel %vm652_vm6, %v2281_v40, %v2153_v41 }
 0xa66   :  { %v2284_v47 = vsel %vm654_vm7, %v2283_v2, %v2282_v39 }
 0xa67   :  { %v2286_v8 = vsel %vm656_vm8, %v2285_v21, %v2284_v47 }
 0xa68   :  { %2555 = vmatmul.msk.f32.vlgmr.msrb.gmra.mxu1 %vm408_vm0, %v2286_v8 }
 0xa6b   :  { %v2360_v22 = vpop.f32.mrf.mxu3 }
 0xa7e   :  { %v2262_v53 = vpop.f32.mrf.mxu0 }
 0xa7f   :  { %v2263_v48 = vadd.f32 %v2657_v35, %v2262_v53 }
 0xacc   :  { %v2339_v50 = vpop.f32.mrf.mxu2 }
 0xae5   :  { %v2306_v31 = vpop.f32.mrf.mxu1 }
 0xae6   :  { %v2309_v63 = vadd.f32 %v2306_v31, %v2263_v48 }
 0xae8   :  { %v2342_v52 = vadd.f32 %v2339_v50, %v2309_v63 }
 0xaea   :  { %v2363_v54 = vadd.f32 %v2360_v22, %v2342_v52 }
 0xaec   :  { %2754 = vtanh.f32 %v2363_v54  ;;  %v2558_v32 = vmul.f32 -1.442695, %v2363_v54 }
 0xaee   :  { %2756 = vpow2.f32 %v2558_v32 }
 0xaf2   :  { %v2755_v13 = vpop.eup %2754 }
 0xaf3   :  { %2390 = vrot.lane.b32.xlu1 %v2755_v13, %s3261_s12 }
 0xaf4   :  { %v2757_v62 = vpop.eup %2756 }
 0xaf5   :  { %v2367_v45 = vadd.f32 1.0, %v2757_v62 }
 0xaf7   :  { %2758 = vrcp.f32 %v2367_v45  ;;  %v2379_v12 = vand.u32 2147483648, %v2367_v45  ;;  %vm2373_vm6 = vweird.f32 %v2367_v45  ;;  %v2377_v10 = vand.u32 2147483647, %v2367_v45 }
 0xaf9   :  { %v2380_v14 = vor.u32 1.1754944e-38, %v2379_v12  ;;  %vm2378_vm8 = vcmp.eq.f32.partialorder %v2377_v10, 8.507059e+37 }
 0xafd   :  { %v2759_v56 = vpop.eup %2758 }
 0xafe   :  { %v2369_v61 = vmul.f32 %v2759_v56, %v2367_v45  ;;  %vm2374_vm0 = vweird.f32 %v2759_v56 }
 0xaff   :  { %vm2375_vm7 = vmor %vm2373_vm6, %vm2374_vm0 }
 0xb00   :  { %v2370_v24 = vsub.f32 1.0, %v2369_v61 }
 0xb02   :  { %v2371_v5 = vmul.f32 %v2759_v56, %v2370_v24 }
 0xb04   :  { %v2372_v59 = vadd.f32 %v2759_v56, %v2371_v5 }
 0xb06   :  { %v2376_v46 = vsel %vm2375_vm7, %v2759_v56, %v2372_v59 }
 0xb07   :  { %v2381_v30 = vsel %vm2378_vm8, %v2380_v14, %v2376_v46 }
 0xb08   :  { %v2388_v18 = vmul.f32 %v2386_v33, %v2381_v30 }
 0xb65   :  { %v2391_v29 = vpop.permute.xlu1 %2390 }
 0xb66   :  { %v2393_v4 = vmul.f32 %v2391_v29, %v2381_v30 }
 0xb68   :  { %2395 = vrot.lane.b32.xlu0 %v2393_v4, %s3273_s29 }
 0xb70   :  { %2415 = vrot.lane.b32.xlu0 %v3626_v49, %s3274_s18 }
 0xbda   :  { %v2396_v44 = vpop.permute.xlu0 %2395 }
 0xbdb   :  { %v2398_v51 = vadd.f32 %v2396_v44, %v2388_v18 }
 0xbdd   :  { %2760 = vtanh.f32 %v2398_v51 }
 0xbe2   :  { %v2416_v27 = vpop.permute.xlu0 %2415 }
 0xbe3   :  { %v2761_v0 = vpop.eup %2760  ;;  %2418 = vst.msk [vmem:[#allocation29] sm:$0xf] %vm984_vm5, %v2416_v27 }
 0xbe4   :  { %2401 = vrot.lane.b32.xlu1 %v2761_v0, %s3261_s12 }
 0xbec   :  { %2420 = vrot.lane.b32.xlu1 %v2398_v51, %s3274_s18  ;;  %s2455_s18 = sshll.u32 %s3482_s9, 4  ;;  %s4232_s18 = int_to_ptr.hbm [resolvable:$true] %s2455_s18 }
 0xc56   :  { %v2402_v17 = vpop.permute.xlu1 %2401 }
 0xc57   :  { %v2404_v1 = vmul.f32 %v2402_v17, %v2381_v30 }
 0xc59   :  { %2406 = vrot.lane.b32.xlu2 %v2404_v1, %s3273_s29  ;;  %s3135_s29 = sshra.s32 %s2433_s4, 4  ;;  %s3136_s29 = int_to_ptr.hbm [resolvable:$true] %s3135_s29 }
 0xc5a   :  { %s3137_s23 = scalar_lea.hbm %s3136_s29, 4  ;;  %p3140_p6 = scmp.lt.s32.totalorder %s3136_s29, %s3472_s20 }
 0xc5b   :  { %p3138_p5 = scmp.ne.s32.totalorder %s3136_s29, %s3137_s23  ;;  %p3141_p7 = scmp.lt.s32.totalorder %s3139_s27, %s3137_s23 }
 0xc5d   :  { %p3142_p8 = por %p3141_p7, %p3140_p6 }
 0xc5e   :  { %v2421_v49 = vpop.permute.xlu1 %2420 }
 0xc5f   :  { %2424 = vst.msk [vmem:[#allocation29 + $0x4] sm:$0xf] %vm984_vm5, %v2421_v49  ;;  %p3143_p9 = pnand %p3142_p8, %p3138_p5 }
 0xcb3   :  { %v2407_v19 = vpop.permute.xlu2 %2406 }
 0xcb4   :  { %2409 = vst.msk [vmem:[#allocation26] sm:$0xf] %vm984_vm5, %v2407_v19 }
 0xcb5   :  { %2413 = vst.msk [vmem:[#allocation27 + $0x4] sm:$0xf] %vm984_vm5, %v2407_v19 }
 0xcb6   :  { %3146 = shalt.err (!%p3143_p9)
}
 0xcb7   :  { %2435 = dma.vmem_to_hbm [thread:$0]  %s2431_s10, 64, %s2433_s4, [#allocation4]  }
 0xcb8   :  { %s3159_s3 = sshra.s32 %s4228_s19, 4  ;;  %s3163_s28 = scalar_lea.hbm %s3477_s6, 8  ;;  %s3160_s3 = int_to_ptr.hbm [resolvable:$true] %s3159_s3 }
 0xcb9   :  { %s3161_s13 = scalar_lea.hbm %s3160_s3, 8  ;;  %p3164_p11 = scmp.lt.s32.totalorder %s3160_s3, %s3477_s6 }
 0xcba   :  { %p3162_p10 = scmp.ne.s32.totalorder %s3160_s3, %s3161_s13  ;;  %p3165_p12 = scmp.lt.s32.totalorder %s3163_s28, %s3161_s13 }
 0xcbc   :  { %p3166_p13 = por %p3165_p12, %p3164_p11 }
 0xcbe   :  { %p3167_p0 = pnand %p3166_p13, %p3162_p10 }
 0xcc0   :  { %3170 = shalt.err (!%p3167_p0)
}
 0xcc1   :  { %2448 = dma.vmem_to_hbm [thread:$0]  %s2441_s25, 128, %s4228_s19, [#allocation28], %s3261_s12, %s3261_s12, %s3262_s22  }
 0xcc2   :  { %s3183_s20 = sshra.s32 %s4232_s18, 4  ;;  %s3187_s1 = scalar_lea.hbm %s3482_s9, 8  ;;  %s3184_s20 = int_to_ptr.hbm [resolvable:$true] %s3183_s20 }
 0xcc3   :  { %s3185_s26 = scalar_lea.hbm %s3184_s20, 8  ;;  %p3188_p2 = scmp.lt.s32.totalorder %s3184_s20, %s3482_s9 }
 0xcc4   :  { %p3186_p1 = scmp.ne.s32.totalorder %s3184_s20, %s3185_s26  ;;  %p3189_p3 = scmp.lt.s32.totalorder %s3187_s1, %s3185_s26 }
 0xcc6   :  { %p3190_p4 = por %p3189_p3, %p3188_p2 }
 0xcc8   :  { %p3191_p5 = pnand %p3190_p4, %p3186_p1 }
 0xcca   :  { %3194 = shalt.err (!%p3191_p5)
}
 0xccb   :  { %2461 = dma.vmem_to_hbm [thread:$0]  %s2454_s16, 128, %s4232_s18, [#allocation28], %s3261_s12, %s3261_s12, %s3262_s22  }
 0xccc   :  { %3211 = dma.done.wait [#allocation4], 64  }
 0xccd   :  { %3212 = vsyncadd [#allocation4], 4294967232 }
 0xcce   :  { %3213 = dma.done.wait [#allocation28], 256  }
 0xccf   :  { %3214 = vsyncadd [#allocation28], 4294967040 }
 0xcd0   :  { %2474 = vsyncpa [#allocation3], 1 }
 0xcd1   :  { %2475 = vsyncpa [#allocation6], 1 }
 0xcd2   :  { %2476 = vsyncpa [#allocation9], 1 }
 0xcd3   :  { %2477 = vsyncpa [#allocation12], 1 }
 0xcd4   :  { %2478 = vsyncpa [#allocation15], 1 }
 0xcd5   :  { %2479 = vsyncpa [#allocation18], 1 }
 0xcd6   :  { %2480 = vsyncpa [#allocation21], 1 }
 0xcd7   :  { %2481 = vsyncpa [#allocation24], 1 }
 0xcd8   :  { %2482 = vsyncpa [#allocation4], 1 }
 0xcd9   :  { %2483 = vsyncpa [#allocation28], 1 }

</bundles_post_ra>
